<compile_context>
chip_gen: v7x
topology: tpu7x:2x2x1
jax: 0.10.0
libtpu: 0.0.40
codegen_flags: <defaults>
</compile_context>

<pallas_src>
import functools
import math

import jax
import jax.numpy as jnp
from jax.experimental import pallas as pl
from jax.experimental.pallas import tpu as pltpu

LN_EPS = 1e-5
LANE = 128
SUBLANE = 8


def _round_up(x, m):
    return ((x + m - 1) // m) * m


def _pick_tile(total, target, quantum):
    """Largest multiple of `quantum` <= target that divides `total`."""
    t = max(quantum, (min(total, target) // quantum) * quantum)
    while total % t != 0:
        t -= quantum
    return t


def _layernorm_padded(x, gamma, beta, d_true):
    """LayerNorm over the true feature dim of a zero-column-padded (..., D_pad) x.

    Two-pass (x - mean)^2 variance (numerically stable); padded columns are
    excluded from the variance and stay exactly zero in the output because
    gamma/beta are zero-padded.
    """
    d_pad = x.shape[-1]
    inv_d = 1.0 / float(d_true)
    mean = jnp.sum(x, axis=-1, keepdims=True) * inv_d
    centered = x - mean
    if d_true == d_pad:
        sq = centered * centered
    else:
        col = jax.lax.broadcasted_iota(jnp.int32, x.shape, x.ndim - 1)
        sq = jnp.where(col < d_true, centered, jnp.float32(0.0))
        sq = sq * sq
    var = jnp.sum(sq, axis=-1, keepdims=True) * inv_d
    return centered * jax.lax.rsqrt(var + LN_EPS) * gamma + beta


# -------------------- kernel 1: the stacked transformer layers --------------------

def layer_stack_kernel(
    x_ref,
    ln1_g, ln1_b, wqkv, bqkv, wo, bo,
    ln2_g, ln2_b, w1, b1, w2, b2,
    h_ref,
    *, batch_per_block, seq_pad, seq_true, d_true,
):
    """Grid = (row_groups, num_layers); one grid step == one layer for one group.

    The running activation lives in the output block h_ref (constant index
    over the layer axis -> VMEM-resident across layers, written to HBM once).
    """
    layer = pl.program_id(1)

    @pl.when(layer == 0)
    def _():
        h_ref[...] = x_ref[...]

    h = h_ref[...]                                   # (rows, Dp) f32
    rows, dp = h.shape

    # ---- sub-layer 1: h + NSA(norm1(h)) ----
    xn = _layernorm_padded(h, ln1_g[0, 0], ln1_b[0, 0], d_true)
    qkv = jnp.dot(xn.astype(jnp.bfloat16), wqkv[0],
                  preferred_element_type=jnp.float32) + bqkv[0, 0]

    # Batched (B, T, T) attention: factor-of-B fewer FLOPs than flattened (BT, BT).
    q = qkv[:, :dp].reshape(batch_per_block, seq_pad, dp).astype(jnp.bfloat16)
    k = qkv[:, dp:2 * dp].reshape(batch_per_block, seq_pad, dp).astype(jnp.bfloat16)
    v = qkv[:, 2 * dp:].reshape(batch_per_block, seq_pad, dp).astype(jnp.bfloat16)

    # 1/sqrt(d) was folded into the Q columns of wqkv at init time.
    s = jnp.einsum("bqd,bkd->bqk", q, k, preferred_element_type=jnp.float32)

    # In-kernel causal + key-validity additive bias (no HBM mask tensor).
    qi = jax.lax.broadcasted_iota(jnp.int32, (seq_pad, seq_pad), 0)
    ki = jax.lax.broadcasted_iota(jnp.int32, (seq_pad, seq_pad), 1)
    bias = jnp.where((ki <= qi) & (ki < seq_true),
                     jnp.float32(0.0), jnp.float32(-1e30))
    s = s + bias[None, :, :]

    s = s - jnp.max(s, axis=-1, keepdims=True)
    p = jnp.exp(s)
    p = p * pl.reciprocal(jnp.sum(p, axis=-1, keepdims=True), approx=True)

    attn = jnp.einsum("bqk,bkd->bqd", p.astype(jnp.bfloat16), v,
                      preferred_element_type=jnp.float32)
    attn = attn.reshape(rows, dp)
    attn = jnp.dot(attn.astype(jnp.bfloat16), wo[0],
                   preferred_element_type=jnp.float32) + bo[0, 0]
    h = h + attn

    # ---- sub-layer 2: h + FFN(norm2(h)) ----
    hn = _layernorm_padded(h, ln2_g[0, 0], ln2_b[0, 0], d_true)
    f = jnp.dot(hn.astype(jnp.bfloat16), w1[0],
                preferred_element_type=jnp.float32) + b1[0, 0]
    f = jnp.maximum(f, 0.0)
    f = jnp.dot(f.astype(jnp.bfloat16), w2[0],
                preferred_element_type=jnp.float32) + b2[0, 0]

    h_ref[...] = h + f


# -------------------- kernel 2: final LayerNorm + vocab head --------------------

def head_kernel(h_ref, g_ref, b_ref, w_ref, fb_ref, out_ref, xn_ref, *, d_true):
    """Grid = (row_tiles, vocab_tiles). LayerNorm computed once per row tile."""
    @pl.when(pl.program_id(1) == 0)
    def _():
        xn_ref[...] = _layernorm_padded(
            h_ref[...], g_ref[0], b_ref[0], d_true).astype(xn_ref.dtype)
    out_ref[...] = jnp.dot(xn_ref[...], w_ref[...],
                           preferred_element_type=jnp.float32) + fb_ref[0]


# -------------------- parameter construction (deterministic) --------------------

def init_params(key, vocab_size, emb_dim, context_len, ffn_dim, num_layers):
    D, F, V = emb_dim, ffn_dim, vocab_size
    Dp, Fp, Vp = _round_up(D, LANE), _round_up(F, LANE), _round_up(V, LANE)
    # NOTE: on v6e/v7x, padding D/F to multiples of 256 (when the true dims allow)
    # feeds the 256x256 MXU fully; 128 kept here for the small v5e-friendly demo.

    keys = jax.random.split(key, 3 + num_layers)

    def normal(k, shape, std=0.02):
        return (std * jax.random.normal(k, shape)).astype(jnp.float32)

    def padw(w, rows, cols):
        return jnp.zeros((rows, cols), jnp.float32).at[:w.shape[0], :w.shape[1]].set(w)

    # embeddings: padded feature columns are exactly zero
    tok_emb = padw(normal(keys[0], (V, D), 1.0), V, Dp)
    pos_emb = jnp.zeros((1, context_len, Dp), jnp.float32).at[:, :, :D].set(
        normal(keys[1], (1, context_len, D), 1.0))

    ones_d = jnp.zeros((Dp,), jnp.float32).at[:D].set(1.0)
    zeros_d = jnp.zeros((Dp,), jnp.float32)

    attn_scale = 1.0 / math.sqrt(D)   # folded into the Q projection (and its bias)

    ln1_g, ln1_b, wqkv, bqkv, wo, bo = [], [], [], [], [], []
    ln2_g, ln2_b, w1, b1, w2, b2 = [], [], [], [], [], []
    for li in range(num_layers):
        lk = jax.random.split(keys[3 + li], 6)
        wq = padw(normal(lk[0], (D, D)) * attn_scale, Dp, Dp)
        wk = padw(normal(lk[1], (D, D)), Dp, Dp)
        wv = padw(normal(lk[2], (D, D)), Dp, Dp)
        wqkv.append(jnp.concatenate([wq, wk, wv], axis=1))   # (Dp, 3*Dp)
        bqkv.append(jnp.zeros((1, 3 * Dp), jnp.float32))      # q-bias would be pre-scaled too
        wo.append(padw(normal(lk[3], (D, D)), Dp, Dp))
        bo.append(jnp.zeros((1, Dp), jnp.float32))
        ln1_g.append(ones_d[None]); ln1_b.append(zeros_d[None])
        ln2_g.append(ones_d[None]); ln2_b.append(zeros_d[None])
        w1.append(padw(normal(lk[4], (D, F)), Dp, Fp))
        b1.append(jnp.zeros((1, Fp), jnp.float32))
        w2.append(padw(normal(lk[5], (F, D)), Fp, Dp))
        b2.append(jnp.zeros((1, Dp), jnp.float32))

    params = {
        "tok_emb": tok_emb,                            # (V, Dp) f32
        "pos_emb": pos_emb,                            # (1, ctx, Dp) f32
        "ln1_g": jnp.stack(ln1_g), "ln1_b": jnp.stack(ln1_b),     # (L, 1, Dp)
        "wqkv": jnp.stack(wqkv).astype(jnp.bfloat16),             # (L, Dp, 3Dp)
        "bqkv": jnp.stack(bqkv),                                  # (L, 1, 3Dp)
        "wo": jnp.stack(wo).astype(jnp.bfloat16),                 # (L, Dp, Dp)
        "bo": jnp.stack(bo),                                      # (L, 1, Dp)
        "ln2_g": jnp.stack(ln2_g), "ln2_b": jnp.stack(ln2_b),     # (L, 1, Dp)
        "w1": jnp.stack(w1).astype(jnp.bfloat16),                 # (L, Dp, Fp)
        "b1": jnp.stack(b1),                                      # (L, 1, Fp)
        "w2": jnp.stack(w2).astype(jnp.bfloat16),                 # (L, Fp, Dp)
        "b2": jnp.stack(b2),                                      # (L, 1, Dp)
        "norm_g": ones_d[None, :], "norm_b": zeros_d[None, :],    # (1, Dp)
        "fc_w": padw(normal(keys[2], (D, V)), Dp, Vp).astype(jnp.bfloat16),
        "fc_b": jnp.zeros((1, Vp), jnp.float32),
    }
    return params


# -------------------- forward wrapper --------------------

def _layer_vmem_estimate(rows, dp, fp, bpb, tp):
    """Rough VMEM byte accounting for the layer kernel (weights double-buffered)."""
    weights = 2 * 2 * (dp * 3 * dp + dp * dp + dp * fp + fp * dp)        # bf16 x 2 bufs
    small = 2 * 4 * (6 * dp + 3 * dp + fp)                               # ln/bias blocks
    acts = 4 * (3 * rows * dp            # x + out (resident, ~2 bufs)
                + rows * 3 * dp          # qkv
                + rows * fp              # ffn hidden
                + 2 * bpb * tp * tp      # scores + probs
                + 2 * rows * dp)         # attn / temporaries
    return weights + small + acts


def nsa_transformer_forward(tokens, params, *, emb_dim, vocab_size,
                            num_row_groups=1):
    """tokens: (B, T) int32 -> logits (B, T, vocab_size) float32."""
    B, T = tokens.shape
    Dp = params["tok_emb"].shape[1]
    Vp = params["fc_w"].shape[1]
    Fp = params["w1"].shape[2]
    L = params["wqkv"].shape[0]
    Tp = _round_up(T, SUBLANE)

    # glue: embedding gather + positional add (plain JAX), flatten batch to rows
    x = params["tok_emb"][tokens] + params["pos_emb"][:, :T, :]   # (B, T, Dp)
    if Tp != T:
        x = jnp.pad(x, ((0, 0), (0, Tp - T), (0, 0)))
    N = B * Tp
    x = x.reshape(N, Dp).astype(jnp.float32)

    # Optional megacore split over batch groups (useful on v7x's 2 TensorCores;
    # keep 1 on single-TC chips to avoid re-streaming weights per group).
    G = num_row_groups if (num_row_groups > 0 and B % num_row_groups == 0) else 1
    bpb = B // G
    rows = bpb * Tp

    vmem_limit = int(min(max(2 * _layer_vmem_estimate(rows, Dp, Fp, bpb, Tp),
                             32 * 1024 * 1024), 64 * 1024 * 1024))

    def per_layer_spec(arr):
        block = (1,) + arr.shape[1:]
        nz = arr.ndim - 1
        return pl.BlockSpec(block, lambda g, l, nz=nz: (l,) + (0,) * nz)

    layer_kernel = functools.partial(
        layer_stack_kernel,
        batch_per_block=bpb, seq_pad=Tp, seq_true=T, d_true=emb_dim)

    def run_layers(single_buffer_x):
        xkw = {}
        if single_buffer_x:
            # constant-index input -> one pipeline buffer is enough
            xkw["pipeline_mode"] = pl.Buffered(1)
        grid_spec = pltpu.PrefetchScalarGridSpec(
            num_scalar_prefetch=0,
            grid=(G, L),
            in_specs=[
                pl.BlockSpec((rows, Dp), lambda g, l: (g, 0), **xkw),
                per_layer_spec(params["ln1_g"]), per_layer_spec(params["ln1_b"]),
                per_layer_spec(params["wqkv"]), per_layer_spec(params["bqkv"]),
                per_layer_spec(params["wo"]), per_layer_spec(params["bo"]),
                per_layer_spec(params["ln2_g"]), per_layer_spec(params["ln2_b"]),
                per_layer_spec(params["w1"]), per_layer_spec(params["b1"]),
                per_layer_spec(params["w2"]), per_layer_spec(params["b2"]),
            ],
            out_specs=pl.BlockSpec((rows, Dp), lambda g, l: (g, 0)),
        )
        return pl.pallas_call(
            layer_kernel,
            out_shape=jax.ShapeDtypeStruct((N, Dp), jnp.float32),
            grid_spec=grid_spec,
            compiler_params=pltpu.CompilerParams(
                dimension_semantics=("parallel", "arbitrary"),
                vmem_limit_bytes=vmem_limit),
        )(
            x,
            params["ln1_g"], params["ln1_b"],
            params["wqkv"], params["bqkv"],
            params["wo"], params["bo"],
            params["ln2_g"], params["ln2_b"],
            params["w1"], params["b1"],
            params["w2"], params["b2"],
        )

    try:
        h = run_layers(True)
    except Exception:
        # pipeline_mode / Buffered(1) not supported in this jax version -> fall
        # back to default double buffering (identical numerics).
        h = run_layers(False)

    # ---- separate tiled head kernel: LayerNorm + vocab projection ----
    tn = _pick_tile(N, 256, SUBLANE)
    tv = _pick_tile(Vp, 512, LANE)
    logits_pad = pl.pallas_call(
        functools.partial(head_kernel, d_true=emb_dim),
        out_shape=jax.ShapeDtypeStruct((N, Vp), jnp.float32),
        grid_spec=pltpu.PrefetchScalarGridSpec(
            num_scalar_prefetch=0,
            grid=(N // tn, Vp // tv),
            in_specs=[
                pl.BlockSpec((tn, Dp), lambda i, j: (i, 0)),
                pl.BlockSpec((1, Dp), lambda i, j: (0, 0)),
                pl.BlockSpec((1, Dp), lambda i, j: (0, 0)),
                pl.BlockSpec((Dp, tv), lambda i, j: (0, j)),
                pl.BlockSpec((1, tv), lambda i, j: (0, j)),
            ],
            out_specs=pl.BlockSpec((tn, tv), lambda i, j: (i, j)),
            scratch_shapes=[pltpu.VMEM((tn, Dp), jnp.bfloat16)],
        ),
        compiler_params=pltpu.CompilerParams(
            dimension_semantics=("parallel", "arbitrary")),
    )(h, params["norm_g"], params["norm_b"], params["fc_w"], params["fc_b"])

    return logits_pad.reshape(B, Tp, Vp)[:, :T, :vocab_size]


if __name__ == "__main__":
    vocab_size = 64
    emb_dim = 32
    context_len = 16
    num_heads = 4          # NSA stand-in is single-head; kept for interface parity
    num_layers = 2
    ffn_dim = 64
    B, T = 2, 16

    key = jax.random.PRNGKey(0)
    pkey, tkey = jax.random.split(key)
    params = init_params(pkey, vocab_size, emb_dim, context_len, ffn_dim, num_layers)
    tokens = jax.random.randint(tkey, (B, T), 0, vocab_size, dtype=jnp.int32)

    logits = nsa_transformer_forward(tokens, params,
                                     emb_dim=emb_dim, vocab_size=vocab_size,
                                     num_row_groups=1)
    jax.block_until_ready(logits)
    assert logits.shape == (B, T, vocab_size)
    assert logits.dtype == jnp.float32
    assert bool(jnp.all(jnp.isfinite(logits)))
    print("KERNEL_OK")
</pallas_src>

<mosaic_0001>
module attributes {stable_mosaic.version = 11 : i64} {
  func.func @layer_stack_kernel(%arg0: i32, %arg1: i32, %arg2: memref<32x128xf32, #tpu.memory_space<vmem>>, %arg3: memref<1x1x128xf32, #tpu.memory_space<vmem>>, %arg4: memref<1x1x128xf32, #tpu.memory_space<vmem>>, %arg5: memref<1x128x384xbf16, #tpu.memory_space<vmem>>, %arg6: memref<1x1x384xf32, #tpu.memory_space<vmem>>, %arg7: memref<1x128x128xbf16, #tpu.memory_space<vmem>>, %arg8: memref<1x1x128xf32, #tpu.memory_space<vmem>>, %arg9: memref<1x1x128xf32, #tpu.memory_space<vmem>>, %arg10: memref<1x1x128xf32, #tpu.memory_space<vmem>>, %arg11: memref<1x128x128xbf16, #tpu.memory_space<vmem>>, %arg12: memref<1x1x128xf32, #tpu.memory_space<vmem>>, %arg13: memref<1x128x128xbf16, #tpu.memory_space<vmem>>, %arg14: memref<1x1x128xf32, #tpu.memory_space<vmem>>, %arg15: memref<32x128xf32, #tpu.memory_space<vmem>>) attributes {dimension_semantics = [#tpu.dimension_semantics<parallel>, #tpu.dimension_semantics<arbitrary>], iteration_bounds = array<i64: 1, 2>, scalar_prefetch = 0 : i64, scratch_operands = 0 : i64, tpu.core_type = #tpu.core_type<tc>, window_params = [{pipeline_mode = #tpu.pipeline_mode<synchronous>, transform_indices = @transform_0, window_bounds = array<i64: 32, 128>}, {transform_indices = @transform_1, window_bounds = array<i64: 1, 1, 128>}, {transform_indices = @transform_2, window_bounds = array<i64: 1, 1, 128>}, {transform_indices = @transform_3, window_bounds = array<i64: 1, 128, 384>}, {transform_indices = @transform_4, window_bounds = array<i64: 1, 1, 384>}, {transform_indices = @transform_5, window_bounds = array<i64: 1, 128, 128>}, {transform_indices = @transform_6, window_bounds = array<i64: 1, 1, 128>}, {transform_indices = @transform_7, window_bounds = array<i64: 1, 1, 128>}, {transform_indices = @transform_8, window_bounds = array<i64: 1, 1, 128>}, {transform_indices = @transform_9, window_bounds = array<i64: 1, 128, 128>}, {transform_indices = @transform_10, window_bounds = array<i64: 1, 1, 128>}, {transform_indices = @transform_11, window_bounds = array<i64: 1, 128, 128>}, {transform_indices = @transform_12, window_bounds = array<i64: 1, 1, 128>}, {transform_indices = @transform_13, window_bounds = array<i64: 32, 128>}]} {
    %c0_i32 = arith.constant 0 : i32
    %0 = arith.cmpi eq, %arg1, %c0_i32 : i32
    %1 = arith.extui %0 : i1 to i32
    %c0_i32_0 = arith.constant 0 : i32
    %2 = arith.cmpi ne, %1, %c0_i32_0 : i32
    scf.if %2 {
      %c0_63 = arith.constant 0 : index
      %c0_64 = arith.constant 0 : index
      %142 = vector.load %arg2[%c0_63, %c0_64] : memref<32x128xf32, #tpu.memory_space<vmem>>, vector<32x128xf32>
      %c0_65 = arith.constant 0 : index
      %c0_66 = arith.constant 0 : index
      %143 = vector.load %arg15[%c0_65, %c0_66] : memref<32x128xf32, #tpu.memory_space<vmem>>, vector<32x128xf32>
      tpu.vector_store %arg15[%c0_65, %c0_66], %142 {strides = array<i32>} : memref<32x128xf32, #tpu.memory_space<vmem>>, vector<32x128xf32>,
    } else {
    }
    %c0 = arith.constant 0 : index
    %c0_1 = arith.constant 0 : index
    %3 = vector.load %arg15[%c0, %c0_1] : memref<32x128xf32, #tpu.memory_space<vmem>>, vector<32x128xf32>
    %c0_2 = arith.constant 0 : index
    %c0_3 = arith.constant 0 : index
    %c0_4 = arith.constant 0 : index
    %4 = vector.load %arg3[%c0_2, %c0_3, %c0_4] : memref<1x1x128xf32, #tpu.memory_space<vmem>>, vector<1x1x128xf32>
    %5 = vector.shape_cast %4 : vector<1x1x128xf32> to vector<128xf32>
    %c0_5 = arith.constant 0 : index
    %c0_6 = arith.constant 0 : index
    %c0_7 = arith.constant 0 : index
    %6 = vector.load %arg4[%c0_5, %c0_6, %c0_7] : memref<1x1x128xf32, #tpu.memory_space<vmem>>, vector<1x1x128xf32>
    %7 = vector.shape_cast %6 : vector<1x1x128xf32> to vector<128xf32>
    %cst = arith.constant dense<0.000000e+00> : vector<32xf32>
    %8 = vector.multi_reduction <add>, %3, %cst [1] : vector<32x128xf32> to vector<32xf32>
    %9 = vector.shape_cast %8 : vector<32xf32> to vector<32x1xf32>
    %cst_8 = arith.constant 3.125000e-02 : f32
    %10 = vector.broadcast %cst_8 : f32 to vector<32x1xf32>
    %11 = arith.mulf %9, %10 : vector<32x1xf32>
    %12 = vector.broadcast %11 : vector<32x1xf32> to vector<32x128xf32>
    %13 = arith.subf %3, %12 : vector<32x128xf32>
    %14 = tpu.iota {dimensions = array<i32: 1>} : vector<32x128xi32>
    %c32_i32 = arith.constant 32 : i32
    %15 = vector.broadcast %c32_i32 : i32 to vector<32x128xi32>
    %16 = arith.cmpi slt, %14, %15 : vector<32x128xi32>
    %cst_9 = arith.constant 0.000000e+00 : f32
    %17 = vector.broadcast %cst_9 : f32 to vector<32x128xf32>
    %18 = arith.select %16, %13, %17 : vector<32x128xi1>, vector<32x128xf32>
    %19 = arith.mulf %18, %18 : vector<32x128xf32>
    %cst_10 = arith.constant dense<0.000000e+00> : vector<32xf32>
    %20 = vector.multi_reduction <add>, %19, %cst_10 [1] : vector<32x128xf32> to vector<32xf32>
    %21 = vector.shape_cast %20 : vector<32xf32> to vector<32x1xf32>
    %cst_11 = arith.constant 3.125000e-02 : f32
    %22 = vector.broadcast %cst_11 : f32 to vector<32x1xf32>
    %23 = arith.mulf %21, %22 : vector<32x1xf32>
    %cst_12 = arith.constant 9.99999974E-6 : f32
    %24 = vector.broadcast %cst_12 : f32 to vector<32x1xf32>
    %25 = arith.addf %23, %24 : vector<32x1xf32>
    %26 = math.rsqrt %25 : vector<32x1xf32>
    %27 = vector.broadcast %26 : vector<32x1xf32> to vector<32x128xf32>
    %28 = arith.mulf %13, %27 : vector<32x128xf32>
    %29 = vector.shape_cast %5 : vector<128xf32> to vector<1x128xf32>
    %30 = vector.broadcast %29 : vector<1x128xf32> to vector<32x128xf32>
    %31 = arith.mulf %28, %30 : vector<32x128xf32>
    %32 = vector.shape_cast %7 : vector<128xf32> to vector<1x128xf32>
    %33 = vector.broadcast %32 : vector<1x128xf32> to vector<32x128xf32>
    %34 = arith.addf %31, %33 : vector<32x128xf32>
    %35 = arith.truncf %34 : vector<32x128xf32> to vector<32x128xbf16>
    %c0_13 = arith.constant 0 : index
    %c0_14 = arith.constant 0 : index
    %c0_15 = arith.constant 0 : index
    %36 = vector.load %arg5[%c0_13, %c0_14, %c0_15] : memref<1x128x384xbf16, #tpu.memory_space<vmem>>, vector<1x128x384xbf16>
    %37 = vector.shape_cast %36 : vector<1x128x384xbf16> to vector<128x384xbf16>
    %cst_16 = arith.constant dense<0.000000e+00> : vector<32x384xf32>
    %38 = tpu.matmul %35, %37, %cst_16 {dimension_numbers = #tpu.dot_dimension_numbers<[1], [0], [0], [1], [0, 0, 1, 1], [], []>} : vector<32x128xbf16>, vector<128x384xbf16>, vector<32x384xf32> -> vector<32x384xf32>
    %c0_17 = arith.constant 0 : index
    %c0_18 = arith.constant 0 : index
    %c0_19 = arith.constant 0 : index
    %39 = vector.load %arg6[%c0_17, %c0_18, %c0_19] : memref<1x1x384xf32, #tpu.memory_space<vmem>>, vector<1x1x384xf32>
    %40 = vector.shape_cast %39 : vector<1x1x384xf32> to vector<384xf32>
    %41 = vector.shape_cast %40 : vector<384xf32> to vector<1x384xf32>
    %42 = vector.broadcast %41 : vector<1x384xf32> to vector<32x384xf32>
    %43 = arith.addf %38, %42 : vector<32x384xf32>
    %44 = vector.extract_strided_slice %43 {offsets = [0, 0], sizes = [32, 128], strides = [1, 1]} : vector<32x384xf32> to vector<32x128xf32>
    %45 = vector.shape_cast %44 : vector<32x128xf32> to vector<2x16x128xf32>
    %46 = arith.truncf %45 : vector<2x16x128xf32> to vector<2x16x128xbf16>
    %47 = vector.extract_strided_slice %43 {offsets = [0, 128], sizes = [32, 128], strides = [1, 1]} : vector<32x384xf32> to vector<32x128xf32>
    %48 = vector.shape_cast %47 : vector<32x128xf32> to vector<2x16x128xf32>
    %49 = arith.truncf %48 : vector<2x16x128xf32> to vector<2x16x128xbf16>
    %50 = vector.extract_strided_slice %43 {offsets = [0, 256], sizes = [32, 128], strides = [1, 1]} : vector<32x384xf32> to vector<32x128xf32>
    %51 = vector.shape_cast %50 : vector<32x128xf32> to vector<2x16x128xf32>
    %52 = arith.truncf %51 : vector<2x16x128xf32> to vector<2x16x128xbf16>
    "tpu.trace_start"() <{level = 10 : i32, message = "bqd,bkd->bqk"}> : () -> ()
    %cst_20 = arith.constant dense<0.000000e+00> : vector<2x16x16xf32>
    %53 = tpu.matmul %46, %49, %cst_20 {dimension_numbers = #tpu.dot_dimension_numbers<[2], [2], [1], [1], [0, 0, 0, 1, 1, 1], [0], [0]>} : vector<2x16x128xbf16>, vector<2x16x128xbf16>, vector<2x16x16xf32> -> vector<2x16x16xf32>
    "tpu.trace_stop"() : () -> ()
    %54 = tpu.iota {dimensions = array<i32: 0>} : vector<16x16xi32>
    %55 = tpu.iota {dimensions = array<i32: 1>} : vector<16x16xi32>
    %56 = arith.cmpi sle, %55, %54 : vector<16x16xi32>
    %c16_i32 = arith.constant 16 : i32
    %57 = vector.broadcast %c16_i32 : i32 to vector<16x16xi32>
    %58 = arith.cmpi slt, %55, %57 : vector<16x16xi32>
    %59 = arith.andi %56, %58 : vector<16x16xi1>
    %cst_21 = arith.constant 0.000000e+00 : f32
    %cst_22 = arith.constant -1.000000e+30 : f32
    %60 = vector.broadcast %cst_21 : f32 to vector<16x16xf32>
    %61 = vector.broadcast %cst_22 : f32 to vector<16x16xf32>
    %62 = arith.select %59, %60, %61 : vector<16x16xi1>, vector<16x16xf32>
    %63 = vector.shape_cast %62 : vector<16x16xf32> to vector<1x16x16xf32>
    %64 = vector.broadcast %63 : vector<1x16x16xf32> to vector<2x16x16xf32>
    %65 = arith.addf %53, %64 : vector<2x16x16xf32>
    %cst_23 = arith.constant dense<0xFF800000> : vector<2x16xf32>
    %66 = vector.multi_reduction <maximumf>, %65, %cst_23 [2] : vector<2x16x16xf32> to vector<2x16xf32>
    %67 = vector.shape_cast %66 : vector<2x16xf32> to vector<2x16x1xf32>
    %68 = vector.broadcast %67 : vector<2x16x1xf32> to vector<2x16x16xf32>
    %69 = arith.subf %65, %68 : vector<2x16x16xf32>
    %70 = math.exp %69 : vector<2x16x16xf32>
    %cst_24 = arith.constant dense<0.000000e+00> : vector<2x16xf32>
    %71 = vector.multi_reduction <add>, %70, %cst_24 [2] : vector<2x16x16xf32> to vector<2x16xf32>
    %72 = vector.shape_cast %71 : vector<2x16xf32> to vector<2x16x1xf32>
    %73 = tpu.reciprocal %72 {approx = true} : vector<2x16x1xf32> -> vector<2x16x1xf32>
    %74 = vector.broadcast %73 : vector<2x16x1xf32> to vector<2x16x16xf32>
    %75 = arith.mulf %70, %74 : vector<2x16x16xf32>
    %76 = arith.truncf %75 : vector<2x16x16xf32> to vector<2x16x16xbf16>
    "tpu.trace_start"() <{level = 10 : i32, message = "bqk,bkd->bqd"}> : () -> ()
    %cst_25 = arith.constant dense<0.000000e+00> : vector<2x16x128xf32>
    %77 = tpu.matmul %76, %52, %cst_25 {dimension_numbers = #tpu.dot_dimension_numbers<[2], [1], [1], [2], [0, 0, 0, 1, 1, 2], [0], [0]>} : vector<2x16x16xbf16>, vector<2x16x128xbf16>, vector<2x16x128xf32> -> vector<2x16x128xf32>
    "tpu.trace_stop"() : () -> ()
    %78 = vector.shape_cast %77 : vector<2x16x128xf32> to vector<32x128xf32>
    %79 = arith.truncf %78 : vector<32x128xf32> to vector<32x128xbf16>
    %c0_26 = arith.constant 0 : index
    %c0_27 = arith.constant 0 : index
    %c0_28 = arith.constant 0 : index
    %80 = vector.load %arg7[%c0_26, %c0_27, %c0_28] : memref<1x128x128xbf16, #tpu.memory_space<vmem>>, vector<1x128x128xbf16>
    %81 = vector.shape_cast %80 : vector<1x128x128xbf16> to vector<128x128xbf16>
    %cst_29 = arith.constant dense<0.000000e+00> : vector<32x128xf32>
    %82 = tpu.matmul %79, %81, %cst_29 {dimension_numbers = #tpu.dot_dimension_numbers<[1], [0], [0], [1], [0, 0, 1, 1], [], []>} : vector<32x128xbf16>, vector<128x128xbf16>, vector<32x128xf32> -> vector<32x128xf32>
    %c0_30 = arith.constant 0 : index
    %c0_31 = arith.constant 0 : index
    %c0_32 = arith.constant 0 : index
    %83 = vector.load %arg8[%c0_30, %c0_31, %c0_32] : memref<1x1x128xf32, #tpu.memory_space<vmem>>, vector<1x1x128xf32>
    %84 = vector.shape_cast %83 : vector<1x1x128xf32> to vector<128xf32>
    %85 = vector.shape_cast %84 : vector<128xf32> to vector<1x128xf32>
    %86 = vector.broadcast %85 : vector<1x128xf32> to vector<32x128xf32>
    %87 = arith.addf %82, %86 : vector<32x128xf32>
    %88 = arith.addf %3, %87 : vector<32x128xf32>
    %c0_33 = arith.constant 0 : index
    %c0_34 = arith.constant 0 : index
    %c0_35 = arith.constant 0 : index
    %89 = vector.load %arg9[%c0_33, %c0_34, %c0_35] : memref<1x1x128xf32, #tpu.memory_space<vmem>>, vector<1x1x128xf32>
    %90 = vector.shape_cast %89 : vector<1x1x128xf32> to vector<128xf32>
    %c0_36 = arith.constant 0 : index
    %c0_37 = arith.constant 0 : index
    %c0_38 = arith.constant 0 : index
    %91 = vector.load %arg10[%c0_36, %c0_37, %c0_38] : memref<1x1x128xf32, #tpu.memory_space<vmem>>, vector<1x1x128xf32>
    %92 = vector.shape_cast %91 : vector<1x1x128xf32> to vector<128xf32>
    %cst_39 = arith.constant dense<0.000000e+00> : vector<32xf32>
    %93 = vector.multi_reduction <add>, %88, %cst_39 [1] : vector<32x128xf32> to vector<32xf32>
    %94 = vector.shape_cast %93 : vector<32xf32> to vector<32x1xf32>
    %cst_40 = arith.constant 3.125000e-02 : f32
    %95 = vector.broadcast %cst_40 : f32 to vector<32x1xf32>
    %96 = arith.mulf %94, %95 : vector<32x1xf32>
    %97 = vector.broadcast %96 : vector<32x1xf32> to vector<32x128xf32>
    %98 = arith.subf %88, %97 : vector<32x128xf32>
    %99 = tpu.iota {dimensions = array<i32: 1>} : vector<32x128xi32>
    %c32_i32_41 = arith.constant 32 : i32
    %100 = vector.broadcast %c32_i32_41 : i32 to vector<32x128xi32>
    %101 = arith.cmpi slt, %99, %100 : vector<32x128xi32>
    %cst_42 = arith.constant 0.000000e+00 : f32
    %102 = vector.broadcast %cst_42 : f32 to vector<32x128xf32>
    %103 = arith.select %101, %98, %102 : vector<32x128xi1>, vector<32x128xf32>
    %104 = arith.mulf %103, %103 : vector<32x128xf32>
    %cst_43 = arith.constant dense<0.000000e+00> : vector<32xf32>
    %105 = vector.multi_reduction <add>, %104, %cst_43 [1] : vector<32x128xf32> to vector<32xf32>
    %106 = vector.shape_cast %105 : vector<32xf32> to vector<32x1xf32>
    %cst_44 = arith.constant 3.125000e-02 : f32
    %107 = vector.broadcast %cst_44 : f32 to vector<32x1xf32>
    %108 = arith.mulf %106, %107 : vector<32x1xf32>
    %cst_45 = arith.constant 9.99999974E-6 : f32
    %109 = vector.broadcast %cst_45 : f32 to vector<32x1xf32>
    %110 = arith.addf %108, %109 : vector<32x1xf32>
    %111 = math.rsqrt %110 : vector<32x1xf32>
    %112 = vector.broadcast %111 : vector<32x1xf32> to vector<32x128xf32>
    %113 = arith.mulf %98, %112 : vector<32x128xf32>
    %114 = vector.shape_cast %90 : vector<128xf32> to vector<1x128xf32>
    %115 = vector.broadcast %114 : vector<1x128xf32> to vector<32x128xf32>
    %116 = arith.mulf %113, %115 : vector<32x128xf32>
    %117 = vector.shape_cast %92 : vector<128xf32> to vector<1x128xf32>
    %118 = vector.broadcast %117 : vector<1x128xf32> to vector<32x128xf32>
    %119 = arith.addf %116, %118 : vector<32x128xf32>
    %120 = arith.truncf %119 : vector<32x128xf32> to vector<32x128xbf16>
    %c0_46 = arith.constant 0 : index
    %c0_47 = arith.constant 0 : index
    %c0_48 = arith.constant 0 : index
    %121 = vector.load %arg11[%c0_46, %c0_47, %c0_48] : memref<1x128x128xbf16, #tpu.memory_space<vmem>>, vector<1x128x128xbf16>
    %122 = vector.shape_cast %121 : vector<1x128x128xbf16> to vector<128x128xbf16>
    %cst_49 = arith.constant dense<0.000000e+00> : vector<32x128xf32>
    %123 = tpu.matmul %120, %122, %cst_49 {dimension_numbers = #tpu.dot_dimension_numbers<[1], [0], [0], [1], [0, 0, 1, 1], [], []>} : vector<32x128xbf16>, vector<128x128xbf16>, vector<32x128xf32> -> vector<32x128xf32>
    %c0_50 = arith.constant 0 : index
    %c0_51 = arith.constant 0 : index
    %c0_52 = arith.constant 0 : index
    %124 = vector.load %arg12[%c0_50, %c0_51, %c0_52] : memref<1x1x128xf32, #tpu.memory_space<vmem>>, vector<1x1x128xf32>
    %125 = vector.shape_cast %124 : vector<1x1x128xf32> to vector<128xf32>
    %126 = vector.shape_cast %125 : vector<128xf32> to vector<1x128xf32>
    %127 = vector.broadcast %126 : vector<1x128xf32> to vector<32x128xf32>
    %128 = arith.addf %123, %127 : vector<32x128xf32>
    %cst_53 = arith.constant 0.000000e+00 : f32
    %129 = vector.broadcast %cst_53 : f32 to vector<32x128xf32>
    %130 = arith.maximumf %128, %129 : vector<32x128xf32>
    %131 = arith.truncf %130 : vector<32x128xf32> to vector<32x128xbf16>
    %c0_54 = arith.constant 0 : index
    %c0_55 = arith.constant 0 : index
    %c0_56 = arith.constant 0 : index
    %132 = vector.load %arg13[%c0_54, %c0_55, %c0_56] : memref<1x128x128xbf16, #tpu.memory_space<vmem>>, vector<1x128x128xbf16>
    %133 = vector.shape_cast %132 : vector<1x128x128xbf16> to vector<128x128xbf16>
    %cst_57 = arith.constant dense<0.000000e+00> : vector<32x128xf32>
    %134 = tpu.matmul %131, %133, %cst_57 {dimension_numbers = #tpu.dot_dimension_numbers<[1], [0], [0], [1], [0, 0, 1, 1], [], []>} : vector<32x128xbf16>, vector<128x128xbf16>, vector<32x128xf32> -> vector<32x128xf32>
    %c0_58 = arith.constant 0 : index
    %c0_59 = arith.constant 0 : index
    %c0_60 = arith.constant 0 : index
    %135 = vector.load %arg14[%c0_58, %c0_59, %c0_60] : memref<1x1x128xf32, #tpu.memory_space<vmem>>, vector<1x1x128xf32>
    %136 = vector.shape_cast %135 : vector<1x1x128xf32> to vector<128xf32>
    %137 = vector.shape_cast %136 : vector<128xf32> to vector<1x128xf32>
    %138 = vector.broadcast %137 : vector<1x128xf32> to vector<32x128xf32>
    %139 = arith.addf %134, %138 : vector<32x128xf32>
    %140 = arith.addf %88, %139 : vector<32x128xf32>
    %c0_61 = arith.constant 0 : index
    %c0_62 = arith.constant 0 : index
    %141 = vector.load %arg15[%c0_61, %c0_62] : memref<32x128xf32, #tpu.memory_space<vmem>>, vector<32x128xf32>
    tpu.vector_store %arg15[%c0_61, %c0_62], %140 {strides = array<i32>} : memref<32x128xf32, #tpu.memory_space<vmem>>, vector<32x128xf32>,
    return
  }
  func.func @transform_0(%arg0: i32, %arg1: i32) -> (i32, i32) {
    %c0_i32 = arith.constant 0 : i32
    %c0_i32_0 = arith.constant 0 : i32
    return %arg0, %c0_i32 : i32, i32
  }
  func.func @transform_1(%arg0: i32, %arg1: i32) -> (i32, i32, i32) {
    %c0_i32 = arith.constant 0 : i32
    %c0_i32_0 = arith.constant 0 : i32
    %c0_i32_1 = arith.constant 0 : i32
    return %arg1, %c0_i32, %c0_i32_0 : i32, i32, i32
  }
  func.func @transform_2(%arg0: i32, %arg1: i32) -> (i32, i32, i32) {
    %c0_i32 = arith.constant 0 : i32
    %c0_i32_0 = arith.constant 0 : i32
    %c0_i32_1 = arith.constant 0 : i32
    return %arg1, %c0_i32, %c0_i32_0 : i32, i32, i32
  }
  func.func @transform_3(%arg0: i32, %arg1: i32) -> (i32, i32, i32) {
    %c0_i32 = arith.constant 0 : i32
    %c0_i32_0 = arith.constant 0 : i32
    %c0_i32_1 = arith.constant 0 : i32
    return %arg1, %c0_i32, %c0_i32_0 : i32, i32, i32
  }
  func.func @transform_4(%arg0: i32, %arg1: i32) -> (i32, i32, i32) {
    %c0_i32 = arith.constant 0 : i32
    %c0_i32_0 = arith.constant 0 : i32
    %c0_i32_1 = arith.constant 0 : i32
    return %arg1, %c0_i32, %c0_i32_0 : i32, i32, i32
  }
  func.func @transform_5(%arg0: i32, %arg1: i32) -> (i32, i32, i32) {
    %c0_i32 = arith.constant 0 : i32
    %c0_i32_0 = arith.constant 0 : i32
    %c0_i32_1 = arith.constant 0 : i32
    return %arg1, %c0_i32, %c0_i32_0 : i32, i32, i32
  }
  func.func @transform_6(%arg0: i32, %arg1: i32) -> (i32, i32, i32) {
    %c0_i32 = arith.constant 0 : i32
    %c0_i32_0 = arith.constant 0 : i32
    %c0_i32_1 = arith.constant 0 : i32
    return %arg1, %c0_i32, %c0_i32_0 : i32, i32, i32
  }
  func.func @transform_7(%arg0: i32, %arg1: i32) -> (i32, i32, i32) {
    %c0_i32 = arith.constant 0 : i32
    %c0_i32_0 = arith.constant 0 : i32
    %c0_i32_1 = arith.constant 0 : i32
    return %arg1, %c0_i32, %c0_i32_0 : i32, i32, i32
  }
  func.func @transform_8(%arg0: i32, %arg1: i32) -> (i32, i32, i32) {
    %c0_i32 = arith.constant 0 : i32
    %c0_i32_0 = arith.constant 0 : i32
    %c0_i32_1 = arith.constant 0 : i32
    return %arg1, %c0_i32, %c0_i32_0 : i32, i32, i32
  }
  func.func @transform_9(%arg0: i32, %arg1: i32) -> (i32, i32, i32) {
    %c0_i32 = arith.constant 0 : i32
    %c0_i32_0 = arith.constant 0 : i32
    %c0_i32_1 = arith.constant 0 : i32
    return %arg1, %c0_i32, %c0_i32_0 : i32, i32, i32
  }
  func.func @transform_10(%arg0: i32, %arg1: i32) -> (i32, i32, i32) {
    %c0_i32 = arith.constant 0 : i32
    %c0_i32_0 = arith.constant 0 : i32
    %c0_i32_1 = arith.constant 0 : i32
    return %arg1, %c0_i32, %c0_i32_0 : i32, i32, i32
  }
  func.func @transform_11(%arg0: i32, %arg1: i32) -> (i32, i32, i32) {
    %c0_i32 = arith.constant 0 : i32
    %c0_i32_0 = arith.constant 0 : i32
    %c0_i32_1 = arith.constant 0 : i32
    return %arg1, %c0_i32, %c0_i32_0 : i32, i32, i32
  }
  func.func @transform_12(%arg0: i32, %arg1: i32) -> (i32, i32, i32) {
    %c0_i32 = arith.constant 0 : i32
    %c0_i32_0 = arith.constant 0 : i32
    %c0_i32_1 = arith.constant 0 : i32
    return %arg1, %c0_i32, %c0_i32_0 : i32, i32, i32
  }
  func.func @transform_13(%arg0: i32, %arg1: i32) -> (i32, i32) {
    %c0_i32 = arith.constant 0 : i32
    %c0_i32_0 = arith.constant 0 : i32
    return %arg0, %c0_i32 : i32, i32
  }
}

module attributes {stable_mosaic.version = 11 : i64} {
  func.func @layer_stack_kernel(%arg0: i32, %arg1: i32, %arg2: memref<32x128xf32, #tpu.memory_space<vmem>>, %arg3: memref<1x1x128xf32, #tpu.memory_space<vmem>>, %arg4: memref<1x1x128xf32, #tpu.memory_space<vmem>>, %arg5: memref<1x128x384xbf16, #tpu.memory_space<vmem>>, %arg6: memref<1x1x384xf32, #tpu.memory_space<vmem>>, %arg7: memref<1x128x128xbf16, #tpu.memory_space<vmem>>, %arg8: memref<1x1x128xf32, #tpu.memory_space<vmem>>, %arg9: memref<1x1x128xf32, #tpu.memory_space<vmem>>, %arg10: memref<1x1x128xf32, #tpu.memory_space<vmem>>, %arg11: memref<1x128x128xbf16, #tpu.memory_space<vmem>>, %arg12: memref<1x1x128xf32, #tpu.memory_space<vmem>>, %arg13: memref<1x128x128xbf16, #tpu.memory_space<vmem>>, %arg14: memref<1x1x128xf32, #tpu.memory_space<vmem>>, %arg15: memref<32x128xf32, #tpu.memory_space<vmem>>) attributes {dimension_semantics = [#tpu.dimension_semantics<parallel>, #tpu.dimension_semantics<arbitrary>], iteration_bounds = array<i64: 1, 2>, scalar_prefetch = 0 : i64, scratch_operands = 0 : i64, tpu.core_type = #tpu.core_type<tc>, window_params = [{transform_indices = @transform_0, window_bounds = array<i64: 32, 128>}, {transform_indices = @transform_1, window_bounds = array<i64: 1, 1, 128>}, {transform_indices = @transform_2, window_bounds = array<i64: 1, 1, 128>}, {transform_indices = @transform_3, window_bounds = array<i64: 1, 128, 384>}, {transform_indices = @transform_4, window_bounds = array<i64: 1, 1, 384>}, {transform_indices = @transform_5, window_bounds = array<i64: 1, 128, 128>}, {transform_indices = @transform_6, window_bounds = array<i64: 1, 1, 128>}, {transform_indices = @transform_7, window_bounds = array<i64: 1, 1, 128>}, {transform_indices = @transform_8, window_bounds = array<i64: 1, 1, 128>}, {transform_indices = @transform_9, window_bounds = array<i64: 1, 128, 128>}, {transform_indices = @transform_10, window_bounds = array<i64: 1, 1, 128>}, {transform_indices = @transform_11, window_bounds = array<i64: 1, 128, 128>}, {transform_indices = @transform_12, window_bounds = array<i64: 1, 1, 128>}, {transform_indices = @transform_13, window_bounds = array<i64: 32, 128>}]} {
    %c0_i32 = arith.constant 0 : i32
    %0 = arith.cmpi eq, %arg1, %c0_i32 : i32
    %1 = arith.extui %0 : i1 to i32
    %c0_i32_0 = arith.constant 0 : i32
    %2 = arith.cmpi ne, %1, %c0_i32_0 : i32
    scf.if %2 {
      %c0_63 = arith.constant 0 : index
      %c0_64 = arith.constant 0 : index
      %142 = vector.load %arg2[%c0_63, %c0_64] : memref<32x128xf32, #tpu.memory_space<vmem>>, vector<32x128xf32>
      %c0_65 = arith.constant 0 : index
      %c0_66 = arith.constant 0 : index
      %143 = vector.load %arg15[%c0_65, %c0_66] : memref<32x128xf32, #tpu.memory_space<vmem>>, vector<32x128xf32>
      tpu.vector_store %arg15[%c0_65, %c0_66], %142 {strides = array<i32>} : memref<32x128xf32, #tpu.memory_space<vmem>>, vector<32x128xf32>,
    } else {
    }
    %c0 = arith.constant 0 : index
    %c0_1 = arith.constant 0 : index
    %3 = vector.load %arg15[%c0, %c0_1] : memref<32x128xf32, #tpu.memory_space<vmem>>, vector<32x128xf32>
    %c0_2 = arith.constant 0 : index
    %c0_3 = arith.constant 0 : index
    %c0_4 = arith.constant 0 : index
    %4 = vector.load %arg3[%c0_2, %c0_3, %c0_4] : memref<1x1x128xf32, #tpu.memory_space<vmem>>, vector<1x1x128xf32>
    %5 = vector.shape_cast %4 : vector<1x1x128xf32> to vector<128xf32>
    %c0_5 = arith.constant 0 : index
    %c0_6 = arith.constant 0 : index
    %c0_7 = arith.constant 0 : index
    %6 = vector.load %arg4[%c0_5, %c0_6, %c0_7] : memref<1x1x128xf32, #tpu.memory_space<vmem>>, vector<1x1x128xf32>
    %7 = vector.shape_cast %6 : vector<1x1x128xf32> to vector<128xf32>
    %cst = arith.constant dense<0.000000e+00> : vector<32xf32>
    %8 = vector.multi_reduction <add>, %3, %cst [1] : vector<32x128xf32> to vector<32xf32>
    %9 = vector.shape_cast %8 : vector<32xf32> to vector<32x1xf32>
    %cst_8 = arith.constant 3.125000e-02 : f32
    %10 = vector.broadcast %cst_8 : f32 to vector<32x1xf32>
    %11 = arith.mulf %9, %10 : vector<32x1xf32>
    %12 = vector.broadcast %11 : vector<32x1xf32> to vector<32x128xf32>
    %13 = arith.subf %3, %12 : vector<32x128xf32>
    %14 = tpu.iota {dimensions = array<i32: 1>} : vector<32x128xi32>
    %c32_i32 = arith.constant 32 : i32
    %15 = vector.broadcast %c32_i32 : i32 to vector<32x128xi32>
    %16 = arith.cmpi slt, %14, %15 : vector<32x128xi32>
    %cst_9 = arith.constant 0.000000e+00 : f32
    %17 = vector.broadcast %cst_9 : f32 to vector<32x128xf32>
    %18 = arith.select %16, %13, %17 : vector<32x128xi1>, vector<32x128xf32>
    %19 = arith.mulf %18, %18 : vector<32x128xf32>
    %cst_10 = arith.constant dense<0.000000e+00> : vector<32xf32>
    %20 = vector.multi_reduction <add>, %19, %cst_10 [1] : vector<32x128xf32> to vector<32xf32>
    %21 = vector.shape_cast %20 : vector<32xf32> to vector<32x1xf32>
    %cst_11 = arith.constant 3.125000e-02 : f32
    %22 = vector.broadcast %cst_11 : f32 to vector<32x1xf32>
    %23 = arith.mulf %21, %22 : vector<32x1xf32>
    %cst_12 = arith.constant 9.99999974E-6 : f32
    %24 = vector.broadcast %cst_12 : f32 to vector<32x1xf32>
    %25 = arith.addf %23, %24 : vector<32x1xf32>
    %26 = math.rsqrt %25 : vector<32x1xf32>
    %27 = vector.broadcast %26 : vector<32x1xf32> to vector<32x128xf32>
    %28 = arith.mulf %13, %27 : vector<32x128xf32>
    %29 = vector.shape_cast %5 : vector<128xf32> to vector<1x128xf32>
    %30 = vector.broadcast %29 : vector<1x128xf32> to vector<32x128xf32>
    %31 = arith.mulf %28, %30 : vector<32x128xf32>
    %32 = vector.shape_cast %7 : vector<128xf32> to vector<1x128xf32>
    %33 = vector.broadcast %32 : vector<1x128xf32> to vector<32x128xf32>
    %34 = arith.addf %31, %33 : vector<32x128xf32>
    %35 = arith.truncf %34 : vector<32x128xf32> to vector<32x128xbf16>
    %c0_13 = arith.constant 0 : index
    %c0_14 = arith.constant 0 : index
    %c0_15 = arith.constant 0 : index
    %36 = vector.load %arg5[%c0_13, %c0_14, %c0_15] : memref<1x128x384xbf16, #tpu.memory_space<vmem>>, vector<1x128x384xbf16>
    %37 = vector.shape_cast %36 : vector<1x128x384xbf16> to vector<128x384xbf16>
    %cst_16 = arith.constant dense<0.000000e+00> : vector<32x384xf32>
    %38 = tpu.matmul %35, %37, %cst_16 {dimension_numbers = #tpu.dot_dimension_numbers<[1], [0], [0], [1], [0, 0, 1, 1], [], []>} : vector<32x128xbf16>, vector<128x384xbf16>, vector<32x384xf32> -> vector<32x384xf32>
    %c0_17 = arith.constant 0 : index
    %c0_18 = arith.constant 0 : index
    %c0_19 = arith.constant 0 : index
    %39 = vector.load %arg6[%c0_17, %c0_18, %c0_19] : memref<1x1x384xf32, #tpu.memory_space<vmem>>, vector<1x1x384xf32>
    %40 = vector.shape_cast %39 : vector<1x1x384xf32> to vector<384xf32>
    %41 = vector.shape_cast %40 : vector<384xf32> to vector<1x384xf32>
    %42 = vector.broadcast %41 : vector<1x384xf32> to vector<32x384xf32>
    %43 = arith.addf %38, %42 : vector<32x384xf32>
    %44 = vector.extract_strided_slice %43 {offsets = [0, 0], sizes = [32, 128], strides = [1, 1]} : vector<32x384xf32> to vector<32x128xf32>
    %45 = vector.shape_cast %44 : vector<32x128xf32> to vector<2x16x128xf32>
    %46 = arith.truncf %45 : vector<2x16x128xf32> to vector<2x16x128xbf16>
    %47 = vector.extract_strided_slice %43 {offsets = [0, 128], sizes = [32, 128], strides = [1, 1]} : vector<32x384xf32> to vector<32x128xf32>
    %48 = vector.shape_cast %47 : vector<32x128xf32> to vector<2x16x128xf32>
    %49 = arith.truncf %48 : vector<2x16x128xf32> to vector<2x16x128xbf16>
    %50 = vector.extract_strided_slice %43 {offsets = [0, 256], sizes = [32, 128], strides = [1, 1]} : vector<32x384xf32> to vector<32x128xf32>
    %51 = vector.shape_cast %50 : vector<32x128xf32> to vector<2x16x128xf32>
    %52 = arith.truncf %51 : vector<2x16x128xf32> to vector<2x16x128xbf16>
    "tpu.trace_start"() <{level = 10 : i32, message = "bqd,bkd->bqk"}> : () -> ()
    %cst_20 = arith.constant dense<0.000000e+00> : vector<2x16x16xf32>
    %53 = tpu.matmul %46, %49, %cst_20 {dimension_numbers = #tpu.dot_dimension_numbers<[2], [2], [1], [1], [0, 0, 0, 1, 1, 1], [0], [0]>} : vector<2x16x128xbf16>, vector<2x16x128xbf16>, vector<2x16x16xf32> -> vector<2x16x16xf32>
    "tpu.trace_stop"() : () -> ()
    %54 = tpu.iota {dimensions = array<i32: 0>} : vector<16x16xi32>
    %55 = tpu.iota {dimensions = array<i32: 1>} : vector<16x16xi32>
    %56 = arith.cmpi sle, %55, %54 : vector<16x16xi32>
    %c16_i32 = arith.constant 16 : i32
    %57 = vector.broadcast %c16_i32 : i32 to vector<16x16xi32>
    %58 = arith.cmpi slt, %55, %57 : vector<16x16xi32>
    %59 = arith.andi %56, %58 : vector<16x16xi1>
    %cst_21 = arith.constant 0.000000e+00 : f32
    %cst_22 = arith.constant -1.000000e+30 : f32
    %60 = vector.broadcast %cst_21 : f32 to vector<16x16xf32>
    %61 = vector.broadcast %cst_22 : f32 to vector<16x16xf32>
    %62 = arith.select %59, %60, %61 : vector<16x16xi1>, vector<16x16xf32>
    %63 = vector.shape_cast %62 : vector<16x16xf32> to vector<1x16x16xf32>
    %64 = vector.broadcast %63 : vector<1x16x16xf32> to vector<2x16x16xf32>
    %65 = arith.addf %53, %64 : vector<2x16x16xf32>
    %cst_23 = arith.constant dense<0xFF800000> : vector<2x16xf32>
    %66 = vector.multi_reduction <maximumf>, %65, %cst_23 [2] : vector<2x16x16xf32> to vector<2x16xf32>
    %67 = vector.shape_cast %66 : vector<2x16xf32> to vector<2x16x1xf32>
    %68 = vector.broadcast %67 : vector<2x16x1xf32> to vector<2x16x16xf32>
    %69 = arith.subf %65, %68 : vector<2x16x16xf32>
    %70 = math.exp %69 : vector<2x16x16xf32>
    %cst_24 = arith.constant dense<0.000000e+00> : vector<2x16xf32>
    %71 = vector.multi_reduction <add>, %70, %cst_24 [2] : vector<2x16x16xf32> to vector<2x16xf32>
    %72 = vector.shape_cast %71 : vector<2x16xf32> to vector<2x16x1xf32>
    %73 = tpu.reciprocal %72 {approx = true} : vector<2x16x1xf32> -> vector<2x16x1xf32>
    %74 = vector.broadcast %73 : vector<2x16x1xf32> to vector<2x16x16xf32>
    %75 = arith.mulf %70, %74 : vector<2x16x16xf32>
    %76 = arith.truncf %75 : vector<2x16x16xf32> to vector<2x16x16xbf16>
    "tpu.trace_start"() <{level = 10 : i32, message = "bqk,bkd->bqd"}> : () -> ()
    %cst_25 = arith.constant dense<0.000000e+00> : vector<2x16x128xf32>
    %77 = tpu.matmul %76, %52, %cst_25 {dimension_numbers = #tpu.dot_dimension_numbers<[2], [1], [1], [2], [0, 0, 0, 1, 1, 2], [0], [0]>} : vector<2x16x16xbf16>, vector<2x16x128xbf16>, vector<2x16x128xf32> -> vector<2x16x128xf32>
    "tpu.trace_stop"() : () -> ()
    %78 = vector.shape_cast %77 : vector<2x16x128xf32> to vector<32x128xf32>
    %79 = arith.truncf %78 : vector<32x128xf32> to vector<32x128xbf16>
    %c0_26 = arith.constant 0 : index
    %c0_27 = arith.constant 0 : index
    %c0_28 = arith.constant 0 : index
    %80 = vector.load %arg7[%c0_26, %c0_27, %c0_28] : memref<1x128x128xbf16, #tpu.memory_space<vmem>>, vector<1x128x128xbf16>
    %81 = vector.shape_cast %80 : vector<1x128x128xbf16> to vector<128x128xbf16>
    %cst_29 = arith.constant dense<0.000000e+00> : vector<32x128xf32>
    %82 = tpu.matmul %79, %81, %cst_29 {dimension_numbers = #tpu.dot_dimension_numbers<[1], [0], [0], [1], [0, 0, 1, 1], [], []>} : vector<32x128xbf16>, vector<128x128xbf16>, vector<32x128xf32> -> vector<32x128xf32>
    %c0_30 = arith.constant 0 : index
    %c0_31 = arith.constant 0 : index
    %c0_32 = arith.constant 0 : index
    %83 = vector.load %arg8[%c0_30, %c0_31, %c0_32] : memref<1x1x128xf32, #tpu.memory_space<vmem>>, vector<1x1x128xf32>
    %84 = vector.shape_cast %83 : vector<1x1x128xf32> to vector<128xf32>
    %85 = vector.shape_cast %84 : vector<128xf32> to vector<1x128xf32>
    %86 = vector.broadcast %85 : vector<1x128xf32> to vector<32x128xf32>
    %87 = arith.addf %82, %86 : vector<32x128xf32>
    %88 = arith.addf %3, %87 : vector<32x128xf32>
    %c0_33 = arith.constant 0 : index
    %c0_34 = arith.constant 0 : index
    %c0_35 = arith.constant 0 : index
    %89 = vector.load %arg9[%c0_33, %c0_34, %c0_35] : memref<1x1x128xf32, #tpu.memory_space<vmem>>, vector<1x1x128xf32>
    %90 = vector.shape_cast %89 : vector<1x1x128xf32> to vector<128xf32>
    %c0_36 = arith.constant 0 : index
    %c0_37 = arith.constant 0 : index
    %c0_38 = arith.constant 0 : index
    %91 = vector.load %arg10[%c0_36, %c0_37, %c0_38] : memref<1x1x128xf32, #tpu.memory_space<vmem>>, vector<1x1x128xf32>
    %92 = vector.shape_cast %91 : vector<1x1x128xf32> to vector<128xf32>
    %cst_39 = arith.constant dense<0.000000e+00> : vector<32xf32>
    %93 = vector.multi_reduction <add>, %88, %cst_39 [1] : vector<32x128xf32> to vector<32xf32>
    %94 = vector.shape_cast %93 : vector<32xf32> to vector<32x1xf32>
    %cst_40 = arith.constant 3.125000e-02 : f32
    %95 = vector.broadcast %cst_40 : f32 to vector<32x1xf32>
    %96 = arith.mulf %94, %95 : vector<32x1xf32>
    %97 = vector.broadcast %96 : vector<32x1xf32> to vector<32x128xf32>
    %98 = arith.subf %88, %97 : vector<32x128xf32>
    %99 = tpu.iota {dimensions = array<i32: 1>} : vector<32x128xi32>
    %c32_i32_41 = arith.constant 32 : i32
    %100 = vector.broadcast %c32_i32_41 : i32 to vector<32x128xi32>
    %101 = arith.cmpi slt, %99, %100 : vector<32x128xi32>
    %cst_42 = arith.constant 0.000000e+00 : f32
    %102 = vector.broadcast %cst_42 : f32 to vector<32x128xf32>
    %103 = arith.select %101, %98, %102 : vector<32x128xi1>, vector<32x128xf32>
    %104 = arith.mulf %103, %103 : vector<32x128xf32>
    %cst_43 = arith.constant dense<0.000000e+00> : vector<32xf32>
    %105 = vector.multi_reduction <add>, %104, %cst_43 [1] : vector<32x128xf32> to vector<32xf32>
    %106 = vector.shape_cast %105 : vector<32xf32> to vector<32x1xf32>
    %cst_44 = arith.constant 3.125000e-02 : f32
    %107 = vector.broadcast %cst_44 : f32 to vector<32x1xf32>
    %108 = arith.mulf %106, %107 : vector<32x1xf32>
    %cst_45 = arith.constant 9.99999974E-6 : f32
    %109 = vector.broadcast %cst_45 : f32 to vector<32x1xf32>
    %110 = arith.addf %108, %109 : vector<32x1xf32>
    %111 = math.rsqrt %110 : vector<32x1xf32>
    %112 = vector.broadcast %111 : vector<32x1xf32> to vector<32x128xf32>
    %113 = arith.mulf %98, %112 : vector<32x128xf32>
    %114 = vector.shape_cast %90 : vector<128xf32> to vector<1x128xf32>
    %115 = vector.broadcast %114 : vector<1x128xf32> to vector<32x128xf32>
    %116 = arith.mulf %113, %115 : vector<32x128xf32>
    %117 = vector.shape_cast %92 : vector<128xf32> to vector<1x128xf32>
    %118 = vector.broadcast %117 : vector<1x128xf32> to vector<32x128xf32>
    %119 = arith.addf %116, %118 : vector<32x128xf32>
    %120 = arith.truncf %119 : vector<32x128xf32> to vector<32x128xbf16>
    %c0_46 = arith.constant 0 : index
    %c0_47 = arith.constant 0 : index
    %c0_48 = arith.constant 0 : index
    %121 = vector.load %arg11[%c0_46, %c0_47, %c0_48] : memref<1x128x128xbf16, #tpu.memory_space<vmem>>, vector<1x128x128xbf16>
    %122 = vector.shape_cast %121 : vector<1x128x128xbf16> to vector<128x128xbf16>
    %cst_49 = arith.constant dense<0.000000e+00> : vector<32x128xf32>
    %123 = tpu.matmul %120, %122, %cst_49 {dimension_numbers = #tpu.dot_dimension_numbers<[1], [0], [0], [1], [0, 0, 1, 1], [], []>} : vector<32x128xbf16>, vector<128x128xbf16>, vector<32x128xf32> -> vector<32x128xf32>
    %c0_50 = arith.constant 0 : index
    %c0_51 = arith.constant 0 : index
    %c0_52 = arith.constant 0 : index
    %124 = vector.load %arg12[%c0_50, %c0_51, %c0_52] : memref<1x1x128xf32, #tpu.memory_space<vmem>>, vector<1x1x128xf32>
    %125 = vector.shape_cast %124 : vector<1x1x128xf32> to vector<128xf32>
    %126 = vector.shape_cast %125 : vector<128xf32> to vector<1x128xf32>
    %127 = vector.broadcast %126 : vector<1x128xf32> to vector<32x128xf32>
    %128 = arith.addf %123, %127 : vector<32x128xf32>
    %cst_53 = arith.constant 0.000000e+00 : f32
    %129 = vector.broadcast %cst_53 : f32 to vector<32x128xf32>
    %130 = arith.maximumf %128, %129 : vector<32x128xf32>
    %131 = arith.truncf %130 : vector<32x128xf32> to vector<32x128xbf16>
    %c0_54 = arith.constant 0 : index
    %c0_55 = arith.constant 0 : index
    %c0_56 = arith.constant 0 : index
    %132 = vector.load %arg13[%c0_54, %c0_55, %c0_56] : memref<1x128x128xbf16, #tpu.memory_space<vmem>>, vector<1x128x128xbf16>
    %133 = vector.shape_cast %132 : vector<1x128x128xbf16> to vector<128x128xbf16>
    %cst_57 = arith.constant dense<0.000000e+00> : vector<32x128xf32>
    %134 = tpu.matmul %131, %133, %cst_57 {dimension_numbers = #tpu.dot_dimension_numbers<[1], [0], [0], [1], [0, 0, 1, 1], [], []>} : vector<32x128xbf16>, vector<128x128xbf16>, vector<32x128xf32> -> vector<32x128xf32>
    %c0_58 = arith.constant 0 : index
    %c0_59 = arith.constant 0 : index
    %c0_60 = arith.constant 0 : index
    %135 = vector.load %arg14[%c0_58, %c0_59, %c0_60] : memref<1x1x128xf32, #tpu.memory_space<vmem>>, vector<1x1x128xf32>
    %136 = vector.shape_cast %135 : vector<1x1x128xf32> to vector<128xf32>
    %137 = vector.shape_cast %136 : vector<128xf32> to vector<1x128xf32>
    %138 = vector.broadcast %137 : vector<1x128xf32> to vector<32x128xf32>
    %139 = arith.addf %134, %138 : vector<32x128xf32>
    %140 = arith.addf %88, %139 : vector<32x128xf32>
    %c0_61 = arith.constant 0 : index
    %c0_62 = arith.constant 0 : index
    %141 = vector.load %arg15[%c0_61, %c0_62] : memref<32x128xf32, #tpu.memory_space<vmem>>, vector<32x128xf32>
    tpu.vector_store %arg15[%c0_61, %c0_62], %140 {strides = array<i32>} : memref<32x128xf32, #tpu.memory_space<vmem>>, vector<32x128xf32>,
    return
  }
  func.func @transform_0(%arg0: i32, %arg1: i32) -> (i32, i32) {
    %c0_i32 = arith.constant 0 : i32
    %c0_i32_0 = arith.constant 0 : i32
    return %arg0, %c0_i32 : i32, i32
  }
  func.func @transform_1(%arg0: i32, %arg1: i32) -> (i32, i32, i32) {
    %c0_i32 = arith.constant 0 : i32
    %c0_i32_0 = arith.constant 0 : i32
    %c0_i32_1 = arith.constant 0 : i32
    return %arg1, %c0_i32, %c0_i32_0 : i32, i32, i32
  }
  func.func @transform_2(%arg0: i32, %arg1: i32) -> (i32, i32, i32) {
    %c0_i32 = arith.constant 0 : i32
    %c0_i32_0 = arith.constant 0 : i32
    %c0_i32_1 = arith.constant 0 : i32
    return %arg1, %c0_i32, %c0_i32_0 : i32, i32, i32
  }
  func.func @transform_3(%arg0: i32, %arg1: i32) -> (i32, i32, i32) {
    %c0_i32 = arith.constant 0 : i32
    %c0_i32_0 = arith.constant 0 : i32
    %c0_i32_1 = arith.constant 0 : i32
    return %arg1, %c0_i32, %c0_i32_0 : i32, i32, i32
  }
  func.func @transform_4(%arg0: i32, %arg1: i32) -> (i32, i32, i32) {
    %c0_i32 = arith.constant 0 : i32
    %c0_i32_0 = arith.constant 0 : i32
    %c0_i32_1 = arith.constant 0 : i32
    return %arg1, %c0_i32, %c0_i32_0 : i32, i32, i32
  }
  func.func @transform_5(%arg0: i32, %arg1: i32) -> (i32, i32, i32) {
    %c0_i32 = arith.constant 0 : i32
    %c0_i32_0 = arith.constant 0 : i32
    %c0_i32_1 = arith.constant 0 : i32
    return %arg1, %c0_i32, %c0_i32_0 : i32, i32, i32
  }
  func.func @transform_6(%arg0: i32, %arg1: i32) -> (i32, i32, i32) {
    %c0_i32 = arith.constant 0 : i32
    %c0_i32_0 = arith.constant 0 : i32
    %c0_i32_1 = arith.constant 0 : i32
    return %arg1, %c0_i32, %c0_i32_0 : i32, i32, i32
  }
  func.func @transform_7(%arg0: i32, %arg1: i32) -> (i32, i32, i32) {
    %c0_i32 = arith.constant 0 : i32
    %c0_i32_0 = arith.constant 0 : i32
    %c0_i32_1 = arith.constant 0 : i32
    return %arg1, %c0_i32, %c0_i32_0 : i32, i32, i32
  }
  func.func @transform_8(%arg0: i32, %arg1: i32) -> (i32, i32, i32) {
    %c0_i32 = arith.constant 0 : i32
    %c0_i32_0 = arith.constant 0 : i32
    %c0_i32_1 = arith.constant 0 : i32
    return %arg1, %c0_i32, %c0_i32_0 : i32, i32, i32
  }
  func.func @transform_9(%arg0: i32, %arg1: i32) -> (i32, i32, i32) {
    %c0_i32 = arith.constant 0 : i32
    %c0_i32_0 = arith.constant 0 : i32
    %c0_i32_1 = arith.constant 0 : i32
    return %arg1, %c0_i32, %c0_i32_0 : i32, i32, i32
  }
  func.func @transform_10(%arg0: i32, %arg1: i32) -> (i32, i32, i32) {
    %c0_i32 = arith.constant 0 : i32
    %c0_i32_0 = arith.constant 0 : i32
    %c0_i32_1 = arith.constant 0 : i32
    return %arg1, %c0_i32, %c0_i32_0 : i32, i32, i32
  }
  func.func @transform_11(%arg0: i32, %arg1: i32) -> (i32, i32, i32) {
    %c0_i32 = arith.constant 0 : i32
    %c0_i32_0 = arith.constant 0 : i32
    %c0_i32_1 = arith.constant 0 : i32
    return %arg1, %c0_i32, %c0_i32_0 : i32, i32, i32
  }
  func.func @transform_12(%arg0: i32, %arg1: i32) -> (i32, i32, i32) {
    %c0_i32 = arith.constant 0 : i32
    %c0_i32_0 = arith.constant 0 : i32
    %c0_i32_1 = arith.constant 0 : i32
    return %arg1, %c0_i32, %c0_i32_0 : i32, i32, i32
  }
  func.func @transform_13(%arg0: i32, %arg1: i32) -> (i32, i32) {
    %c0_i32 = arith.constant 0 : i32
    %c0_i32_0 = arith.constant 0 : i32
    return %arg0, %c0_i32 : i32, i32
  }
}

</mosaic_0001>

<bundles_post_ra>
// kernel: tpu_custom_call.1
= control target key start
LH: loop header
LB: loop body
LE: loop exit
PB: predicated region body
PF: predicated region fallthrough
CT: control target
= control target key end

     0   :  { %s3300_s0 = inlined_call_operand.hbm [shape: f32[32,128], index: 0, kind: input, shape index: {}]   ;;  %s3301_s1 = inlined_call_operand.vmem [shape: f32[2,1,128], index: 1, kind: input, shape index: {}]   ;;  %s3302_s2 = inlined_call_operand.vmem [shape: f32[2,1,128], index: 2, kind: input, shape index: {}]   ;;  %s3303_s3 = inlined_call_operand.hbm [shape: bf16[2,128,384], index: 3, kind: input, shape index: {}]   ;;  %s3304_s4 = inlined_call_operand.vmem [shape: f32[2,1,384], index: 4, kind: input, shape index: {}]   ;;  %s3305_s5 = inlined_call_operand.hbm [shape: bf16[2,128,128], index: 5, kind: input, shape index: {}]   ;;  %s3306_s6 = inlined_call_operand.vmem [shape: f32[2,1,128], index: 6, kind: input, shape index: {}]   ;;  %s3307_s7 = inlined_call_operand.vmem [shape: f32[2,1,128], index: 7, kind: input, shape index: {}]   ;;  %s3308_s8 = inlined_call_operand.vmem [shape: f32[2,1,128], index: 8, kind: input, shape index: {}]   ;;  %s3309_s9 = inlined_call_operand.hbm [shape: bf16[2,128,128], index: 9, kind: input, shape index: {}]   ;;  %s3310_s10 = inlined_call_operand.vmem [shape: f32[2,1,128], index: 10, kind: input, shape index: {}]   ;;  %s3311_s11 = inlined_call_operand.hbm [shape: bf16[2,128,128], index: 11, kind: input, shape index: {}]   ;;  %s3312_s12 = inlined_call_operand.vmem [shape: f32[2,1,128], index: 12, kind: input, shape index: {}]   ;;  %s3313_s13 = inlined_call_operand.hbm [shape: f32[32,128], index: 13, kind: output, shape index: {}]  }
   0x1   :  { %3333 = sst [smem:[#allocation23_spill]] %s3300_s0 }
   0x2   :  { %3334 = sst [smem:[#allocation24_spill]] %s3303_s3 }
   0x3   :  { %3335 = sst [smem:[#allocation25_spill]] %s3304_s4 }
   0x4   :  { %3336 = sst [smem:[#allocation26_spill]] %s3305_s5 }
   0x5   :  { %3337 = sst [smem:[#allocation27_spill]] %s3307_s7 }
   0x6   :  { %3338 = sst [smem:[#allocation28_spill]] %s3308_s8 }
   0x7   :  { %3339 = sst [smem:[#allocation29_spill]] %s3309_s9 }
   0x8   :  { %3340 = sst [smem:[#allocation30_spill]] %s3310_s10 }
   0x9   :  { %3341 = sst [smem:[#allocation31_spill]] %s3311_s11 }
   0xa   :  { %3342 = sst [smem:[#allocation32_spill]] %s3312_s12 }
   0xb   :  { %3343 = sst [smem:[#allocation33_spill]] %s3313_s13 }
   0xc   :  { %18 = vsyncpa [#allocation3], 0 }
   0xd   :  { %19 = vsyncpa [#allocation6], 0 }
   0xe   :  { %21 = vsyncpa [#allocation6 + $0x1], 0 }
   0xf   :  { %22 = vsyncpa [#allocation9], 0 }
  0x10   :  { %24 = vsyncpa [#allocation9 + $0x1], 0 }
  0x11   :  { %25 = vsyncpa [#allocation4], 0  ;;  %s2753_s25 = smov 0   ;;  %s2755_s26 = smov 0  }
  0x12   :  { %s2757_s27 = smov 0   ;;  %s2759_s28 = smov 0  }
  0x13   :  { %s2761_s29 = smov 0   ;;  %s2763_s30 = smov 0  }
  0x14 LB: > { %3344 = sst [smem:[#allocation16_spill]] %s2647_s26  ;;  %s40_s14 = sadd.s32 1, %s2659_s29  ;;  %s2663_s30 = sphi %s2763_s30, %s31_s30   ;;  %s2659_s29 = sphi %s2761_s29, %s3390_s29   ;;  %s2655_s28 = sphi %s2759_s28, %s3389_s28   ;;  %s2651_s27 = sphi %s2757_s27, %s3388_s27   ;;  %s2647_s26 = sphi %s2755_s26, %s3387_s26   ;;  %s2643_s25 = sphi %s2753_s25, %s3386_s25  }
  0x15   : > { %3345 = sst [smem:[#allocation17_spill]] %s2651_s27  ;;  %s128_s15 = sadd.s32 1, %s2651_s27 }
  0x16   : > { %3346 = sst [smem:[#allocation18_spill]] %s2659_s29  ;;  %p41_p0 = scmp.ge.s32.totalorder %s40_s14, 2 }
  0x17   : > { %3347 = sst [smem:[#allocation19_spill]] %s2663_s30  ;;  %p135_p1 = scmp.ne.s32.totalorder %s2651_s27, %s2647_s26 }
  0x18   : > { %p136_p2 = scmp.eq.s32.totalorder %s2663_s30, 0  ;;  %s3392_s14 = smov (%p41_p0, %s40_s14), 0 }
  0x19   : > { %3348 = sst [smem:[#allocation20_spill]] %s3392_s14  ;;  %p2273_p4 = scmp.lt.s32.totalorder %s2663_s30, 2 }
  0x1a   : > { %p137_p3 = por %p136_p2, %p135_p1  ;;  %s125_s16 = ssub.s32 %s2659_s29, %s3392_s14 }
  0x1b   : > { %p126_p5 = scmp.eq.s32.totalorder %s125_s16, 0  ;;  %s455_s18 = sand.u32 1, %s2651_s27  }
  0x1c   : > { %s2236_s19 = smul.u32 3072, %s2659_s29  ;;  %s3350_s3 = sld [smem:[#allocation24_spill]] }
  0x1d   : > { %s2797_s20 = scalar_select %p126_p5, %s2651_s27, %s128_s15  }
  0x1e   : > { %s2235_s21 = smul.u32 192, %s455_s18  ;;  %p2804_p6 = pnand %p2273_p4, %p137_p3 }
  0x1f   : > { %3349 = sst [smem:[#allocation21_spill]] %s2797_s20  ;;  %s2810_s15 = sshll.u32 %s455_s18, 6 }
  0x20   : > { %s3351_s13 = scalar_select %p2804_p6, 1, 0 }
  0x21   : > { %s457_s16 = scalar_lea.vmem [#allocation5], %s2235_s21  ;;  %s3352_s14 = sand.u32 1, %s2663_s30  }
  0x22   : > { %s2802_s24 = scalar_lea.hbm %s3350_s3, %s2236_s19  ;;  %s464_s17 = sshll.u32 %s457_s16, 4  ;;  %s2808_s17 = int_to_ptr.vmem [resolvable:$true] %s464_s17 }
  0x23   : > { %s2814_s20 = scalar_lea.sflag [#allocation6], %s3352_s14  ;;  %s2427_s19 = scalar_lea.hbm %s2802_s24, 3072 }
  0x24   : > { %p2428_p7 = scmp.ne.s32.totalorder %s2802_s24, %s2427_s19  ;;  %p2820_p8 = pneg %p2804_p6 }
  0x25   : > { %s2432_s16 = scalar_lea.hbm %s3350_s3, 6144  ;;  %p2433_p11 = scmp.lt.u32.totalorder %s2802_s24, %s3350_s3 }
  0x26   : > { %s3353_s22 = scalar_select %p2820_p8, 1, 0 }
  0x27   : > { %p2430_p9 = pnand %p2820_p8, %p2428_p7  ;;  %p2434_p12 = scmp.lt.u32.totalorder %s2432_s16, %s2427_s19 }
  0x28   : > { %p2436_p0 = scmp.lt.u32.totalorder %s2427_s19, %s2802_s24 }
  0x29   : > { %p2431_p10 = pneg %p2430_p9  ;;  %p2435_p13 = por %p2434_p12, %p2433_p11 }
  0x2b   : > { %p2437_p1 = por %p2436_p0, %p2435_p13 }
  0x2d   : > { %p2438_p2 = pnand %p2437_p1, %p2431_p10 }
  0x2f   : > { %2441 = shalt.err (!%p2438_p2)
}
  0x30   : > { %s2442_s14 = scalar_lea.vmem %s2808_s17, 3072  ;;  %s2665_s21 = smov [#allocation5]  }
  0x31   : > { %p2443_p3 = scmp.ne.s32.totalorder %s2808_s17, %s2442_s14  ;;  %s2447_s23 = sshll.u32 %s2665_s21, 4  ;;  %s2448_s23 = int_to_ptr.vmem [resolvable:$false] %s2447_s23 }
  0x32   : > { %s2449_s27 = scalar_lea.vmem %s2448_s23, 6144  ;;  %p2450_p7 = scmp.lt.s32.totalorder %s2808_s17, %s2448_s23 }
  0x33   : > { %p2445_p4 = pnand %p2443_p3, %p2820_p8  ;;  %p2451_p9 = scmp.lt.s32.totalorder %s2449_s27, %s2442_s14 }
  0x35   : > { %p2446_p5 = pneg %p2445_p4  ;;  %p2452_p11 = por %p2451_p9, %p2450_p7 }
  0x37   : > { %p2453_p12 = pnand %p2452_p11, %p2446_p5 }
  0x39   : > { %2456 = shalt.err (!%p2453_p12)
}
  0x3a   : > { %s2666_s19 = smov 192   ;;  %s2667_s16 = smov 12  }
  0x3b   : > { %2262 = dma.hbm_to_vmem [thread:$0]  (!%p2804_p6), %s2802_s24, 3072, %s2808_s17, %s2814_s20, %s2666_s19, %s2666_s19, %s2667_s16  }
  0x3c   : > { %s2845_s18 = sshll.u32 %s2659_s29, 10  ;;  %s3354_s9 = sld [smem:[#allocation29_spill]] }
  0x3d   : > { %s524_s27 = scalar_lea.vmem [#allocation8], %s2810_s15  ;;  %s3355_s12 = sand.u32 1, %s2663_s30  }
  0x3e   : > { %s531_s3 = sshll.u32 %s524_s27, 4  ;;  %s2858_s10 = scalar_lea.sflag [#allocation9], %s3355_s12  ;;  %s2854_s3 = int_to_ptr.vmem [resolvable:$true] %s531_s3 }
  0x42   : > { %s2851_s23 = scalar_lea.hbm %s3354_s9, %s2845_s18  ;;  %s2462_s16 = scalar_lea.hbm %s3354_s9, 2048 }
  0x43   : > { %s2457_s17 = scalar_lea.hbm %s2851_s23, 1024  ;;  %p2463_p1 = scmp.lt.u32.totalorder %s2851_s23, %s3354_s9 }
  0x44   : > { %p2458_p10 = scmp.ne.s32.totalorder %s2851_s23, %s2457_s17  ;;  %p2464_p2 = scmp.lt.u32.totalorder %s2462_s16, %s2457_s17 }
  0x45   : > { %p2466_p4 = scmp.lt.u32.totalorder %s2457_s17, %s2851_s23 }
  0x46   : > { %p2460_p13 = pnand %p2458_p10, %p2820_p8  ;;  %p2465_p3 = por %p2464_p2, %p2463_p1 }
  0x48   : > { %p2461_p0 = pneg %p2460_p13  ;;  %p2467_p5 = por %p2466_p4, %p2465_p3 }
  0x4a   : > { %p2468_p7 = pnand %p2467_p5, %p2461_p0 }
  0x4c   : > { %2471 = shalt.err (!%p2468_p7)
}
  0x4d   : > { %s2472_s12 = scalar_lea.vmem %s2854_s3, 1024  ;;  %s2668_s27 = smov [#allocation8]  }
  0x4e   : > { %p2473_p9 = scmp.ne.s32.totalorder %s2854_s3, %s2472_s12  ;;  %s2477_s24 = sshll.u32 %s2668_s27, 4  ;;  %s2478_s24 = int_to_ptr.vmem [resolvable:$false] %s2477_s24 }
  0x4f   : > { %s2479_s19 = scalar_lea.vmem %s2478_s24, 2048  ;;  %p2480_p10 = scmp.lt.s32.totalorder %s2854_s3, %s2478_s24 }
  0x50   : > { %p2475_p11 = pnand %p2473_p9, %p2820_p8  ;;  %p2481_p13 = scmp.lt.s32.totalorder %s2479_s19, %s2472_s12 }
  0x52   : > { %p2476_p12 = pneg %p2475_p11  ;;  %p2482_p1 = por %p2481_p13, %p2480_p10 }
  0x54   : > { %p2483_p2 = pnand %p2482_p1, %p2476_p12 }
  0x56   : > { %2486 = shalt.err (!%p2483_p2)
}
  0x57   : > { %s3317_s17 = smov 64   ;;  %s3319_s16 = smov 4  }
  0x58   : > { %2268 = dma.hbm_to_vmem [thread:$0]  (!%p2804_p6), %s2851_s23, 1024, %s2854_s3, %s2858_s10, %s3317_s17, %s3317_s17, %s3319_s16  }
  0x59   : > { %s2886_s21 = sadd.s32 4294967295, %s2663_s30   ;;  %p141_p0 = scmp.ne.s32.totalorder %s2647_s26, %s2643_s25 }
  0x5a   : > { %3356 = sst [smem:[#allocation22_spill]] %s2886_s21  ;;  %p3323_p3 = scmp.eq.s32.totalorder %s2886_s21, 0 }
  0x5b   : > { %p2000_p4 = scmp.ge.s32.totalorder %s2663_s30, 1  ;;  %p412_p5 = scmp.lt.s32.totalorder %s2663_s30, 3 }
  0x5c   : > { %p2895_p7 = por %p3323_p3, %p141_p0  ;;  %s2671_s3 = smov [#allocation2]  }
  0x5d   : > { %p2899_p9 = pnand %p2000_p4, %p412_p5  ;;  %s427_s23 = sshll.u32 %s2671_s3, 4  ;;  %s2903_s23 = int_to_ptr.vmem [resolvable:$true] %s427_s23 }
  0x5e   : > { %s3357_s14 = scalar_select %p2895_p7, 1, 0 }
  0x5f   : > { %s3358_s12 = scalar_select %p2899_p9, 1, 0 }
  0x60   : > { %p2255_p11 = pneg %p2899_p9  ;;  %s3359_s5 = sld [smem:[#allocation26_spill]] }
  0x61   : > { %s485_s17 = scalar_lea.vmem [#allocation7], %s2810_s15  ;;  %s3361_s11 = sld [smem:[#allocation31_spill]] }
  0x62   : > { %p2915_p12 = pnand %p2255_p11, %p3323_p3  ;;  %s492_s16 = sshll.u32 %s485_s17, 4  ;;  %s2920_s16 = int_to_ptr.vmem [resolvable:$true] %s492_s16 }
  0x63   : > { %s3362_s0 = sld [smem:[#allocation23_spill]] }
  0x64   : > { %p2489_p13 = pneg %p2915_p12 }
  0x66   : > { %s2911_s24 = scalar_lea.hbm %s3359_s5, %s2845_s18 }
  0x67   : > { %s2926_s29 = scalar_lea.hbm %s3361_s11, %s2845_s18 }
  0x69   : > { %s2487_s25 = scalar_lea.hbm %s3362_s0, 512 }
  0x6a   : > { %p2488_p10 = scmp.ne.s32.totalorder %s3362_s0, %s2487_s25  ;;  %p2494_p0 = scmp.lt.u32.totalorder %s2487_s25, %s3362_s0 }
  0x6c   : > { %p2490_p1 = pnand %p2489_p13, %p2488_p10 }
  0x6e   : > { %p2491_p2 = pneg %p2490_p1 }
  0x70   : > { %p2496_p4 = pnand %p2494_p0, %p2491_p2 }
  0x72   : > { %2499 = shalt.err (!%p2496_p4)
}
  0x73   : > { %s2500_s9 = scalar_lea.vmem %s2903_s23, 512  ;;  %p2508_p7 = scmp.lt.s32.totalorder %s2903_s23, %s2903_s23 }
  0x74   : > { %p2501_p5 = scmp.ne.s32.totalorder %s2903_s23, %s2500_s9  ;;  %p2509_p9 = scmp.lt.s32.totalorder %s2500_s9, %s2500_s9 }
  0x76   : > { %p2503_p11 = pnand %p2501_p5, %p2489_p13  ;;  %p2510_p6 = por %p2509_p9, %p2508_p7 }
  0x78   : > { %p2504_p3 = pneg %p2503_p11 }
  0x7a   : > { %p2511_p8 = pnand %p2510_p6, %p2504_p3 }
  0x7c   : > { %2514 = shalt.err (!%p2511_p8)
}
  0x7d   : > { %s2672_s4 = smov 128   ;;  %s2673_s7 = smov 8  }
  0x7e   : > { %2258 = dma.hbm_to_vmem [thread:$0]  (!%p2915_p12), %s3362_s0, 512, %s2903_s23, [#allocation3], %s2672_s4, %s2672_s4, %s2673_s7  }
  0x7f   : > { %s2515_s18 = scalar_lea.hbm %s2911_s24, 1024  ;;  %p3363_p13 = scmp.ne.s32.totalorder %s3353_s22, 0 }
  0x80   : > { %p2516_p10 = scmp.ne.s32.totalorder %s2911_s24, %s2515_s18  ;;  %s2520_s27 = scalar_lea.hbm %s3359_s5, 2048 }
  0x81   : > { %p2521_p8 = scmp.lt.u32.totalorder %s2911_s24, %s3359_s5  ;;  %p2522_p3 = scmp.lt.u32.totalorder %s2520_s27, %s2515_s18 }
  0x82   : > { %p2518_p7 = pnand %p2516_p10, %p3363_p13  ;;  %p2524_p1 = scmp.lt.u32.totalorder %s2515_s18, %s2911_s24 }
  0x83   : > { %p2523_p9 = por %p2522_p3, %p2521_p8 }
  0x84   : > { %p2519_p6 = pneg %p2518_p7 }
  0x85   : > { %p2525_p2 = por %p2524_p1, %p2523_p9 }
  0x87   : > { %p2526_p0 = pnand %p2525_p2, %p2519_p6 }
  0x89   : > { %2529 = shalt.err (!%p2526_p0)
}
  0x8a   : > { %s2530_s23 = scalar_lea.vmem %s2920_s16, 1024  ;;  %s2674_s19 = smov [#allocation7]  }
  0x8b   : > { %p2531_p12 = scmp.ne.s32.totalorder %s2920_s16, %s2530_s23  ;;  %s2535_s4 = sshll.u32 %s2674_s19, 4  ;;  %s2536_s4 = int_to_ptr.vmem [resolvable:$false] %s2535_s4 }
  0x8c   : > { %s2537_s7 = scalar_lea.vmem %s2536_s4, 2048  ;;  %p2538_p11 = scmp.lt.s32.totalorder %s2920_s16, %s2536_s4 }
  0x8d   : > { %p2533_p4 = pnand %p2531_p12, %p3363_p13  ;;  %p2539_p10 = scmp.lt.s32.totalorder %s2537_s7, %s2530_s23 }
  0x8f   : > { %p2534_p5 = pneg %p2533_p4  ;;  %p2540_p7 = por %p2539_p10, %p2538_p11 }
  0x91   : > { %p2541_p8 = pnand %p2540_p7, %p2534_p5 }
  0x93   : > { %2544 = shalt.err (!%p2541_p8)
}
  0x94   : > { %p3364_p6 = scmp.ne.s32.totalorder %s3351_s13, 0  ;;  %s3365_s8 = smov 4  }
  0x95   : > { %s3366_s30 = smov 64   ;;  %s551_s18 = scalar_lea.vmem [#allocation10], %s2810_s15 }
  0x96   : > { %2265 = dma.hbm_to_vmem [thread:$0]  (!%p3364_p6), %s2911_s24, 1024, %s2920_s16, %s2814_s20, %s3366_s30, %s3366_s30, %s3365_s8  }
  0x97   : > { %s558_s3 = sshll.u32 %s551_s18, 4  ;;  %s2545_s25 = scalar_lea.hbm %s2926_s29, 1024  ;;  %s2975_s3 = int_to_ptr.vmem [resolvable:$true] %s558_s3 }
  0x98   : > { %p2546_p3 = scmp.ne.s32.totalorder %s2926_s29, %s2545_s25  ;;  %s2550_s9 = scalar_lea.hbm %s3361_s11, 2048 }
  0x99   : > { %p2551_p2 = scmp.lt.u32.totalorder %s2926_s29, %s3361_s11  ;;  %p2552_p0 = scmp.lt.u32.totalorder %s2550_s9, %s2545_s25 }
  0x9a   : > { %p2548_p9 = pnand %p2546_p3, %p3363_p13  ;;  %p2554_p4 = scmp.lt.u32.totalorder %s2545_s25, %s2926_s29 }
  0x9b   : > { %p2553_p12 = por %p2552_p0, %p2551_p2 }
  0x9c   : > { %p2549_p1 = pneg %p2548_p9 }
  0x9d   : > { %p2555_p5 = por %p2554_p4, %p2553_p12 }
  0x9f   : > { %p2556_p11 = pnand %p2555_p5, %p2549_p1 }
  0xa1   : > { %2559 = shalt.err (!%p2556_p11)
}
  0xa2   : > { %s2560_s20 = scalar_lea.vmem %s2975_s3, 1024  ;;  %s2675_s15 = smov [#allocation10]  }
  0xa3   : > { %p2561_p10 = scmp.ne.s32.totalorder %s2975_s3, %s2560_s20  ;;  %s2565_s16 = sshll.u32 %s2675_s15, 4  ;;  %s2566_s16 = int_to_ptr.vmem [resolvable:$false] %s2565_s16 }
  0xa4   : > { %s2567_s24 = scalar_lea.vmem %s2566_s16, 2048  ;;  %p2568_p3 = scmp.lt.s32.totalorder %s2975_s3, %s2566_s16 }
  0xa5   : > { %p2563_p7 = pnand %p2561_p10, %p3363_p13  ;;  %p2569_p9 = scmp.lt.s32.totalorder %s2567_s24, %s2560_s20 }
  0xa7   : > { %p2564_p8 = pneg %p2563_p7  ;;  %p2570_p2 = por %p2569_p9, %p2568_p3 }
  0xa9   : > { %p2571_p0 = pnand %p2570_p2, %p2564_p8 }
  0xab   : > { %2574 = shalt.err (!%p2571_p0)
}
  0xac   : > { %2271 = dma.hbm_to_vmem [thread:$0]  (!%p3364_p6), %s2926_s29, 1024, %s2975_s3, %s2858_s10, %s3366_s30, %s3366_s30, %s3365_s8  }
  0xad   : > { %p3367_p13 = scmp.ne.s32.totalorder %s3358_s12, 0 }
  0xae   : > { %p3368_p1 = scmp.eq.s32.totalorder (!%p3367_p13), %s2886_s21, 0 }
  0xaf   : > { %576 = sbr.rel (%p3367_p13) target bundleno = 2507 (0x9cb), region = 72 }
  0xb6   : > { %2626 = dma.done.wait (%p3368_p1), [#allocation3], 512   ;;  %p3369_p12 = pmov %p3368_p1 }
  0xb7   : > { %s582_s13 = sand.u32 1, %s2886_s21   ;;  %s584_s22 = sand.u32 1, %s2647_s26  }
  0xb8   : > { %2628 = vsyncadd (%p3369_p12), [#allocation3], 4294966784  ;;  %s2237_s4 = smul.u32 192, %s584_s22  ;;  %s583_s7 = scalar_lea.sflag [#allocation6], %s582_s13 }
  0xb9   : > { %p3370_p4 = scmp.ne.s32.totalorder %s3357_s14, 0 }
  0xba   : > { %s3010_s18 = scalar_lea.vmem [#allocation5], %s2237_s4 }
  0xbb   : > { %2630 = dma.done.wait (%p3370_p4), %s583_s7, 4096  }
  0xbc   : > { %2632 = vsyncadd (%p3370_p4), %s583_s7, 4294963200  ;;  %s2015_s10 = sshll.u32 %s584_s22, 6  ;;  %s601_s12 = scalar_lea.sflag [#allocation9], %s582_s13 }
  0xbd   : > { %s3016_s29 = scalar_lea.vmem [#allocation7], %s2015_s10  ;;  %s3018_s8 = scalar_lea.vmem [#allocation8], %s2015_s10 }
  0xbe   : > { %2634 = dma.done.wait (%p3370_p4), %s601_s12, 2048  }
  0xbf   : > { %2636 = vsyncadd (%p3370_p4), %s601_s12, 4294965248  ;;  %p692_p6 = scmp.lt.s32.totalorder %s2655_s28, 1  ;;  %s3371_s13 = sld [smem:[#allocation27_spill]] }
  0xc0   : > { %s3372_s12 = sld [smem:[#allocation28_spill]]  ;;  %s3373_s27 = sld [smem:[#allocation25_spill]] }
  0xc1   : > { %s3026_s30 = scalar_select %p692_p6, %s2655_s28, 1 }
  0xc2   : > { %s3374_s9 = sld [smem:[#allocation30_spill]]  ;;  %s3375_s20 = sld [smem:[#allocation32_spill]] }
  0xc3   : > { %s2238_s23 = smul.u32 3, %s3026_s30  ;;  %s3062_s21 = scalar_lea.vmem [#allocation10], %s2015_s10 }
  0xc4   : > { %p2018_p5 = scmp.ne.s32.totalorder %s2655_s28, 0 }
  0xc5   : > { %s707_s22 = scalar_lea.vmem %s3371_s13, %s3026_s30  ;;  %v723_v0 = vld [vmem:[#allocation2] sm:$0xff] (!%p2018_p5)  ;;  %v724_v1 = vld [vmem:[#allocation2 + $0x8] sm:$0xff] (!%p2018_p5)  ;;  %v725_v2 = vld [vmem:[#allocation2 + $0x10] sm:$0xff] (!%p2018_p5) }
  0xc6   : > { %s710_s3 = scalar_lea.vmem %s3372_s12, %s3026_s30  ;;  %s3052_s5 = scalar_lea.vmem %s3373_s27, %s2238_s23  ;;  %727 = vst [vmem:[#allocation11] sm:$0xff] (!%p2018_p5), %v723_v0  ;;  %728 = vst [vmem:[#allocation11 + $0x8] sm:$0xff] (!%p2018_p5), %v724_v1  ;;  %v726_v3 = vld [vmem:[#allocation2 + $0x18] sm:$0xff] (!%p2018_p5) }
  0xc7   : > { %722 = sbr.rel (%p2018_p5) target bundleno = 206 (0xce), region = 96  ;;  %729 = vst [vmem:[#allocation11 + $0x10] sm:$0xff] (!%p2018_p5), %v725_v2  ;;  %730 = vst [vmem:[#allocation11 + $0x18] sm:$0xff] (!%p2018_p5), %v726_v3 }
  0xc8   : > { %s713_s11 = scalar_lea.vmem %s3374_s9, %s3026_s30  ;;  %s716_s15 = scalar_lea.vmem %s3375_s20, %s3026_s30 }
  0xce PF: > { %v3065_v4 = vld [vmem:[#allocation11] sm:$0xff]  ;;  %v3067_v5 = vld [vmem:[#allocation11 + $0x10] sm:$0xff]  ;;  %v3069_v6 = vld [vmem:[#allocation11 + $0x8] sm:$0xff]  ;;  %v753_v12 = vlaneseq  ;;  %v2676_v49 = vmov 0   ;;  %s3376_s28 = scalar_lea.vmem %s3301_s1, %s3026_s30  ;;  %s3377_s27 = scalar_lea.vmem %s3302_s2, %s3026_s30  ;;  %vm2678_vm1 = vmmov 0   ;;  %vm1187_vm7 = vcmask 130048  }
  0xcf   : > { %737 = vadd.xlane.f32.xlu0 %v3065_v4  ;;  %741 = vadd.xlane.f32.xlu1 %v3067_v5  ;;  %v3073_v7 = vld [vmem:[#allocation11 + $0x18] sm:$0xff]  ;;  %v2339_v8 = vld [vmem:[%s3010_s18 + $0x4] ss:$12 sps:$4 sm:$0xff]   ;;  %v2341_v9 = vld [vmem:[%s3010_s18] ss:$12 sps:$4 sm:$0xff]   ;;  %s3378_s23 = scalar_lea.vmem %s3306_s6, %s3026_s30  ;;  %s3383_s25 = sld [smem:[#allocation22_spill]] }
  0xd0   : > { %v2342_v10 = vld [vmem:[%s3010_s18 + $0x1c] ss:$12 sps:$4 sm:$0xff]   ;;  %987 = vmatprep.subr.bf16.mxu0 %v2339_v8  ;;  %v3082_v13 = vand.u32 127, %v753_v12  ;;  %v2345_v34 = vld [vmem:[%s3010_s18 + $0x18] ss:$12 sps:$4 sm:$0xff]   ;;  %1019 = vmatprep.mubr.bf16.mxu0 %v2676_v49  ;;  %s2680_s17 = smov [#allocation11]  }
  0xd1   : > { %v2344_v11 = vld [vmem:[%s3010_s18 + $0x8] ss:$12 sps:$4 sm:$0xff]   ;;  %988 = vmatpush1.bf16.msra.mxu0 %v2341_v9  ;;  %v2348_v36 = vld [vmem:[%s3010_s18 + $0x20] ss:$12 sps:$4 sm:$0xff]   ;;  %v2349_v37 = vld [vmem:[%s3010_s18 + $0x30] ss:$12 sps:$4 sm:$0xff]  }
  0xd2   : > { %2131 = vmatprep.subr.bf16.mxu1 %v2344_v11  ;;  %989 = vmatprep.subr.bf16.mxu0 %v2342_v10  ;;  %vm755_vm0 = vcmp.lt.s32.totalorder %v3082_v13, 32  ;;  %v2346_v35 = vld [vmem:[%s3010_s18 + $0x34] ss:$12 sps:$4 sm:$0xff]   ;;  %v2350_v38 = vld [vmem:[%s3010_s18 + $0x4c] ss:$12 sps:$4 sm:$0xff]   ;;  %vm1100_vm3 = vcmp.lt.s32.totalorder %v3082_v13, 16 }
  0xd3   : > { %739 = vadd.xlane.f32.xlu0 %v3069_v6  ;;  %743 = vadd.xlane.f32.xlu1 %v3073_v7  ;;  %v2352_v39 = vld [vmem:[%s3010_s18 + $0x38] ss:$12 sps:$4 sm:$0xff]   ;;  %v2353_v40 = vld [vmem:[%s3010_s18 + $0x48] ss:$12 sps:$4 sm:$0xff]   ;;  %v2356_v42 = vld [vmem:[%s3010_s18 + $0x50] ss:$12 sps:$4 sm:$0xff]  }
  0xd4   : > { %2132 = vmatpush3.bf16.msra.mxu1 %v2344_v11  ;;  %v2354_v41 = vld [vmem:[%s3010_s18 + $0x64] ss:$12 sps:$4 sm:$0xff]   ;;  %v2357_v43 = vld [vmem:[%s3010_s18 + $0x60] ss:$12 sps:$4 sm:$0xff]   ;;  %v2358_v44 = vld [vmem:[%s3010_s18 + $0x7c] ss:$12 sps:$4 sm:$0xff]  }
  0xd5   : > { %990 = vmatpush1.bf16.msra.mxu0 %v2345_v34  ;;  %2133 = vmatprep.subr.bf16.mxu1 %v2348_v36  ;;  %v2360_v45 = vld [vmem:[%s3010_s18 + $0x68] ss:$12 sps:$4 sm:$0xff]   ;;  %v2361_v46 = vld [vmem:[%s3010_s18 + $0x78] ss:$12 sps:$4 sm:$0xff]   ;;  %v2364_v48 = vld [vmem:[%s3010_s18 + $0x80] ss:$12 sps:$4 sm:$0xff]  }
  0xd6   : > { %991 = vmatprep.subr.bf16.mxu0 %v2346_v35  ;;  %v2362_v47 = vld [vmem:[%s3010_s18 + $0x94] ss:$12 sps:$4 sm:$0xff]   ;;  %v2365_v50 = vld [vmem:[%s3010_s18 + $0x90] ss:$12 sps:$4 sm:$0xff]   ;;  %v2366_v51 = vld [vmem:[%s3010_s18 + $0xac] ss:$12 sps:$4 sm:$0xff]  }
  0xd7   : > { %v2368_v52 = vld [vmem:[%s3010_s18 + $0x98] ss:$12 sps:$4 sm:$0xff]   ;;  %v2369_v53 = vld [vmem:[%s3010_s18 + $0xa8] ss:$12 sps:$4 sm:$0xff]   ;;  %v2370_v54 = vld [vmem:[%s3010_s18 + $0xb0] ss:$12 sps:$4 sm:$0xff]  }
  0xd8   : > { %2134 = vmatpush3.bf16.msra.mxu1 %v2348_v36  ;;  %v2019_v9 = vld [vmem:[%s3376_s28] ss:$0 sm:$0xff]  ;;  %s1783_s14 = sshll.u32 %s2680_s17, 4  ;;  %p2275_p11 = scmp.eq.s32.totalorder %s3383_s25, 1  ;;  %s1784_s14 = int_to_ptr.vmem [resolvable:$true] %s1783_s14 }
  0xd9   : > { %992 = vmatpush1.bf16.msra.mxu0 %v2349_v37  ;;  %2135 = vmatprep.subr.bf16.mxu1 %v2352_v39  ;;  %s2575_s30 = scalar_lea.vmem %s1784_s14, 512  ;;  %p2582_p3 = scmp.lt.s32.totalorder %s1784_s14, %s1784_s14 }
  0xda   : > { %993 = vmatprep.subr.bf16.mxu0 %v2350_v38  ;;  %p2576_p10 = scmp.ne.s32.totalorder %s1784_s14, %s2575_s30  ;;  %p2583_p9 = scmp.lt.s32.totalorder %s2575_s30, %s2575_s30 }
  0xdc   : > { %2136 = vmatpush3.bf16.msra.mxu1 %v2352_v39  ;;  %p2577_p7 = pnand %p2576_p10, %p2275_p11  ;;  %p2584_p2 = por %p2583_p9, %p2582_p3 }
  0xdd   : > { %994 = vmatpush1.bf16.msra.mxu0 %v2353_v40  ;;  %2137 = vmatprep.subr.bf16.mxu1 %v2356_v42 }
  0xde   : > { %995 = vmatprep.subr.bf16.mxu0 %v2354_v41  ;;  %p2578_p8 = pneg %p2577_p7 }
  0xe0   : > { %2138 = vmatpush3.bf16.msra.mxu1 %v2356_v42  ;;  %p2585_p0 = pnand %p2584_p2, %p2578_p8 }
  0xe1   : > { %996 = vmatpush1.bf16.msra.mxu0 %v2357_v43  ;;  %2139 = vmatprep.subr.bf16.mxu1 %v2360_v45 }
  0xe2   : > { %997 = vmatprep.subr.bf16.mxu0 %v2358_v44 }
  0xe4   : > { %2140 = vmatpush3.bf16.msra.mxu1 %v2360_v45 }
  0xe5   : > { %998 = vmatpush1.bf16.msra.mxu0 %v2361_v46  ;;  %2141 = vmatprep.subr.bf16.mxu1 %v2364_v48 }
  0xe6   : > { %999 = vmatprep.subr.bf16.mxu0 %v2362_v47 }
  0xe8   : > { %2142 = vmatpush3.bf16.msra.mxu1 %v2364_v48 }
  0xe9   : > { %1000 = vmatpush1.bf16.msra.mxu0 %v2365_v50  ;;  %2143 = vmatprep.subr.bf16.mxu1 %v2368_v52 }
  0xea   : > { %1001 = vmatprep.subr.bf16.mxu0 %v2366_v51 }
  0xec   : > { %2144 = vmatpush3.bf16.msra.mxu1 %v2368_v52 }
  0xed   : > { %1002 = vmatpush1.bf16.msra.mxu0 %v2369_v53  ;;  %2145 = vmatprep.subr.bf16.mxu1 %v2370_v54 }
  0xf0   : > { %2146 = vmatpush3.bf16.msra.mxu1 %v2370_v54 }
 0x15c   : > { %v738_v14 = vpop.xlane.xlu0 %737  ;;  %v742_v15 = vpop.xlane.xlu1 %741 }
 0x15d   : > { %v745_v16 = vmul.f32 0.03125, %v738_v14  ;;  %v747_v17 = vmul.f32 0.03125, %v742_v15 }
 0x15f   : > { %v3086_v18 = vsub.f32 %v3065_v4, %v745_v16  ;;  %v3089_v19 = vsub.f32 %v3067_v5, %v747_v17  ;;  %v2020_v16 = vld [vmem:[%s3377_s27] ss:$0 sm:$0xff] }
 0x160   : > { %v740_v20 = vpop.xlane.xlu0 %739  ;;  %v744_v21 = vpop.xlane.xlu1 %743 }
 0x161   : > { %v746_v22 = vmul.f32 0.03125, %v740_v20  ;;  %v748_v23 = vmul.f32 0.03125, %v744_v21  ;;  %v756_v24 = vsel %vm755_vm0, %v3086_v18, 0.0  ;;  %v758_v25 = vsel %vm755_vm0, %v3089_v19, 0.0 }
 0x162   : > { %v760_v26 = vmul.f32 %v756_v24, %v756_v24  ;;  %v762_v29 = vmul.f32 %v758_v25, %v758_v25 }
 0x163   : > { %v3098_v27 = vsub.f32 %v3069_v6, %v746_v22  ;;  %v3101_v28 = vsub.f32 %v3073_v7, %v748_v23 }
 0x164   : > { %764 = vadd.xlane.f32.xlu0 %v760_v26 }
 0x165   : > { %v757_v30 = vsel %vm755_vm0, %v3098_v27, 0.0  ;;  %v759_v31 = vsel %vm755_vm0, %v3101_v28, 0.0 }
 0x166   : > { %v761_v32 = vmul.f32 %v757_v30, %v757_v30  ;;  %v763_v33 = vmul.f32 %v759_v31, %v759_v31  ;;  %v2677_v31 = vmov 0.0  }
 0x167   : > { %2151 = vmatprep.subr.bf16.mxu0 %v2677_v31  ;;  %2163 = vmatprep.subr.bf16.mxu1 %v2677_v31 }
 0x168   : > { %768 = vadd.xlane.f32.xlu0 %v762_v29  ;;  %766 = vadd.xlane.f32.xlu1 %v761_v32  ;;  %v842_v32 = vld [vmem:[%s3052_s5] sm:$0x7] }
 0x16c   : > { %770 = vadd.xlane.f32.xlu1 %v763_v33 }
 0x1f1   : > { %v765_v55 = vpop.xlane.xlu0 %764 }
 0x1f2   : > { %v772_v56 = vmul.f32 0.03125, %v765_v55 }
 0x1f4   : > { %v776_v57 = vadd.f32 1e-05, %v772_v56 }
 0x1f5   : > { %v767_v58 = vpop.xlane.xlu1 %766  ;;  %v769_v59 = vpop.xlane.xlu0 %768 }
 0x1f6   : > { %2395 = vrsqrt.f32 %v776_v57  ;;  %v773_v60 = vmul.f32 0.03125, %v767_v58  ;;  %v774_v61 = vmul.f32 0.03125, %v769_v59 }
 0x1f8   : > { %v777_v62 = vadd.f32 1e-05, %v773_v60  ;;  %v778_v63 = vadd.f32 1e-05, %v774_v61 }
 0x1f9   : > { %v771_v0 = vpop.xlane.xlu1 %770 }
 0x1fa   : > { %2397 = vrsqrt.f32 %v777_v62  ;;  %v775_v1 = vmul.f32 0.03125, %v771_v0 }
 0x1fb   : > { %2399 = vrsqrt.f32 %v778_v63 }
 0x1fc   : > { %v779_v2 = vadd.f32 1e-05, %v775_v1 }
 0x1fe   : > { %2401 = vrsqrt.f32 %v779_v2 }
 0x200   : > { %v2396_v3 = vpop.eup %2395 }
 0x201   : > { %v784_v8 = vmul.f32 %v2396_v3, %v3086_v18 }
 0x203   : > { %v794_v15 = vmul.f32 %v2019_v9, %v784_v8  ;;  %v2679_v8 = vmov -1e+30  }
 0x204   : > { %v2398_v10 = vpop.eup %2397 }
 0x205   : > { %v2400_v11 = vpop.eup %2399  ;;  %v785_v14 = vmul.f32 %v2398_v10, %v3098_v27  ;;  %v804_v18 = vadd.f32 %v2020_v16, %v794_v15 }
 0x206   : > { %v786_v17 = vmul.f32 %v2400_v11, %v3089_v19  ;;  %v845_v19 = vshrl.u32 %v753_v12, 7 }
 0x207   : > { %v795_v20 = vmul.f32 %v2019_v9, %v785_v14 }
 0x208   : > { %v2402_v21 = vpop.eup %2401  ;;  %v796_v24 = vmul.f32 %v2019_v9, %v786_v17  ;;  %v850_v33 = vsub.s32 1, %v845_v19  ;;  %v854_v35 = vsub.s32 2, %v845_v19  ;;  %v1097_v3 = vadd.s32 8, %v845_v19 }
 0x209   : > { %v805_v22 = vadd.f32 %v2020_v16, %v795_v20  ;;  %v787_v23 = vmul.f32 %v2402_v21, %v3101_v28  ;;  %v846_v28 = vsub.s32 0, %v845_v19  ;;  %vm1098_vm2 = vcmp.le.s32.totalorder %v3082_v13, %v845_v19 }
 0x20a   : > { %v806_v27 = vadd.f32 %v2020_v16, %v796_v24  ;;  %v851_v37 = vrot.slane %v842_v32, %v850_v33  ;;  %v855_v43 = vrot.slane %v842_v32, %v854_v35  ;;  %vm1099_vm4 = vcmp.le.s32.totalorder %v3082_v13, %v1097_v3  ;;  %vm1101_vm5 = vmand %vm1098_vm2, %vm1100_vm3  ;;  %v2376_v3 = vld [vmem:[%s3016_s29 + $0x28] sm:$0xff]  }
 0x20b   : > { %v808_v25 = vpack.c.bf16 %v805_v22, %v804_v18  ;;  %v797_v26 = vmul.f32 %v2019_v9, %v787_v23  ;;  %v847_v34 = vrot.slane %v842_v32, %v846_v28  ;;  %vm1102_vm6 = vmand %vm1099_vm4, %vm1100_vm3  ;;  %v1103_v9 = vsel %vm1101_vm5, 0.0, %v2679_v8  ;;  %v2384_v13 = vld [vmem:[%s3018_s8 + $0x28] sm:$0xff]  }
 0x20c   : > { %v1104_v11 = vsel %vm1102_vm6, 0.0, %v2679_v8  ;;  %v2377_v8 = vld [vmem:[%s3016_s29 + $0x30] sm:$0xff]  }
 0x20d   : > { %1020 = vmatmul.mubr.bf16.vlgmr.msra.gmra.mrb[0].mxu0 %v808_v25  ;;  %2147 = vmatprep.mubr.bf16.mxu1 %v808_v25  ;;  %v807_v29 = vadd.f32 %v2020_v16, %v797_v26 }
 0x20e   : > { %1029 = vmatprep.mubr.bf16.mxu0 %v2676_v49 }
 0x20f   : > { %v809_v30 = vpack.c.bf16 %v807_v29, %v806_v27 }
 0x211   : > { %2148 = vmatmul.mubr.bf16.vlgmr.msra.gmra.mrb[0].mxu1 %v809_v30 }
 0x212   : > { %2165 = vmatprep.mubr.msk.bf16.mxu1 %vm2678_vm1, %v2677_v31 }
 0x215   : > { %1030 = vmatmul.mubr.bf16.gmra.mrb[4].mxu0 %v809_v30 }
 0x216   : > { %2153 = vmatprep.mubr.msk.bf16.mxu0 %vm2678_vm1, %v2677_v31 }
 0x2e0   : > { %v1021_v36 = vpop.f32.mrb[0].mxu0 }
 0x2e1   : > { %v1023_v38 = vpop.f32.mrb[1].mxu0  ;;  %v1022_v40 = vadd.f32 %v1021_v36, %v847_v34 }
 0x2e2   : > { %v1025_v39 = vpop.f32.mrb[2].mxu0  ;;  %v1024_v44 = vadd.f32 %v1023_v38, %v851_v37 }
 0x2e3   : > { %v1026_v41 = vadd.f32 %v1025_v39, %v847_v34  ;;  %v1027_v42 = vpop.f32.mrb[3].mxu0 }
 0x2e4   : > { %v1028_v45 = vadd.f32 %v1027_v42, %v851_v37  ;;  %v2149_v46 = vpop.f32.mrb[0].mxu1 }
 0x2e5   : > { %v1089_v47 = vpack.c.bf16 %v1026_v41, %v1022_v40  ;;  %v1074_v48 = vpop.f32.mrb[1].mxu1  ;;  %v1083_v50 = vadd.f32 %v2149_v46, %v855_v43 }
 0x2e6   : > { %v1091_v49 = vpack.c.bf16 %v1028_v45, %v1024_v44  ;;  %v2150_v12 = vpop.f32.mrb[2].mxu1  ;;  %v1075_v53 = vadd.f32 %v1074_v48, %v855_v43 }
 0x2e7   : > { %v1086_v51 = vadd.f32 %v2150_v12, %v855_v43  ;;  %v1077_v52 = vpop.f32.mrb[3].mxu1 }
 0x2e8   : > { %v1078_v54 = vadd.f32 %v1077_v52, %v855_v43  ;;  %v1031_v55 = vpop.f32.mrb[4].mxu0  ;;  %2152 = vmatpush3.bf16.xpose.msra.mxu0 %v1091_v49  ;;  %v2371_v49 = vld [vmem:[%s3016_s29] sm:$0xff]  }
 0x2e9   : > { %v1094_v56 = vpack.c.bf16 %v1086_v51, %v1083_v50  ;;  %v1033_v57 = vpop.f32.mrb[5].mxu0  ;;  %2157 = vmatprep.subr.bf16.mxu0 %v2677_v31  ;;  %v1032_v60 = vadd.f32 %v1031_v55, %v847_v34 }
 0x2ea   : > { %v1093_v58 = vpack.c.bf16 %v1078_v54, %v1075_v53  ;;  %v1035_v59 = vpop.f32.mrb[6].mxu0  ;;  %v1034_v63 = vadd.f32 %v1033_v57, %v851_v37 }
 0x2eb   : > { %v1036_v61 = vadd.f32 %v1035_v59, %v847_v34  ;;  %v1037_v62 = vpop.f32.mrb[7].mxu0 }
 0x2ec   : > { %v1038_v0 = vadd.f32 %v1037_v62, %v851_v37  ;;  %2164 = vmatpush3.bf16.msra.mxu1 %v1093_v58  ;;  %v2372_v58 = vld [vmem:[%s3016_s29 + $0x8] sm:$0xff]  }
 0x2ed   : > { %v1090_v1 = vpack.c.bf16 %v1036_v61, %v1032_v60  ;;  %2175 = vmatprep.subr.bf16.mxu1 %v2371_v49  ;;  %v2373_v60 = vld [vmem:[%s3016_s29 + $0x10] sm:$0xff]  }
 0x2ee   : > { %v1092_v2 = vpack.c.bf16 %v1038_v0, %v1034_v63 }
 0x2ef   : > { %2154 = vmatmul.mubr.bf16.vlgmr.msra.gmra.mrb[8].mxu0 %v1089_v47 }
 0x2f0   : > { %2158 = vmatpush3.bf16.xpose.msra.mxu0 %v1092_v2  ;;  %2159 = vmatprep.mubr.msk.bf16.mxu0 %vm2678_vm1, %v2677_v31  ;;  %v2375_v2 = vld [vmem:[%s3016_s29 + $0x20] sm:$0xff]  }
 0x2f1   : > { %2169 = vmatprep.subr.bf16.mxu0 %v2677_v31 }
 0x2f7   : > { %2160 = vmatmul.mubr.bf16.vlgmr.msra.gmra.mrb[12].mxu0 %v1090_v1  ;;  %v2374_v1 = vld [vmem:[%s3016_s29 + $0x18] sm:$0xff]  }
 0x2f8   : > { %2170 = vmatpush3.bf16.msra.mxu0 %v1094_v56  ;;  %2171 = vmatprep.mubr.msk.bf16.mxu0 %vm2678_vm1, %v2677_v31 }
 0x3c2   : > { %v1139_v10 = vpop.f32.mrb[8].mxu0 }
 0x3c3   : > { %v1140_v14 = vadd.f32 %v1139_v10, %v1103_v9  ;;  %v2155_v15 = vpop.f32.mrb[9].mxu0 }
 0x3c4   : > { %v1142_v16 = vpop.f32.mrb[10].mxu0 }
 0x3c5   : > { %v1143_v17 = vadd.f32 %v1142_v16, %v1104_v11  ;;  %v2156_v20 = vpop.f32.mrb[11].mxu0  ;;  %v1188_v21 = vsel %vm1187_vm7, %v1140_v14, -inf }
 0x3c6   : > { %1189 = vmax.xlane.f32.xlu0 %v1188_v21 }
 0x3c7   : > { %v1191_v18 = vsel %vm1187_vm7, %v1143_v17, -inf }
 0x3c8   : > { %1192 = vmax.xlane.f32.xlu1 %v1191_v18 }
 0x3ca   : > { %v1180_v22 = vpop.f32.mrb[12].mxu0 }
 0x3cb   : > { %v1181_v23 = vadd.f32 %v1180_v22, %v1103_v9  ;;  %v2161_v24 = vpop.f32.mrb[13].mxu0  ;;  %v2378_v9 = vld [vmem:[%s3016_s29 + $0x38] sm:$0xff]  }
 0x3cc   : > { %v1183_v25 = vpop.f32.mrb[14].mxu0 }
 0x3cd   : > { %v1184_v26 = vadd.f32 %v1183_v25, %v1104_v11  ;;  %v2162_v27 = vpop.f32.mrb[15].mxu0  ;;  %v1194_v29 = vsel %vm1187_vm7, %v1181_v23, -inf }
 0x3ce   : > { %1195 = vmax.xlane.f32.xlu0 %v1194_v29 }
 0x3cf   : > { %v1197_v30 = vsel %vm1187_vm7, %v1184_v26, -inf }
 0x3d0   : > { %1198 = vmax.xlane.f32.xlu1 %v1197_v30 }
 0x453   : > { %v1190_v31 = vpop.xlane.xlu0 %1189 }
 0x454   : > { %v1200_v19 = vsub.f32 %v1140_v14, %v1190_v31 }
 0x455   : > { %v1193_v28 = vpop.xlane.xlu1 %1192 }
 0x456   : > { %v1204_v32 = vmul.f32 1.442695, %v1200_v19  ;;  %v1201_v33 = vsub.f32 %v1143_v17, %v1193_v28 }
 0x458   : > { %2403 = vpow2.f32 %v1204_v32  ;;  %v1206_v34 = vmul.f32 1.442695, %v1201_v33 }
 0x45a   : > { %2405 = vpow2.f32 %v1206_v34 }
 0x45b   : > { %v1196_v35 = vpop.xlane.xlu0 %1195 }
 0x45c   : > { %v1202_v36 = vsub.f32 %v1181_v23, %v1196_v35  ;;  %v2047_v23 = vld [vmem:[%s3378_s23] ss:$0 sm:$0xff] }
 0x45d   : > { %v1199_v37 = vpop.xlane.xlu1 %1198 }
 0x45e   : > { %v1208_v38 = vmul.f32 1.442695, %v1202_v36  ;;  %v1203_v39 = vsub.f32 %v1184_v26, %v1199_v37 }
 0x460   : > { %2407 = vpow2.f32 %v1208_v38  ;;  %v1210_v40 = vmul.f32 1.442695, %v1203_v39 }
 0x462   : > { %v2404_v41 = vpop.eup %2403  ;;  %2409 = vpow2.f32 %v1210_v40 }
 0x463   : > { %v1212_v42 = vsel %vm1187_vm7, %v2404_v41, 0.0 }
 0x464   : > { %v2406_v43 = vpop.eup %2405  ;;  %1213 = vadd.xlane.f32.xlu0 %v1212_v42 }
 0x465   : > { %v1215_v44 = vsel %vm1187_vm7, %v2406_v43, 0.0 }
 0x466   : > { %1216 = vadd.xlane.f32.xlu1 %v1215_v44 }
 0x46a   : > { %v2408_v45 = vpop.eup %2407 }
 0x46b   : > { %v1218_v46 = vsel %vm1187_vm7, %v2408_v45, 0.0 }
 0x46c   : > { %v2410_v47 = vpop.eup %2409  ;;  %1219 = vadd.xlane.f32.xlu0 %v1218_v46 }
 0x46d   : > { %v1221_v48 = vsel %vm1187_vm7, %v2410_v47, 0.0 }
 0x46e   : > { %1222 = vadd.xlane.f32.xlu1 %v1221_v48 }
 0x4f1   : > { %v1214_v12 = vpop.xlane.xlu0 %1213 }
 0x4f2   : > { %2411 = vrcp.f32 %v1214_v12 }
 0x4f3   : > { %v1217_v50 = vpop.xlane.xlu1 %1216 }
 0x4f4   : > { %2413 = vrcp.f32 %v1217_v50 }
 0x4f9   : > { %v1220_v51 = vpop.xlane.xlu0 %1219 }
 0x4fa   : > { %2415 = vrcp.f32 %v1220_v51  ;;  %v2380_v51 = vld [vmem:[%s3018_s8 + $0x8] sm:$0xff]  }
 0x4fb   : > { %v1223_v52 = vpop.xlane.xlu1 %1222 }
 0x4fc   : > { %v2412_v53 = vpop.eup %2411  ;;  %2417 = vrcp.f32 %v1223_v52  ;;  %v2381_v52 = vld [vmem:[%s3018_s8 + $0x10] sm:$0xff]  }
 0x4fd   : > { %v1228_v55 = vmul.f32 %v2412_v53, %v2404_v41  ;;  %v2382_v53 = vld [vmem:[%s3018_s8 + $0x18] sm:$0xff]  }
 0x4fe   : > { %v2414_v54 = vpop.eup %2413 }
 0x4ff   : > { %v1229_v56 = vmul.f32 %v2414_v54, %v2406_v43  ;;  %v2383_v54 = vld [vmem:[%s3018_s8 + $0x20] sm:$0xff]  }
 0x501   : > { %v1232_v57 = vpack.c.bf16 %v1229_v56, %v1228_v55  ;;  %v2385_v55 = vld [vmem:[%s3018_s8 + $0x30] sm:$0xff]   ;;  %v2386_v56 = vld [vmem:[%s3018_s8 + $0x38] sm:$0xff]  }
 0x503   : > { %2166 = vmatmul.mubr.msk.bf16.vlgmr.msra.gmra.mrb[4].mxu1 %vm1187_vm7, %v1232_v57  ;;  %v2387_v57 = vld [vmem:[%s3062_s21] sm:$0xff]  }
 0x504   : > { %v2416_v59 = vpop.eup %2415  ;;  %2176 = vmatpush3.bf16.msra.mxu1 %v2371_v49 }
 0x505   : > { %2177 = vmatprep.subr.bf16.mxu1 %v2372_v58  ;;  %v1230_v62 = vmul.f32 %v2416_v59, %v2408_v45  ;;  %v2389_v59 = vld [vmem:[%s3062_s21 + $0x10] sm:$0xff]  }
 0x506   : > { %v2418_v61 = vpop.eup %2417 }
 0x507   : > { %v1231_v63 = vmul.f32 %v2418_v61, %v2410_v47  ;;  %v2391_v61 = vld [vmem:[%s3062_s21 + $0x20] sm:$0xff]  }
 0x508   : > { %2178 = vmatpush3.bf16.msra.mxu1 %v2372_v58  ;;  %v2388_v58 = vld [vmem:[%s3062_s21 + $0x8] sm:$0xff]  }
 0x509   : > { %v1233_v0 = vpack.c.bf16 %v1231_v63, %v1230_v62  ;;  %2179 = vmatprep.subr.bf16.mxu1 %v2373_v60  ;;  %v2392_v62 = vld [vmem:[%s3062_s21 + $0x28] sm:$0xff]  }
 0x50b   : > { %2172 = vmatmul.mubr.msk.bf16.vlgmr.msra.gmra.mrb[16].mxu0 %vm1187_vm7, %v1233_v0 }
 0x50c   : > { %2180 = vmatpush3.bf16.msra.mxu1 %v2373_v60  ;;  %v2390_v60 = vld [vmem:[%s3062_s21 + $0x18] sm:$0xff]  }
 0x50d   : > { %2181 = vmatprep.subr.bf16.mxu1 %v2374_v1 }
 0x510   : > { %2182 = vmatpush3.bf16.msra.mxu1 %v2374_v1 }
 0x511   : > { %2183 = vmatprep.subr.bf16.mxu1 %v2375_v2 }
 0x514   : > { %2184 = vmatpush3.bf16.msra.mxu1 %v2375_v2 }
 0x515   : > { %2185 = vmatprep.subr.bf16.mxu1 %v2376_v3 }
 0x518   : > { %2186 = vmatpush3.bf16.msra.mxu1 %v2376_v3 }
 0x519   : > { %2187 = vmatprep.subr.bf16.mxu1 %v2377_v8 }
 0x51c   : > { %2188 = vmatpush3.bf16.msra.mxu1 %v2377_v8 }
 0x51d   : > { %2189 = vmatprep.subr.bf16.mxu1 %v2378_v9 }
 0x520   : > { %2190 = vmatpush3.bf16.msra.mxu1 %v2378_v9 }
 0x521   : > { %2215 = vmatprep.subr.bf16.mxu1 %v2387_v57 }
 0x5d6   : > { %v1271_v10 = vpop.f32.mrb[4].mxu1 }
 0x5d7   : > { %v2167_v11 = vpop.f32.mrb[5].mxu1 }
 0x5d8   : > { %v1274_v14 = vpop.f32.mrb[6].mxu1 }
 0x5d9   : > { %v1322_v15 = vpack.c.bf16 %v1274_v14, %v1271_v10  ;;  %v2168_v16 = vpop.f32.mrb[7].mxu1 }
 0x5db   : > { %2191 = vmatprep.mubr.bf16.mxu1 %v1322_v15 }
 0x5de   : > { %v1315_v17 = vpop.f32.mrb[16].mxu0 }
 0x5df   : > { %v2173_v20 = vpop.f32.mrb[17].mxu0 }
 0x5e0   : > { %v1318_v21 = vpop.f32.mrb[18].mxu0  ;;  %v2056_v20 = vld [vmem:[%s707_s22] ss:$0 sm:$0xff] }
 0x5e1   : > { %v1323_v18 = vpack.c.bf16 %v1318_v21, %v1315_v17  ;;  %v2174_v22 = vpop.f32.mrb[19].mxu0 }
 0x5e3   : > { %2192 = vmatmul.mubr.bf16.vlgmr.msra.gmra.mrb[8].mxu1 %v1323_v18 }
 0x5e4   : > { %2216 = vmatpush3.bf16.msra.mxu1 %v2387_v57 }
 0x5e5   : > { %2217 = vmatprep.subr.bf16.mxu1 %v2388_v58 }
 0x5e8   : > { %2218 = vmatpush3.bf16.msra.mxu1 %v2388_v58 }
 0x5e9   : > { %2219 = vmatprep.subr.bf16.mxu1 %v2389_v59 }
 0x5ec   : > { %2220 = vmatpush3.bf16.msra.mxu1 %v2389_v59 }
 0x5ed   : > { %2221 = vmatprep.subr.bf16.mxu1 %v2390_v60 }
 0x5f0   : > { %2222 = vmatpush3.bf16.msra.mxu1 %v2390_v60 }
 0x5f1   : > { %2223 = vmatprep.subr.bf16.mxu1 %v2391_v61 }
 0x5f4   : > { %2224 = vmatpush3.bf16.msra.mxu1 %v2391_v61 }
 0x5f5   : > { %2225 = vmatprep.subr.bf16.mxu1 %v2392_v62 }
 0x5f8   : > { %2226 = vmatpush3.bf16.msra.mxu1 %v2392_v62 }
 0x6b6   : > { %v2193_v24 = vpop.f32.mrb[8].mxu1 }
 0x6b7   : > { %v1429_v25 = vpop.f32.mrb[9].mxu1  ;;  %v1438_v30 = vadd.f32 %v2193_v24, %v2047_v23 }
 0x6b8   : > { %v1430_v26 = vadd.f32 %v2047_v23, %v1429_v25  ;;  %v2194_v27 = vpop.f32.mrb[10].mxu1  ;;  %v2057_v25 = vld [vmem:[%s710_s3] ss:$0 sm:$0xff] }
 0x6b9   : > { %v1432_v29 = vpop.f32.mrb[11].mxu1  ;;  %v1441_v28 = vadd.f32 %v2194_v27, %v2047_v23  ;;  %v3183_v33 = vadd.f32 %v1438_v30, %v3067_v5 }
 0x6ba   : > { %v3176_v31 = vadd.f32 %v1430_v26, %v3065_v4  ;;  %v1433_v19 = vadd.f32 %v2047_v23, %v1432_v29  ;;  %v2379_v4 = vld [vmem:[%s3018_s8] sm:$0xff]  }
 0x6bb   : > { %v3187_v34 = vadd.f32 %v1441_v28, %v3073_v7  ;;  %2195 = vmatprep.subr.bf16.mxu0 %v2379_v4 }
 0x6bc   : > { %v3179_v32 = vadd.f32 %v1433_v19, %v3069_v6  ;;  %1450 = vadd.xlane.f32.xlu0 %v3176_v31  ;;  %2196 = vmatpush3.bf16.msra.mxu0 %v2379_v4 }
 0x6bd   : > { %2197 = vmatprep.subr.bf16.mxu0 %v2380_v51 }
 0x6be   : > { %1452 = vadd.xlane.f32.xlu1 %v3179_v32 }
 0x6c0   : > { %1454 = vadd.xlane.f32.xlu0 %v3183_v33  ;;  %2198 = vmatpush3.bf16.msra.mxu0 %v2380_v51 }
 0x6c1   : > { %2199 = vmatprep.subr.bf16.mxu0 %v2381_v52 }
 0x6c2   : > { %1456 = vadd.xlane.f32.xlu1 %v3187_v34 }
 0x6c4   : > { %2200 = vmatpush3.bf16.msra.mxu0 %v2381_v52 }
 0x6c5   : > { %2201 = vmatprep.subr.bf16.mxu0 %v2382_v53 }
 0x6c8   : > { %2202 = vmatpush3.bf16.msra.mxu0 %v2382_v53  ;;  %v2067_v53 = vld [vmem:[%s716_s15] ss:$0 sm:$0xff] }
 0x6c9   : > { %2203 = vmatprep.subr.bf16.mxu0 %v2383_v54 }
 0x6cc   : > { %2204 = vmatpush3.bf16.msra.mxu0 %v2383_v54 }
 0x6cd   : > { %2205 = vmatprep.subr.bf16.mxu0 %v2384_v13 }
 0x6d0   : > { %2206 = vmatpush3.bf16.msra.mxu0 %v2384_v13 }
 0x6d1   : > { %2207 = vmatprep.subr.bf16.mxu0 %v2385_v55 }
 0x6d4   : > { %2208 = vmatpush3.bf16.msra.mxu0 %v2385_v55 }
 0x6d5   : > { %2209 = vmatprep.subr.bf16.mxu0 %v2386_v56 }
 0x6d8   : > { %2210 = vmatpush3.bf16.msra.mxu0 %v2386_v56 }
 0x749   : > { %v1451_v35 = vpop.xlane.xlu0 %1450 }
 0x74a   : > { %v1458_v6 = vmul.f32 0.03125, %v1451_v35 }
 0x74b   : > { %v1453_v36 = vpop.xlane.xlu1 %1452 }
 0x74c   : > { %v3193_v37 = vsub.f32 %v3176_v31, %v1458_v6  ;;  %v1459_v5 = vmul.f32 0.03125, %v1453_v36 }
 0x74d   : > { %v1455_v38 = vpop.xlane.xlu0 %1454 }
 0x74e   : > { %v3196_v39 = vsub.f32 %v3179_v32, %v1459_v5  ;;  %v1460_v7 = vmul.f32 0.03125, %v1455_v38  ;;  %v1466_v40 = vsel %vm755_vm0, %v3193_v37, 0.0  ;;  %v2393_v38 = vld [vmem:[%s3062_s21 + $0x30] sm:$0xff]  }
 0x74f   : > { %v1457_v41 = vpop.xlane.xlu1 %1456  ;;  %v1470_v42 = vmul.f32 %v1466_v40, %v1466_v40  ;;  %2227 = vmatprep.subr.bf16.mxu1 %v2393_v38 }
 0x750   : > { %v3202_v43 = vsub.f32 %v3183_v33, %v1460_v7  ;;  %v1461_v44 = vmul.f32 0.03125, %v1457_v41  ;;  %v1467_v45 = vsel %vm755_vm0, %v3196_v39, 0.0  ;;  %2228 = vmatpush3.bf16.msra.mxu1 %v2393_v38  ;;  %v2058_v7 = vld [vmem:[%s713_s11] ss:$0 sm:$0xff] }
 0x751   : > { %1474 = vadd.xlane.f32.xlu0 %v1470_v42  ;;  %v1471_v46 = vmul.f32 %v1467_v45, %v1467_v45 }
 0x752   : > { %v3208_v47 = vsub.f32 %v3187_v34, %v1461_v44  ;;  %v1468_v48 = vsel %vm755_vm0, %v3202_v43, 0.0 }
 0x753   : > { %1476 = vadd.xlane.f32.xlu1 %v1471_v46  ;;  %v1472_v49 = vmul.f32 %v1468_v48, %v1468_v48 }
 0x754   : > { %v1469_v12 = vsel %vm755_vm0, %v3208_v47, 0.0 }
 0x755   : > { %1478 = vadd.xlane.f32.xlu0 %v1472_v49  ;;  %v1473_v50 = vmul.f32 %v1469_v12, %v1469_v12 }
 0x757   : > { %1480 = vadd.xlane.f32.xlu1 %v1473_v50 }
 0x7de   : > { %v1475_v63 = vpop.xlane.xlu0 %1474 }
 0x7df   : > { %v1482_v0 = vmul.f32 0.03125, %v1475_v63 }
 0x7e0   : > { %v1477_v1 = vpop.xlane.xlu1 %1476 }
 0x7e1   : > { %v1486_v2 = vadd.f32 1e-05, %v1482_v0  ;;  %v1483_v3 = vmul.f32 0.03125, %v1477_v1 }
 0x7e2   : > { %v1479_v8 = vpop.xlane.xlu0 %1478 }
 0x7e3   : > { %2419 = vrsqrt.f32 %v1486_v2  ;;  %v1487_v9 = vadd.f32 1e-05, %v1483_v3  ;;  %v1484_v10 = vmul.f32 0.03125, %v1479_v8 }
 0x7e4   : > { %v1481_v11 = vpop.xlane.xlu1 %1480 }
 0x7e5   : > { %2421 = vrsqrt.f32 %v1487_v9  ;;  %v1488_v14 = vadd.f32 1e-05, %v1484_v10  ;;  %v1485_v15 = vmul.f32 0.03125, %v1481_v11 }
 0x7e7   : > { %2423 = vrsqrt.f32 %v1488_v14  ;;  %v1489_v16 = vadd.f32 1e-05, %v1485_v15 }
 0x7e9   : > { %2425 = vrsqrt.f32 %v1489_v16 }
 0x7ed   : > { %v2420_v17 = vpop.eup %2419 }
 0x7ee   : > { %v1494_v21 = vmul.f32 %v2420_v17, %v3193_v37 }
 0x7ef   : > { %v2422_v18 = vpop.eup %2421 }
 0x7f0   : > { %v1495_v22 = vmul.f32 %v2422_v18, %v3196_v39  ;;  %v1504_v23 = vmul.f32 %v2056_v20, %v1494_v21  ;;  %v2394_v39 = vld [vmem:[%s3062_s21 + $0x38] sm:$0xff]  }
 0x7f1   : > { %v2424_v24 = vpop.eup %2423  ;;  %2229 = vmatprep.subr.bf16.mxu1 %v2394_v39 }
 0x7f2   : > { %v1496_v26 = vmul.f32 %v2424_v24, %v3202_v43  ;;  %v1505_v27 = vmul.f32 %v2056_v20, %v1495_v22  ;;  %v1514_v19 = vadd.f32 %v2057_v25, %v1504_v23  ;;  %2230 = vmatpush3.bf16.msra.mxu1 %v2394_v39 }
 0x7f3   : > { %v2426_v29 = vpop.eup %2425 }
 0x7f4   : > { %v1497_v30 = vmul.f32 %v2426_v29, %v3208_v47  ;;  %v1515_v28 = vadd.f32 %v2057_v25, %v1505_v27  ;;  %v1506_v4 = vmul.f32 %v2056_v20, %v1496_v26 }
 0x7f6   : > { %v1518_v35 = vpack.c.bf16 %v1515_v28, %v1514_v19  ;;  %v1507_v6 = vmul.f32 %v2056_v20, %v1497_v30  ;;  %v1516_v36 = vadd.f32 %v2057_v25, %v1506_v4 }
 0x7f8   : > { %2211 = vmatprep.mubr.bf16.mxu0 %v1518_v35  ;;  %v1517_v37 = vadd.f32 %v2057_v25, %v1507_v6 }
 0x7fa   : > { %v1519_v5 = vpack.c.bf16 %v1517_v37, %v1516_v36 }
 0x7fc   : > { %2212 = vmatmul.mubr.bf16.vlgmr.msra.gmra.mrb[20].mxu0 %v1519_v5 }
 0x8cf   : > { %v2213_v40 = vpop.f32.mrb[20].mxu0 }
 0x8d0   : > { %v1634_v41 = vadd.f32 %v2213_v40, %v2058_v7  ;;  %v1625_v42 = vpop.f32.mrb[21].mxu0 }
 0x8d1   : > { %v1626_v43 = vadd.f32 %v2058_v7, %v1625_v42  ;;  %v2214_v44 = vpop.f32.mrb[22].mxu0 }
 0x8d2   : > { %v1637_v45 = vadd.f32 %v2214_v44, %v2058_v7  ;;  %v1628_v46 = vpop.f32.mrb[23].mxu0  ;;  %v1642_v48 = vmax.f32 %v1634_v41, 0.0 }
 0x8d3   : > { %v1629_v47 = vadd.f32 %v2058_v7, %v1628_v46  ;;  %v1640_v12 = vmax.f32 %v1626_v43, 0.0 }
 0x8d4   : > { %v1643_v49 = vmax.f32 %v1637_v45, 0.0 }
 0x8d5   : > { %v1641_v50 = vmax.f32 %v1629_v47, 0.0 }
 0x8d6   : > { %v1645_v51 = vpack.c.bf16 %v1643_v49, %v1642_v48 }
 0x8d7   : > { %v1644_v52 = vpack.c.bf16 %v1641_v50, %v1640_v12 }
 0x8d9   : > { %2231 = vmatprep.mubr.bf16.mxu1 %v1644_v52 }
 0x8da   : > { %2232 = vmatmul.mubr.bf16.vlgmr.msra.gmra.mrb[12].mxu1 %v1645_v51 }
 0x9ad   : > { %v2233_v54 = vpop.f32.mrb[12].mxu1 }
 0x9ae   : > { %v1760_v13 = vadd.f32 %v2233_v54, %v2067_v53  ;;  %v1751_v55 = vpop.f32.mrb[13].mxu1 }
 0x9af   : > { %v1752_v56 = vadd.f32 %v2067_v53, %v1751_v55  ;;  %v2234_v57 = vpop.f32.mrb[14].mxu1 }
 0x9b0   : > { %v1768_v58 = vadd.f32 %v1760_v13, %v3183_v33  ;;  %v1763_v59 = vadd.f32 %v2234_v57, %v2067_v53  ;;  %v1754_v60 = vpop.f32.mrb[15].mxu1 }
 0x9b1   : > { %v1766_v61 = vadd.f32 %v1752_v56, %v3176_v31  ;;  %v1755_v62 = vadd.f32 %v2067_v53, %v1754_v60 }
 0x9b2   : > { %1772 = vst [vmem:[#allocation11 + $0x10] sm:$0xff] %v1768_v58  ;;  %v1769_v63 = vadd.f32 %v1763_v59, %v3187_v34 }
 0x9b3   : > { %1770 = vst [vmem:[#allocation11] sm:$0xff] %v1766_v61  ;;  %v1767_v0 = vadd.f32 %v1755_v62, %v3179_v32 }
 0x9b4   : > { %1773 = vst [vmem:[#allocation11 + $0x18] sm:$0xff] %v1769_v63 }
 0x9b5   : > { %1771 = vst [vmem:[#allocation11 + $0x8] sm:$0xff] %v1767_v0 }
 0x9b6   : > { %2588 = shalt.err (!%p2585_p0)
}
 0x9b7   : > { %s3384_s20 = sld [smem:[#allocation33_spill]] }
 0x9bd   : > { %s2589_s0 = scalar_lea.hbm %s3384_s20, 512 }
 0x9be   : > { %p2590_p13 = scmp.ne.s32.totalorder %s3384_s20, %s2589_s0  ;;  %p2595_p4 = scmp.lt.u32.totalorder %s2589_s0, %s3384_s20 }
 0x9c0   : > { %p2591_p1 = pnand %p2590_p13, %p2275_p11 }
 0x9c2   : > { %p2592_p12 = pneg %p2591_p1 }
 0x9c4   : > { %p2597_p6 = pnand %p2595_p4, %p2592_p12 }
 0x9c6   : > { %2600 = shalt.err (!%p2597_p6)
}
 0x9c7   : > { %s2681_s27 = smov 128   ;;  %s2682_s5 = smov 8  }
 0x9c8   : > { %2252 = dma.vmem_to_hbm [thread:$0]  (%p2275_p11), %s1784_s14, 512, %s3384_s20, [#allocation4], %s2681_s27, %s2681_s27, %s2682_s5  }
 0x9c9   : > { %2638 = dma.done.wait (%p2275_p11), [#allocation4], 512  }
 0x9ca   : > { %2640 = vsyncadd (%p2275_p11), [#allocation4], 4294966784 }
 0x9cb PF: > { %s3385_s29 = sld [smem:[#allocation19_spill]]  ;;  %s3386_s25 = sld [smem:[#allocation16_spill]] }
 0x9cc   : > { %s3387_s26 = sld [smem:[#allocation17_spill]]  ;;  %s3388_s27 = sld [smem:[#allocation21_spill]] }
 0x9cd   : > { %s3389_s28 = sld [smem:[#allocation18_spill]] }
 0x9d1   : > { %s31_s30 = sadd.s32 1, %s3385_s29   ;;  %s3390_s29 = sld [smem:[#allocation20_spill]] }
 0x9d2   : > { %p28_p5 = scmp.ge.s32.totalorder %s31_s30, 4  }
 0x9d4   :  { %30 = sbr.rel (!%p28_p5) target bundleno = 20 (0x14), region = 179 }
 0x9db   :  { %1799 = vsyncpa [#allocation3], 1 }
 0x9dc   :  { %1801 = vsyncpa [#allocation3 + $0x1], 1 }
 0x9dd   :  { %1802 = vsyncpa [#allocation6], 1 }
 0x9de   :  { %1804 = vsyncpa [#allocation6 + $0x1], 1 }
 0x9df   :  { %1805 = vsyncpa [#allocation9], 1 }
 0x9e0   :  { %1807 = vsyncpa [#allocation9 + $0x1], 1 }
 0x9e1   :  { %1808 = vsyncpa [#allocation4], 1 }
 0x9e2   :  { %1810 = vsyncpa [#allocation4 + $0x1], 1 }

// kernel: tpu_custom_call.1
= control target key start
LH: loop header
LB: loop body
LE: loop exit
PB: predicated region body
PF: predicated region fallthrough
CT: control target
= control target key end

     0   :  { %s3300_s0 = inlined_call_operand.hbm [shape: f32[32,128], index: 0, kind: input, shape index: {}]   ;;  %s3301_s1 = inlined_call_operand.vmem [shape: f32[2,1,128], index: 1, kind: input, shape index: {}]   ;;  %s3302_s2 = inlined_call_operand.vmem [shape: f32[2,1,128], index: 2, kind: input, shape index: {}]   ;;  %s3303_s3 = inlined_call_operand.hbm [shape: bf16[2,128,384], index: 3, kind: input, shape index: {}]   ;;  %s3304_s4 = inlined_call_operand.vmem [shape: f32[2,1,384], index: 4, kind: input, shape index: {}]   ;;  %s3305_s5 = inlined_call_operand.hbm [shape: bf16[2,128,128], index: 5, kind: input, shape index: {}]   ;;  %s3306_s6 = inlined_call_operand.vmem [shape: f32[2,1,128], index: 6, kind: input, shape index: {}]   ;;  %s3307_s7 = inlined_call_operand.vmem [shape: f32[2,1,128], index: 7, kind: input, shape index: {}]   ;;  %s3308_s8 = inlined_call_operand.vmem [shape: f32[2,1,128], index: 8, kind: input, shape index: {}]   ;;  %s3309_s9 = inlined_call_operand.hbm [shape: bf16[2,128,128], index: 9, kind: input, shape index: {}]   ;;  %s3310_s10 = inlined_call_operand.vmem [shape: f32[2,1,128], index: 10, kind: input, shape index: {}]   ;;  %s3311_s11 = inlined_call_operand.hbm [shape: bf16[2,128,128], index: 11, kind: input, shape index: {}]   ;;  %s3312_s12 = inlined_call_operand.vmem [shape: f32[2,1,128], index: 12, kind: input, shape index: {}]   ;;  %s3313_s13 = inlined_call_operand.hbm [shape: f32[32,128], index: 13, kind: output, shape index: {}]  }
   0x1   :  { %3333 = sst [smem:[#allocation23_spill]] %s3300_s0 }
   0x2   :  { %3334 = sst [smem:[#allocation24_spill]] %s3303_s3 }
   0x3   :  { %3335 = sst [smem:[#allocation25_spill]] %s3304_s4 }
   0x4   :  { %3336 = sst [smem:[#allocation26_spill]] %s3305_s5 }
   0x5   :  { %3337 = sst [smem:[#allocation27_spill]] %s3307_s7 }
   0x6   :  { %3338 = sst [smem:[#allocation28_spill]] %s3308_s8 }
   0x7   :  { %3339 = sst [smem:[#allocation29_spill]] %s3309_s9 }
   0x8   :  { %3340 = sst [smem:[#allocation30_spill]] %s3310_s10 }
   0x9   :  { %3341 = sst [smem:[#allocation31_spill]] %s3311_s11 }
   0xa   :  { %3342 = sst [smem:[#allocation32_spill]] %s3312_s12 }
   0xb   :  { %3343 = sst [smem:[#allocation33_spill]] %s3313_s13 }
   0xc   :  { %18 = vsyncpa [#allocation3], 0 }
   0xd   :  { %19 = vsyncpa [#allocation6], 0 }
   0xe   :  { %21 = vsyncpa [#allocation6 + $0x1], 0 }
   0xf   :  { %22 = vsyncpa [#allocation9], 0 }
  0x10   :  { %24 = vsyncpa [#allocation9 + $0x1], 0 }
  0x11   :  { %25 = vsyncpa [#allocation4], 0  ;;  %s2753_s25 = smov 0   ;;  %s2755_s26 = smov 0  }
  0x12   :  { %s2757_s27 = smov 0   ;;  %s2759_s28 = smov 0  }
  0x13   :  { %s2761_s29 = smov 0   ;;  %s2763_s30 = smov 0  }
  0x14 LB: > { %3344 = sst [smem:[#allocation16_spill]] %s2647_s26  ;;  %s40_s14 = sadd.s32 1, %s2659_s29  ;;  %s2663_s30 = sphi %s2763_s30, %s31_s30   ;;  %s2659_s29 = sphi %s2761_s29, %s3390_s29   ;;  %s2655_s28 = sphi %s2759_s28, %s3389_s28   ;;  %s2651_s27 = sphi %s2757_s27, %s3388_s27   ;;  %s2647_s26 = sphi %s2755_s26, %s3387_s26   ;;  %s2643_s25 = sphi %s2753_s25, %s3386_s25  }
  0x15   : > { %3345 = sst [smem:[#allocation17_spill]] %s2651_s27  ;;  %s128_s15 = sadd.s32 1, %s2651_s27 }
  0x16   : > { %3346 = sst [smem:[#allocation18_spill]] %s2659_s29  ;;  %p41_p0 = scmp.ge.s32.totalorder %s40_s14, 2 }
  0x17   : > { %3347 = sst [smem:[#allocation19_spill]] %s2663_s30  ;;  %p135_p1 = scmp.ne.s32.totalorder %s2651_s27, %s2647_s26 }
  0x18   : > { %p136_p2 = scmp.eq.s32.totalorder %s2663_s30, 0  ;;  %s3392_s14 = smov (%p41_p0, %s40_s14), 0 }
  0x19   : > { %3348 = sst [smem:[#allocation20_spill]] %s3392_s14  ;;  %p2273_p4 = scmp.lt.s32.totalorder %s2663_s30, 2 }
  0x1a   : > { %p137_p3 = por %p136_p2, %p135_p1  ;;  %s125_s16 = ssub.s32 %s2659_s29, %s3392_s14 }
  0x1b   : > { %p126_p5 = scmp.eq.s32.totalorder %s125_s16, 0  ;;  %s455_s18 = sand.u32 1, %s2651_s27  }
  0x1c   : > { %s2236_s19 = smul.u32 3072, %s2659_s29  ;;  %s3350_s3 = sld [smem:[#allocation24_spill]] }
  0x1d   : > { %s2797_s20 = scalar_select %p126_p5, %s2651_s27, %s128_s15  }
  0x1e   : > { %s2235_s21 = smul.u32 192, %s455_s18  ;;  %p2804_p6 = pnand %p2273_p4, %p137_p3 }
  0x1f   : > { %3349 = sst [smem:[#allocation21_spill]] %s2797_s20  ;;  %s2810_s15 = sshll.u32 %s455_s18, 6 }
  0x20   : > { %s3351_s13 = scalar_select %p2804_p6, 1, 0 }
  0x21   : > { %s457_s16 = scalar_lea.vmem [#allocation5], %s2235_s21  ;;  %s3352_s14 = sand.u32 1, %s2663_s30  }
  0x22   : > { %s2802_s24 = scalar_lea.hbm %s3350_s3, %s2236_s19  ;;  %s464_s17 = sshll.u32 %s457_s16, 4  ;;  %s2808_s17 = int_to_ptr.vmem [resolvable:$true] %s464_s17 }
  0x23   : > { %s2814_s20 = scalar_lea.sflag [#allocation6], %s3352_s14  ;;  %s2427_s19 = scalar_lea.hbm %s2802_s24, 3072 }
  0x24   : > { %p2428_p7 = scmp.ne.s32.totalorder %s2802_s24, %s2427_s19  ;;  %p2820_p8 = pneg %p2804_p6 }
  0x25   : > { %s2432_s16 = scalar_lea.hbm %s3350_s3, 6144  ;;  %p2433_p11 = scmp.lt.u32.totalorder %s2802_s24, %s3350_s3 }
  0x26   : > { %s3353_s22 = scalar_select %p2820_p8, 1, 0 }
  0x27   : > { %p2430_p9 = pnand %p2820_p8, %p2428_p7  ;;  %p2434_p12 = scmp.lt.u32.totalorder %s2432_s16, %s2427_s19 }
  0x28   : > { %p2436_p0 = scmp.lt.u32.totalorder %s2427_s19, %s2802_s24 }
  0x29   : > { %p2431_p10 = pneg %p2430_p9  ;;  %p2435_p13 = por %p2434_p12, %p2433_p11 }
  0x2b   : > { %p2437_p1 = por %p2436_p0, %p2435_p13 }
  0x2d   : > { %p2438_p2 = pnand %p2437_p1, %p2431_p10 }
  0x2f   : > { %2441 = shalt.err (!%p2438_p2)
}
  0x30   : > { %s2442_s14 = scalar_lea.vmem %s2808_s17, 3072  ;;  %s2665_s21 = smov [#allocation5]  }
  0x31   : > { %p2443_p3 = scmp.ne.s32.totalorder %s2808_s17, %s2442_s14  ;;  %s2447_s23 = sshll.u32 %s2665_s21, 4  ;;  %s2448_s23 = int_to_ptr.vmem [resolvable:$false] %s2447_s23 }
  0x32   : > { %s2449_s27 = scalar_lea.vmem %s2448_s23, 6144  ;;  %p2450_p7 = scmp.lt.s32.totalorder %s2808_s17, %s2448_s23 }
  0x33   : > { %p2445_p4 = pnand %p2443_p3, %p2820_p8  ;;  %p2451_p9 = scmp.lt.s32.totalorder %s2449_s27, %s2442_s14 }
  0x35   : > { %p2446_p5 = pneg %p2445_p4  ;;  %p2452_p11 = por %p2451_p9, %p2450_p7 }
  0x37   : > { %p2453_p12 = pnand %p2452_p11, %p2446_p5 }
  0x39   : > { %2456 = shalt.err (!%p2453_p12)
}
  0x3a   : > { %s2666_s19 = smov 192   ;;  %s2667_s16 = smov 12  }
  0x3b   : > { %2262 = dma.hbm_to_vmem [thread:$0]  (!%p2804_p6), %s2802_s24, 3072, %s2808_s17, %s2814_s20, %s2666_s19, %s2666_s19, %s2667_s16  }
  0x3c   : > { %s2845_s18 = sshll.u32 %s2659_s29, 10  ;;  %s3354_s9 = sld [smem:[#allocation29_spill]] }
  0x3d   : > { %s524_s27 = scalar_lea.vmem [#allocation8], %s2810_s15  ;;  %s3355_s12 = sand.u32 1, %s2663_s30  }
  0x3e   : > { %s531_s3 = sshll.u32 %s524_s27, 4  ;;  %s2858_s10 = scalar_lea.sflag [#allocation9], %s3355_s12  ;;  %s2854_s3 = int_to_ptr.vmem [resolvable:$true] %s531_s3 }
  0x42   : > { %s2851_s23 = scalar_lea.hbm %s3354_s9, %s2845_s18  ;;  %s2462_s16 = scalar_lea.hbm %s3354_s9, 2048 }
  0x43   : > { %s2457_s17 = scalar_lea.hbm %s2851_s23, 1024  ;;  %p2463_p1 = scmp.lt.u32.totalorder %s2851_s23, %s3354_s9 }
  0x44   : > { %p2458_p10 = scmp.ne.s32.totalorder %s2851_s23, %s2457_s17  ;;  %p2464_p2 = scmp.lt.u32.totalorder %s2462_s16, %s2457_s17 }
  0x45   : > { %p2466_p4 = scmp.lt.u32.totalorder %s2457_s17, %s2851_s23 }
  0x46   : > { %p2460_p13 = pnand %p2458_p10, %p2820_p8  ;;  %p2465_p3 = por %p2464_p2, %p2463_p1 }
  0x48   : > { %p2461_p0 = pneg %p2460_p13  ;;  %p2467_p5 = por %p2466_p4, %p2465_p3 }
  0x4a   : > { %p2468_p7 = pnand %p2467_p5, %p2461_p0 }
  0x4c   : > { %2471 = shalt.err (!%p2468_p7)
}
  0x4d   : > { %s2472_s12 = scalar_lea.vmem %s2854_s3, 1024  ;;  %s2668_s27 = smov [#allocation8]  }
  0x4e   : > { %p2473_p9 = scmp.ne.s32.totalorder %s2854_s3, %s2472_s12  ;;  %s2477_s24 = sshll.u32 %s2668_s27, 4  ;;  %s2478_s24 = int_to_ptr.vmem [resolvable:$false] %s2477_s24 }
  0x4f   : > { %s2479_s19 = scalar_lea.vmem %s2478_s24, 2048  ;;  %p2480_p10 = scmp.lt.s32.totalorder %s2854_s3, %s2478_s24 }
  0x50   : > { %p2475_p11 = pnand %p2473_p9, %p2820_p8  ;;  %p2481_p13 = scmp.lt.s32.totalorder %s2479_s19, %s2472_s12 }
  0x52   : > { %p2476_p12 = pneg %p2475_p11  ;;  %p2482_p1 = por %p2481_p13, %p2480_p10 }
  0x54   : > { %p2483_p2 = pnand %p2482_p1, %p2476_p12 }
  0x56   : > { %2486 = shalt.err (!%p2483_p2)
}
  0x57   : > { %s3317_s17 = smov 64   ;;  %s3319_s16 = smov 4  }
  0x58   : > { %2268 = dma.hbm_to_vmem [thread:$0]  (!%p2804_p6), %s2851_s23, 1024, %s2854_s3, %s2858_s10, %s3317_s17, %s3317_s17, %s3319_s16  }
  0x59   : > { %s2886_s21 = sadd.s32 4294967295, %s2663_s30   ;;  %p141_p0 = scmp.ne.s32.totalorder %s2647_s26, %s2643_s25 }
  0x5a   : > { %3356 = sst [smem:[#allocation22_spill]] %s2886_s21  ;;  %p3323_p3 = scmp.eq.s32.totalorder %s2886_s21, 0 }
  0x5b   : > { %p2000_p4 = scmp.ge.s32.totalorder %s2663_s30, 1  ;;  %p412_p5 = scmp.lt.s32.totalorder %s2663_s30, 3 }
  0x5c   : > { %p2895_p7 = por %p3323_p3, %p141_p0  ;;  %s2671_s3 = smov [#allocation2]  }
  0x5d   : > { %p2899_p9 = pnand %p2000_p4, %p412_p5  ;;  %s427_s23 = sshll.u32 %s2671_s3, 4  ;;  %s2903_s23 = int_to_ptr.vmem [resolvable:$true] %s427_s23 }
  0x5e   : > { %s3357_s14 = scalar_select %p2895_p7, 1, 0 }
  0x5f   : > { %s3358_s12 = scalar_select %p2899_p9, 1, 0 }
  0x60   : > { %p2255_p11 = pneg %p2899_p9  ;;  %s3359_s5 = sld [smem:[#allocation26_spill]] }
  0x61   : > { %s485_s17 = scalar_lea.vmem [#allocation7], %s2810_s15  ;;  %s3361_s11 = sld [smem:[#allocation31_spill]] }
  0x62   : > { %p2915_p12 = pnand %p2255_p11, %p3323_p3  ;;  %s492_s16 = sshll.u32 %s485_s17, 4  ;;  %s2920_s16 = int_to_ptr.vmem [resolvable:$true] %s492_s16 }
  0x63   : > { %s3362_s0 = sld [smem:[#allocation23_spill]] }
  0x64   : > { %p2489_p13 = pneg %p2915_p12 }
  0x66   : > { %s2911_s24 = scalar_lea.hbm %s3359_s5, %s2845_s18 }
  0x67   : > { %s2926_s29 = scalar_lea.hbm %s3361_s11, %s2845_s18 }
  0x69   : > { %s2487_s25 = scalar_lea.hbm %s3362_s0, 512 }
  0x6a   : > { %p2488_p10 = scmp.ne.s32.totalorder %s3362_s0, %s2487_s25  ;;  %p2494_p0 = scmp.lt.u32.totalorder %s2487_s25, %s3362_s0 }
  0x6c   : > { %p2490_p1 = pnand %p2489_p13, %p2488_p10 }
  0x6e   : > { %p2491_p2 = pneg %p2490_p1 }
  0x70   : > { %p2496_p4 = pnand %p2494_p0, %p2491_p2 }
  0x72   : > { %2499 = shalt.err (!%p2496_p4)
}
  0x73   : > { %s2500_s9 = scalar_lea.vmem %s2903_s23, 512  ;;  %p2508_p7 = scmp.lt.s32.totalorder %s2903_s23, %s2903_s23 }
  0x74   : > { %p2501_p5 = scmp.ne.s32.totalorder %s2903_s23, %s2500_s9  ;;  %p2509_p9 = scmp.lt.s32.totalorder %s2500_s9, %s2500_s9 }
  0x76   : > { %p2503_p11 = pnand %p2501_p5, %p2489_p13  ;;  %p2510_p6 = por %p2509_p9, %p2508_p7 }
  0x78   : > { %p2504_p3 = pneg %p2503_p11 }
  0x7a   : > { %p2511_p8 = pnand %p2510_p6, %p2504_p3 }
  0x7c   : > { %2514 = shalt.err (!%p2511_p8)
}
  0x7d   : > { %s2672_s4 = smov 128   ;;  %s2673_s7 = smov 8  }
  0x7e   : > { %2258 = dma.hbm_to_vmem [thread:$0]  (!%p2915_p12), %s3362_s0, 512, %s2903_s23, [#allocation3], %s2672_s4, %s2672_s4, %s2673_s7  }
  0x7f   : > { %s2515_s18 = scalar_lea.hbm %s2911_s24, 1024  ;;  %p3363_p13 = scmp.ne.s32.totalorder %s3353_s22, 0 }
  0x80   : > { %p2516_p10 = scmp.ne.s32.totalorder %s2911_s24, %s2515_s18  ;;  %s2520_s27 = scalar_lea.hbm %s3359_s5, 2048 }
  0x81   : > { %p2521_p8 = scmp.lt.u32.totalorder %s2911_s24, %s3359_s5  ;;  %p2522_p3 = scmp.lt.u32.totalorder %s2520_s27, %s2515_s18 }
  0x82   : > { %p2518_p7 = pnand %p2516_p10, %p3363_p13  ;;  %p2524_p1 = scmp.lt.u32.totalorder %s2515_s18, %s2911_s24 }
  0x83   : > { %p2523_p9 = por %p2522_p3, %p2521_p8 }
  0x84   : > { %p2519_p6 = pneg %p2518_p7 }
  0x85   : > { %p2525_p2 = por %p2524_p1, %p2523_p9 }
  0x87   : > { %p2526_p0 = pnand %p2525_p2, %p2519_p6 }
  0x89   : > { %2529 = shalt.err (!%p2526_p0)
}
  0x8a   : > { %s2530_s23 = scalar_lea.vmem %s2920_s16, 1024  ;;  %s2674_s19 = smov [#allocation7]  }
  0x8b   : > { %p2531_p12 = scmp.ne.s32.totalorder %s2920_s16, %s2530_s23  ;;  %s2535_s4 = sshll.u32 %s2674_s19, 4  ;;  %s2536_s4 = int_to_ptr.vmem [resolvable:$false] %s2535_s4 }
  0x8c   : > { %s2537_s7 = scalar_lea.vmem %s2536_s4, 2048  ;;  %p2538_p11 = scmp.lt.s32.totalorder %s2920_s16, %s2536_s4 }
  0x8d   : > { %p2533_p4 = pnand %p2531_p12, %p3363_p13  ;;  %p2539_p10 = scmp.lt.s32.totalorder %s2537_s7, %s2530_s23 }
  0x8f   : > { %p2534_p5 = pneg %p2533_p4  ;;  %p2540_p7 = por %p2539_p10, %p2538_p11 }
  0x91   : > { %p2541_p8 = pnand %p2540_p7, %p2534_p5 }
  0x93   : > { %2544 = shalt.err (!%p2541_p8)
}
  0x94   : > { %p3364_p6 = scmp.ne.s32.totalorder %s3351_s13, 0  ;;  %s3365_s8 = smov 4  }
  0x95   : > { %s3366_s30 = smov 64   ;;  %s551_s18 = scalar_lea.vmem [#allocation10], %s2810_s15 }
  0x96   : > { %2265 = dma.hbm_to_vmem [thread:$0]  (!%p3364_p6), %s2911_s24, 1024, %s2920_s16, %s2814_s20, %s3366_s30, %s3366_s30, %s3365_s8  }
  0x97   : > { %s558_s3 = sshll.u32 %s551_s18, 4  ;;  %s2545_s25 = scalar_lea.hbm %s2926_s29, 1024  ;;  %s2975_s3 = int_to_ptr.vmem [resolvable:$true] %s558_s3 }
  0x98   : > { %p2546_p3 = scmp.ne.s32.totalorder %s2926_s29, %s2545_s25  ;;  %s2550_s9 = scalar_lea.hbm %s3361_s11, 2048 }
  0x99   : > { %p2551_p2 = scmp.lt.u32.totalorder %s2926_s29, %s3361_s11  ;;  %p2552_p0 = scmp.lt.u32.totalorder %s2550_s9, %s2545_s25 }
  0x9a   : > { %p2548_p9 = pnand %p2546_p3, %p3363_p13  ;;  %p2554_p4 = scmp.lt.u32.totalorder %s2545_s25, %s2926_s29 }
  0x9b   : > { %p2553_p12 = por %p2552_p0, %p2551_p2 }
  0x9c   : > { %p2549_p1 = pneg %p2548_p9 }
  0x9d   : > { %p2555_p5 = por %p2554_p4, %p2553_p12 }
  0x9f   : > { %p2556_p11 = pnand %p2555_p5, %p2549_p1 }
  0xa1   : > { %2559 = shalt.err (!%p2556_p11)
}
  0xa2   : > { %s2560_s20 = scalar_lea.vmem %s2975_s3, 1024  ;;  %s2675_s15 = smov [#allocation10]  }
  0xa3   : > { %p2561_p10 = scmp.ne.s32.totalorder %s2975_s3, %s2560_s20  ;;  %s2565_s16 = sshll.u32 %s2675_s15, 4  ;;  %s2566_s16 = int_to_ptr.vmem [resolvable:$false] %s2565_s16 }
  0xa4   : > { %s2567_s24 = scalar_lea.vmem %s2566_s16, 2048  ;;  %p2568_p3 = scmp.lt.s32.totalorder %s2975_s3, %s2566_s16 }
  0xa5   : > { %p2563_p7 = pnand %p2561_p10, %p3363_p13  ;;  %p2569_p9 = scmp.lt.s32.totalorder %s2567_s24, %s2560_s20 }
  0xa7   : > { %p2564_p8 = pneg %p2563_p7  ;;  %p2570_p2 = por %p2569_p9, %p2568_p3 }
  0xa9   : > { %p2571_p0 = pnand %p2570_p2, %p2564_p8 }
  0xab   : > { %2574 = shalt.err (!%p2571_p0)
}
  0xac   : > { %2271 = dma.hbm_to_vmem [thread:$0]  (!%p3364_p6), %s2926_s29, 1024, %s2975_s3, %s2858_s10, %s3366_s30, %s3366_s30, %s3365_s8  }
  0xad   : > { %p3367_p13 = scmp.ne.s32.totalorder %s3358_s12, 0 }
  0xae   : > { %p3368_p1 = scmp.eq.s32.totalorder (!%p3367_p13), %s2886_s21, 0 }
  0xaf   : > { %576 = sbr.rel (%p3367_p13) target bundleno = 2507 (0x9cb), region = 72 }
  0xb6   : > { %2626 = dma.done.wait (%p3368_p1), [#allocation3], 512   ;;  %p3369_p12 = pmov %p3368_p1 }
  0xb7   : > { %s582_s13 = sand.u32 1, %s2886_s21   ;;  %s584_s22 = sand.u32 1, %s2647_s26  }
  0xb8   : > { %2628 = vsyncadd (%p3369_p12), [#allocation3], 4294966784  ;;  %s2237_s4 = smul.u32 192, %s584_s22  ;;  %s583_s7 = scalar_lea.sflag [#allocation6], %s582_s13 }
  0xb9   : > { %p3370_p4 = scmp.ne.s32.totalorder %s3357_s14, 0 }
  0xba   : > { %s3010_s18 = scalar_lea.vmem [#allocation5], %s2237_s4 }
  0xbb   : > { %2630 = dma.done.wait (%p3370_p4), %s583_s7, 4096  }
  0xbc   : > { %2632 = vsyncadd (%p3370_p4), %s583_s7, 4294963200  ;;  %s2015_s10 = sshll.u32 %s584_s22, 6  ;;  %s601_s12 = scalar_lea.sflag [#allocation9], %s582_s13 }
  0xbd   : > { %s3016_s29 = scalar_lea.vmem [#allocation7], %s2015_s10  ;;  %s3018_s8 = scalar_lea.vmem [#allocation8], %s2015_s10 }
  0xbe   : > { %2634 = dma.done.wait (%p3370_p4), %s601_s12, 2048  }
  0xbf   : > { %2636 = vsyncadd (%p3370_p4), %s601_s12, 4294965248  ;;  %p692_p6 = scmp.lt.s32.totalorder %s2655_s28, 1  ;;  %s3371_s13 = sld [smem:[#allocation27_spill]] }
  0xc0   : > { %s3372_s12 = sld [smem:[#allocation28_spill]]  ;;  %s3373_s27 = sld [smem:[#allocation25_spill]] }
  0xc1   : > { %s3026_s30 = scalar_select %p692_p6, %s2655_s28, 1 }
  0xc2   : > { %s3374_s9 = sld [smem:[#allocation30_spill]]  ;;  %s3375_s20 = sld [smem:[#allocation32_spill]] }
  0xc3   : > { %s2238_s23 = smul.u32 3, %s3026_s30  ;;  %s3062_s21 = scalar_lea.vmem [#allocation10], %s2015_s10 }
  0xc4   : > { %p2018_p5 = scmp.ne.s32.totalorder %s2655_s28, 0 }
  0xc5   : > { %s707_s22 = scalar_lea.vmem %s3371_s13, %s3026_s30  ;;  %v723_v0 = vld [vmem:[#allocation2] sm:$0xff] (!%p2018_p5)  ;;  %v724_v1 = vld [vmem:[#allocation2 + $0x8] sm:$0xff] (!%p2018_p5)  ;;  %v725_v2 = vld [vmem:[#allocation2 + $0x10] sm:$0xff] (!%p2018_p5) }
  0xc6   : > { %s710_s3 = scalar_lea.vmem %s3372_s12, %s3026_s30  ;;  %s3052_s5 = scalar_lea.vmem %s3373_s27, %s2238_s23  ;;  %727 = vst [vmem:[#allocation11] sm:$0xff] (!%p2018_p5), %v723_v0  ;;  %728 = vst [vmem:[#allocation11 + $0x8] sm:$0xff] (!%p2018_p5), %v724_v1  ;;  %v726_v3 = vld [vmem:[#allocation2 + $0x18] sm:$0xff] (!%p2018_p5) }
  0xc7   : > { %722 = sbr.rel (%p2018_p5) target bundleno = 206 (0xce), region = 96  ;;  %729 = vst [vmem:[#allocation11 + $0x10] sm:$0xff] (!%p2018_p5), %v725_v2  ;;  %730 = vst [vmem:[#allocation11 + $0x18] sm:$0xff] (!%p2018_p5), %v726_v3 }
  0xc8   : > { %s713_s11 = scalar_lea.vmem %s3374_s9, %s3026_s30  ;;  %s716_s15 = scalar_lea.vmem %s3375_s20, %s3026_s30 }
  0xce PF: > { %v3065_v4 = vld [vmem:[#allocation11] sm:$0xff]  ;;  %v3067_v5 = vld [vmem:[#allocation11 + $0x10] sm:$0xff]  ;;  %v3069_v6 = vld [vmem:[#allocation11 + $0x8] sm:$0xff]  ;;  %v753_v12 = vlaneseq  ;;  %v2676_v49 = vmov 0   ;;  %s3376_s28 = scalar_lea.vmem %s3301_s1, %s3026_s30  ;;  %s3377_s27 = scalar_lea.vmem %s3302_s2, %s3026_s30  ;;  %vm2678_vm1 = vmmov 0   ;;  %vm1187_vm7 = vcmask 130048  }
  0xcf   : > { %737 = vadd.xlane.f32.xlu0 %v3065_v4  ;;  %741 = vadd.xlane.f32.xlu1 %v3067_v5  ;;  %v3073_v7 = vld [vmem:[#allocation11 + $0x18] sm:$0xff]  ;;  %v2339_v8 = vld [vmem:[%s3010_s18 + $0x4] ss:$12 sps:$4 sm:$0xff]   ;;  %v2341_v9 = vld [vmem:[%s3010_s18] ss:$12 sps:$4 sm:$0xff]   ;;  %s3378_s23 = scalar_lea.vmem %s3306_s6, %s3026_s30  ;;  %s3383_s25 = sld [smem:[#allocation22_spill]] }
  0xd0   : > { %v2342_v10 = vld [vmem:[%s3010_s18 + $0x1c] ss:$12 sps:$4 sm:$0xff]   ;;  %987 = vmatprep.subr.bf16.mxu0 %v2339_v8  ;;  %v3082_v13 = vand.u32 127, %v753_v12  ;;  %v2345_v34 = vld [vmem:[%s3010_s18 + $0x18] ss:$12 sps:$4 sm:$0xff]   ;;  %1019 = vmatprep.mubr.bf16.mxu0 %v2676_v49  ;;  %s2680_s17 = smov [#allocation11]  }
  0xd1   : > { %v2344_v11 = vld [vmem:[%s3010_s18 + $0x8] ss:$12 sps:$4 sm:$0xff]   ;;  %988 = vmatpush1.bf16.msra.mxu0 %v2341_v9  ;;  %v2348_v36 = vld [vmem:[%s3010_s18 + $0x20] ss:$12 sps:$4 sm:$0xff]   ;;  %v2349_v37 = vld [vmem:[%s3010_s18 + $0x30] ss:$12 sps:$4 sm:$0xff]  }
  0xd2   : > { %2131 = vmatprep.subr.bf16.mxu1 %v2344_v11  ;;  %989 = vmatprep.subr.bf16.mxu0 %v2342_v10  ;;  %vm755_vm0 = vcmp.lt.s32.totalorder %v3082_v13, 32  ;;  %v2346_v35 = vld [vmem:[%s3010_s18 + $0x34] ss:$12 sps:$4 sm:$0xff]   ;;  %v2350_v38 = vld [vmem:[%s3010_s18 + $0x4c] ss:$12 sps:$4 sm:$0xff]   ;;  %vm1100_vm3 = vcmp.lt.s32.totalorder %v3082_v13, 16 }
  0xd3   : > { %739 = vadd.xlane.f32.xlu0 %v3069_v6  ;;  %743 = vadd.xlane.f32.xlu1 %v3073_v7  ;;  %v2352_v39 = vld [vmem:[%s3010_s18 + $0x38] ss:$12 sps:$4 sm:$0xff]   ;;  %v2353_v40 = vld [vmem:[%s3010_s18 + $0x48] ss:$12 sps:$4 sm:$0xff]   ;;  %v2356_v42 = vld [vmem:[%s3010_s18 + $0x50] ss:$12 sps:$4 sm:$0xff]  }
  0xd4   : > { %2132 = vmatpush3.bf16.msra.mxu1 %v2344_v11  ;;  %v2354_v41 = vld [vmem:[%s3010_s18 + $0x64] ss:$12 sps:$4 sm:$0xff]   ;;  %v2357_v43 = vld [vmem:[%s3010_s18 + $0x60] ss:$12 sps:$4 sm:$0xff]   ;;  %v2358_v44 = vld [vmem:[%s3010_s18 + $0x7c] ss:$12 sps:$4 sm:$0xff]  }
  0xd5   : > { %990 = vmatpush1.bf16.msra.mxu0 %v2345_v34  ;;  %2133 = vmatprep.subr.bf16.mxu1 %v2348_v36  ;;  %v2360_v45 = vld [vmem:[%s3010_s18 + $0x68] ss:$12 sps:$4 sm:$0xff]   ;;  %v2361_v46 = vld [vmem:[%s3010_s18 + $0x78] ss:$12 sps:$4 sm:$0xff]   ;;  %v2364_v48 = vld [vmem:[%s3010_s18 + $0x80] ss:$12 sps:$4 sm:$0xff]  }
  0xd6   : > { %991 = vmatprep.subr.bf16.mxu0 %v2346_v35  ;;  %v2362_v47 = vld [vmem:[%s3010_s18 + $0x94] ss:$12 sps:$4 sm:$0xff]   ;;  %v2365_v50 = vld [vmem:[%s3010_s18 + $0x90] ss:$12 sps:$4 sm:$0xff]   ;;  %v2366_v51 = vld [vmem:[%s3010_s18 + $0xac] ss:$12 sps:$4 sm:$0xff]  }
  0xd7   : > { %v2368_v52 = vld [vmem:[%s3010_s18 + $0x98] ss:$12 sps:$4 sm:$0xff]   ;;  %v2369_v53 = vld [vmem:[%s3010_s18 + $0xa8] ss:$12 sps:$4 sm:$0xff]   ;;  %v2370_v54 = vld [vmem:[%s3010_s18 + $0xb0] ss:$12 sps:$4 sm:$0xff]  }
  0xd8   : > { %2134 = vmatpush3.bf16.msra.mxu1 %v2348_v36  ;;  %v2019_v9 = vld [vmem:[%s3376_s28] ss:$0 sm:$0xff]  ;;  %s1783_s14 = sshll.u32 %s2680_s17, 4  ;;  %p2275_p11 = scmp.eq.s32.totalorder %s3383_s25, 1  ;;  %s1784_s14 = int_to_ptr.vmem [resolvable:$true] %s1783_s14 }
  0xd9   : > { %992 = vmatpush1.bf16.msra.mxu0 %v2349_v37  ;;  %2135 = vmatprep.subr.bf16.mxu1 %v2352_v39  ;;  %s2575_s30 = scalar_lea.vmem %s1784_s14, 512  ;;  %p2582_p3 = scmp.lt.s32.totalorder %s1784_s14, %s1784_s14 }
  0xda   : > { %993 = vmatprep.subr.bf16.mxu0 %v2350_v38  ;;  %p2576_p10 = scmp.ne.s32.totalorder %s1784_s14, %s2575_s30  ;;  %p2583_p9 = scmp.lt.s32.totalorder %s2575_s30, %s2575_s30 }
  0xdc   : > { %2136 = vmatpush3.bf16.msra.mxu1 %v2352_v39  ;;  %p2577_p7 = pnand %p2576_p10, %p2275_p11  ;;  %p2584_p2 = por %p2583_p9, %p2582_p3 }
  0xdd   : > { %994 = vmatpush1.bf16.msra.mxu0 %v2353_v40  ;;  %2137 = vmatprep.subr.bf16.mxu1 %v2356_v42 }
  0xde   : > { %995 = vmatprep.subr.bf16.mxu0 %v2354_v41  ;;  %p2578_p8 = pneg %p2577_p7 }
  0xe0   : > { %2138 = vmatpush3.bf16.msra.mxu1 %v2356_v42  ;;  %p2585_p0 = pnand %p2584_p2, %p2578_p8 }
  0xe1   : > { %996 = vmatpush1.bf16.msra.mxu0 %v2357_v43  ;;  %2139 = vmatprep.subr.bf16.mxu1 %v2360_v45 }
  0xe2   : > { %997 = vmatprep.subr.bf16.mxu0 %v2358_v44 }
  0xe4   : > { %2140 = vmatpush3.bf16.msra.mxu1 %v2360_v45 }
  0xe5   : > { %998 = vmatpush1.bf16.msra.mxu0 %v2361_v46  ;;  %2141 = vmatprep.subr.bf16.mxu1 %v2364_v48 }
  0xe6   : > { %999 = vmatprep.subr.bf16.mxu0 %v2362_v47 }
  0xe8   : > { %2142 = vmatpush3.bf16.msra.mxu1 %v2364_v48 }
  0xe9   : > { %1000 = vmatpush1.bf16.msra.mxu0 %v2365_v50  ;;  %2143 = vmatprep.subr.bf16.mxu1 %v2368_v52 }
  0xea   : > { %1001 = vmatprep.subr.bf16.mxu0 %v2366_v51 }
  0xec   : > { %2144 = vmatpush3.bf16.msra.mxu1 %v2368_v52 }
  0xed   : > { %1002 = vmatpush1.bf16.msra.mxu0 %v2369_v53  ;;  %2145 = vmatprep.subr.bf16.mxu1 %v2370_v54 }
  0xf0   : > { %2146 = vmatpush3.bf16.msra.mxu1 %v2370_v54 }
 0x15c   : > { %v738_v14 = vpop.xlane.xlu0 %737  ;;  %v742_v15 = vpop.xlane.xlu1 %741 }
 0x15d   : > { %v745_v16 = vmul.f32 0.03125, %v738_v14  ;;  %v747_v17 = vmul.f32 0.03125, %v742_v15 }
 0x15f   : > { %v3086_v18 = vsub.f32 %v3065_v4, %v745_v16  ;;  %v3089_v19 = vsub.f32 %v3067_v5, %v747_v17  ;;  %v2020_v16 = vld [vmem:[%s3377_s27] ss:$0 sm:$0xff] }
 0x160   : > { %v740_v20 = vpop.xlane.xlu0 %739  ;;  %v744_v21 = vpop.xlane.xlu1 %743 }
 0x161   : > { %v746_v22 = vmul.f32 0.03125, %v740_v20  ;;  %v748_v23 = vmul.f32 0.03125, %v744_v21  ;;  %v756_v24 = vsel %vm755_vm0, %v3086_v18, 0.0  ;;  %v758_v25 = vsel %vm755_vm0, %v3089_v19, 0.0 }
 0x162   : > { %v760_v26 = vmul.f32 %v756_v24, %v756_v24  ;;  %v762_v29 = vmul.f32 %v758_v25, %v758_v25 }
 0x163   : > { %v3098_v27 = vsub.f32 %v3069_v6, %v746_v22  ;;  %v3101_v28 = vsub.f32 %v3073_v7, %v748_v23 }
 0x164   : > { %764 = vadd.xlane.f32.xlu0 %v760_v26 }
 0x165   : > { %v757_v30 = vsel %vm755_vm0, %v3098_v27, 0.0  ;;  %v759_v31 = vsel %vm755_vm0, %v3101_v28, 0.0 }
 0x166   : > { %v761_v32 = vmul.f32 %v757_v30, %v757_v30  ;;  %v763_v33 = vmul.f32 %v759_v31, %v759_v31  ;;  %v2677_v31 = vmov 0.0  }
 0x167   : > { %2151 = vmatprep.subr.bf16.mxu0 %v2677_v31  ;;  %2163 = vmatprep.subr.bf16.mxu1 %v2677_v31 }
 0x168   : > { %768 = vadd.xlane.f32.xlu0 %v762_v29  ;;  %766 = vadd.xlane.f32.xlu1 %v761_v32  ;;  %v842_v32 = vld [vmem:[%s3052_s5] sm:$0x7] }
 0x16c   : > { %770 = vadd.xlane.f32.xlu1 %v763_v33 }
 0x1f1   : > { %v765_v55 = vpop.xlane.xlu0 %764 }
 0x1f2   : > { %v772_v56 = vmul.f32 0.03125, %v765_v55 }
 0x1f4   : > { %v776_v57 = vadd.f32 1e-05, %v772_v56 }
 0x1f5   : > { %v767_v58 = vpop.xlane.xlu1 %766  ;;  %v769_v59 = vpop.xlane.xlu0 %768 }
 0x1f6   : > { %2395 = vrsqrt.f32 %v776_v57  ;;  %v773_v60 = vmul.f32 0.03125, %v767_v58  ;;  %v774_v61 = vmul.f32 0.03125, %v769_v59 }
 0x1f8   : > { %v777_v62 = vadd.f32 1e-05, %v773_v60  ;;  %v778_v63 = vadd.f32 1e-05, %v774_v61 }
 0x1f9   : > { %v771_v0 = vpop.xlane.xlu1 %770 }
 0x1fa   : > { %2397 = vrsqrt.f32 %v777_v62  ;;  %v775_v1 = vmul.f32 0.03125, %v771_v0 }
 0x1fb   : > { %2399 = vrsqrt.f32 %v778_v63 }
 0x1fc   : > { %v779_v2 = vadd.f32 1e-05, %v775_v1 }
 0x1fe   : > { %2401 = vrsqrt.f32 %v779_v2 }
 0x200   : > { %v2396_v3 = vpop.eup %2395 }
 0x201   : > { %v784_v8 = vmul.f32 %v2396_v3, %v3086_v18 }
 0x203   : > { %v794_v15 = vmul.f32 %v2019_v9, %v784_v8  ;;  %v2679_v8 = vmov -1e+30  }
 0x204   : > { %v2398_v10 = vpop.eup %2397 }
 0x205   : > { %v2400_v11 = vpop.eup %2399  ;;  %v785_v14 = vmul.f32 %v2398_v10, %v3098_v27  ;;  %v804_v18 = vadd.f32 %v2020_v16, %v794_v15 }
 0x206   : > { %v786_v17 = vmul.f32 %v2400_v11, %v3089_v19  ;;  %v845_v19 = vshrl.u32 %v753_v12, 7 }
 0x207   : > { %v795_v20 = vmul.f32 %v2019_v9, %v785_v14 }
 0x208   : > { %v2402_v21 = vpop.eup %2401  ;;  %v796_v24 = vmul.f32 %v2019_v9, %v786_v17  ;;  %v850_v33 = vsub.s32 1, %v845_v19  ;;  %v854_v35 = vsub.s32 2, %v845_v19  ;;  %v1097_v3 = vadd.s32 8, %v845_v19 }
 0x209   : > { %v805_v22 = vadd.f32 %v2020_v16, %v795_v20  ;;  %v787_v23 = vmul.f32 %v2402_v21, %v3101_v28  ;;  %v846_v28 = vsub.s32 0, %v845_v19  ;;  %vm1098_vm2 = vcmp.le.s32.totalorder %v3082_v13, %v845_v19 }
 0x20a   : > { %v806_v27 = vadd.f32 %v2020_v16, %v796_v24  ;;  %v851_v37 = vrot.slane %v842_v32, %v850_v33  ;;  %v855_v43 = vrot.slane %v842_v32, %v854_v35  ;;  %vm1099_vm4 = vcmp.le.s32.totalorder %v3082_v13, %v1097_v3  ;;  %vm1101_vm5 = vmand %vm1098_vm2, %vm1100_vm3  ;;  %v2376_v3 = vld [vmem:[%s3016_s29 + $0x28] sm:$0xff]  }
 0x20b   : > { %v808_v25 = vpack.c.bf16 %v805_v22, %v804_v18  ;;  %v797_v26 = vmul.f32 %v2019_v9, %v787_v23  ;;  %v847_v34 = vrot.slane %v842_v32, %v846_v28  ;;  %vm1102_vm6 = vmand %vm1099_vm4, %vm1100_vm3  ;;  %v1103_v9 = vsel %vm1101_vm5, 0.0, %v2679_v8  ;;  %v2384_v13 = vld [vmem:[%s3018_s8 + $0x28] sm:$0xff]  }
 0x20c   : > { %v1104_v11 = vsel %vm1102_vm6, 0.0, %v2679_v8  ;;  %v2377_v8 = vld [vmem:[%s3016_s29 + $0x30] sm:$0xff]  }
 0x20d   : > { %1020 = vmatmul.mubr.bf16.vlgmr.msra.gmra.mrb[0].mxu0 %v808_v25  ;;  %2147 = vmatprep.mubr.bf16.mxu1 %v808_v25  ;;  %v807_v29 = vadd.f32 %v2020_v16, %v797_v26 }
 0x20e   : > { %1029 = vmatprep.mubr.bf16.mxu0 %v2676_v49 }
 0x20f   : > { %v809_v30 = vpack.c.bf16 %v807_v29, %v806_v27 }
 0x211   : > { %2148 = vmatmul.mubr.bf16.vlgmr.msra.gmra.mrb[0].mxu1 %v809_v30 }
 0x212   : > { %2165 = vmatprep.mubr.msk.bf16.mxu1 %vm2678_vm1, %v2677_v31 }
 0x215   : > { %1030 = vmatmul.mubr.bf16.gmra.mrb[4].mxu0 %v809_v30 }
 0x216   : > { %2153 = vmatprep.mubr.msk.bf16.mxu0 %vm2678_vm1, %v2677_v31 }
 0x2e0   : > { %v1021_v36 = vpop.f32.mrb[0].mxu0 }
 0x2e1   : > { %v1023_v38 = vpop.f32.mrb[1].mxu0  ;;  %v1022_v40 = vadd.f32 %v1021_v36, %v847_v34 }
 0x2e2   : > { %v1025_v39 = vpop.f32.mrb[2].mxu0  ;;  %v1024_v44 = vadd.f32 %v1023_v38, %v851_v37 }
 0x2e3   : > { %v1026_v41 = vadd.f32 %v1025_v39, %v847_v34  ;;  %v1027_v42 = vpop.f32.mrb[3].mxu0 }
 0x2e4   : > { %v1028_v45 = vadd.f32 %v1027_v42, %v851_v37  ;;  %v2149_v46 = vpop.f32.mrb[0].mxu1 }
 0x2e5   : > { %v1089_v47 = vpack.c.bf16 %v1026_v41, %v1022_v40  ;;  %v1074_v48 = vpop.f32.mrb[1].mxu1  ;;  %v1083_v50 = vadd.f32 %v2149_v46, %v855_v43 }
 0x2e6   : > { %v1091_v49 = vpack.c.bf16 %v1028_v45, %v1024_v44  ;;  %v2150_v12 = vpop.f32.mrb[2].mxu1  ;;  %v1075_v53 = vadd.f32 %v1074_v48, %v855_v43 }
 0x2e7   : > { %v1086_v51 = vadd.f32 %v2150_v12, %v855_v43  ;;  %v1077_v52 = vpop.f32.mrb[3].mxu1 }
 0x2e8   : > { %v1078_v54 = vadd.f32 %v1077_v52, %v855_v43  ;;  %v1031_v55 = vpop.f32.mrb[4].mxu0  ;;  %2152 = vmatpush3.bf16.xpose.msra.mxu0 %v1091_v49  ;;  %v2371_v49 = vld [vmem:[%s3016_s29] sm:$0xff]  }
 0x2e9   : > { %v1094_v56 = vpack.c.bf16 %v1086_v51, %v1083_v50  ;;  %v1033_v57 = vpop.f32.mrb[5].mxu0  ;;  %2157 = vmatprep.subr.bf16.mxu0 %v2677_v31  ;;  %v1032_v60 = vadd.f32 %v1031_v55, %v847_v34 }
 0x2ea   : > { %v1093_v58 = vpack.c.bf16 %v1078_v54, %v1075_v53  ;;  %v1035_v59 = vpop.f32.mrb[6].mxu0  ;;  %v1034_v63 = vadd.f32 %v1033_v57, %v851_v37 }
 0x2eb   : > { %v1036_v61 = vadd.f32 %v1035_v59, %v847_v34  ;;  %v1037_v62 = vpop.f32.mrb[7].mxu0 }
 0x2ec   : > { %v1038_v0 = vadd.f32 %v1037_v62, %v851_v37  ;;  %2164 = vmatpush3.bf16.msra.mxu1 %v1093_v58  ;;  %v2372_v58 = vld [vmem:[%s3016_s29 + $0x8] sm:$0xff]  }
 0x2ed   : > { %v1090_v1 = vpack.c.bf16 %v1036_v61, %v1032_v60  ;;  %2175 = vmatprep.subr.bf16.mxu1 %v2371_v49  ;;  %v2373_v60 = vld [vmem:[%s3016_s29 + $0x10] sm:$0xff]  }
 0x2ee   : > { %v1092_v2 = vpack.c.bf16 %v1038_v0, %v1034_v63 }
 0x2ef   : > { %2154 = vmatmul.mubr.bf16.vlgmr.msra.gmra.mrb[8].mxu0 %v1089_v47 }
 0x2f0   : > { %2158 = vmatpush3.bf16.xpose.msra.mxu0 %v1092_v2  ;;  %2159 = vmatprep.mubr.msk.bf16.mxu0 %vm2678_vm1, %v2677_v31  ;;  %v2375_v2 = vld [vmem:[%s3016_s29 + $0x20] sm:$0xff]  }
 0x2f1   : > { %2169 = vmatprep.subr.bf16.mxu0 %v2677_v31 }
 0x2f7   : > { %2160 = vmatmul.mubr.bf16.vlgmr.msra.gmra.mrb[12].mxu0 %v1090_v1  ;;  %v2374_v1 = vld [vmem:[%s3016_s29 + $0x18] sm:$0xff]  }
 0x2f8   : > { %2170 = vmatpush3.bf16.msra.mxu0 %v1094_v56  ;;  %2171 = vmatprep.mubr.msk.bf16.mxu0 %vm2678_vm1, %v2677_v31 }
 0x3c2   : > { %v1139_v10 = vpop.f32.mrb[8].mxu0 }
 0x3c3   : > { %v1140_v14 = vadd.f32 %v1139_v10, %v1103_v9  ;;  %v2155_v15 = vpop.f32.mrb[9].mxu0 }
 0x3c4   : > { %v1142_v16 = vpop.f32.mrb[10].mxu0 }
 0x3c5   : > { %v1143_v17 = vadd.f32 %v1142_v16, %v1104_v11  ;;  %v2156_v20 = vpop.f32.mrb[11].mxu0  ;;  %v1188_v21 = vsel %vm1187_vm7, %v1140_v14, -inf }
 0x3c6   : > { %1189 = vmax.xlane.f32.xlu0 %v1188_v21 }
 0x3c7   : > { %v1191_v18 = vsel %vm1187_vm7, %v1143_v17, -inf }
 0x3c8   : > { %1192 = vmax.xlane.f32.xlu1 %v1191_v18 }
 0x3ca   : > { %v1180_v22 = vpop.f32.mrb[12].mxu0 }
 0x3cb   : > { %v1181_v23 = vadd.f32 %v1180_v22, %v1103_v9  ;;  %v2161_v24 = vpop.f32.mrb[13].mxu0  ;;  %v2378_v9 = vld [vmem:[%s3016_s29 + $0x38] sm:$0xff]  }
 0x3cc   : > { %v1183_v25 = vpop.f32.mrb[14].mxu0 }
 0x3cd   : > { %v1184_v26 = vadd.f32 %v1183_v25, %v1104_v11  ;;  %v2162_v27 = vpop.f32.mrb[15].mxu0  ;;  %v1194_v29 = vsel %vm1187_vm7, %v1181_v23, -inf }
 0x3ce   : > { %1195 = vmax.xlane.f32.xlu0 %v1194_v29 }
 0x3cf   : > { %v1197_v30 = vsel %vm1187_vm7, %v1184_v26, -inf }
 0x3d0   : > { %1198 = vmax.xlane.f32.xlu1 %v1197_v30 }
 0x453   : > { %v1190_v31 = vpop.xlane.xlu0 %1189 }
 0x454   : > { %v1200_v19 = vsub.f32 %v1140_v14, %v1190_v31 }
 0x455   : > { %v1193_v28 = vpop.xlane.xlu1 %1192 }
 0x456   : > { %v1204_v32 = vmul.f32 1.442695, %v1200_v19  ;;  %v1201_v33 = vsub.f32 %v1143_v17, %v1193_v28 }
 0x458   : > { %2403 = vpow2.f32 %v1204_v32  ;;  %v1206_v34 = vmul.f32 1.442695, %v1201_v33 }
 0x45a   : > { %2405 = vpow2.f32 %v1206_v34 }
 0x45b   : > { %v1196_v35 = vpop.xlane.xlu0 %1195 }
 0x45c   : > { %v1202_v36 = vsub.f32 %v1181_v23, %v1196_v35  ;;  %v2047_v23 = vld [vmem:[%s3378_s23] ss:$0 sm:$0xff] }
 0x45d   : > { %v1199_v37 = vpop.xlane.xlu1 %1198 }
 0x45e   : > { %v1208_v38 = vmul.f32 1.442695, %v1202_v36  ;;  %v1203_v39 = vsub.f32 %v1184_v26, %v1199_v37 }
 0x460   : > { %2407 = vpow2.f32 %v1208_v38  ;;  %v1210_v40 = vmul.f32 1.442695, %v1203_v39 }
 0x462   : > { %v2404_v41 = vpop.eup %2403  ;;  %2409 = vpow2.f32 %v1210_v40 }
 0x463   : > { %v1212_v42 = vsel %vm1187_vm7, %v2404_v41, 0.0 }
 0x464   : > { %v2406_v43 = vpop.eup %2405  ;;  %1213 = vadd.xlane.f32.xlu0 %v1212_v42 }
 0x465   : > { %v1215_v44 = vsel %vm1187_vm7, %v2406_v43, 0.0 }
 0x466   : > { %1216 = vadd.xlane.f32.xlu1 %v1215_v44 }
 0x46a   : > { %v2408_v45 = vpop.eup %2407 }
 0x46b   : > { %v1218_v46 = vsel %vm1187_vm7, %v2408_v45, 0.0 }
 0x46c   : > { %v2410_v47 = vpop.eup %2409  ;;  %1219 = vadd.xlane.f32.xlu0 %v1218_v46 }
 0x46d   : > { %v1221_v48 = vsel %vm1187_vm7, %v2410_v47, 0.0 }
 0x46e   : > { %1222 = vadd.xlane.f32.xlu1 %v1221_v48 }
 0x4f1   : > { %v1214_v12 = vpop.xlane.xlu0 %1213 }
 0x4f2   : > { %2411 = vrcp.f32 %v1214_v12 }
 0x4f3   : > { %v1217_v50 = vpop.xlane.xlu1 %1216 }
 0x4f4   : > { %2413 = vrcp.f32 %v1217_v50 }
 0x4f9   : > { %v1220_v51 = vpop.xlane.xlu0 %1219 }
 0x4fa   : > { %2415 = vrcp.f32 %v1220_v51  ;;  %v2380_v51 = vld [vmem:[%s3018_s8 + $0x8] sm:$0xff]  }
 0x4fb   : > { %v1223_v52 = vpop.xlane.xlu1 %1222 }
 0x4fc   : > { %v2412_v53 = vpop.eup %2411  ;;  %2417 = vrcp.f32 %v1223_v52  ;;  %v2381_v52 = vld [vmem:[%s3018_s8 + $0x10] sm:$0xff]  }
 0x4fd   : > { %v1228_v55 = vmul.f32 %v2412_v53, %v2404_v41  ;;  %v2382_v53 = vld [vmem:[%s3018_s8 + $0x18] sm:$0xff]  }
 0x4fe   : > { %v2414_v54 = vpop.eup %2413 }
 0x4ff   : > { %v1229_v56 = vmul.f32 %v2414_v54, %v2406_v43  ;;  %v2383_v54 = vld [vmem:[%s3018_s8 + $0x20] sm:$0xff]  }
 0x501   : > { %v1232_v57 = vpack.c.bf16 %v1229_v56, %v1228_v55  ;;  %v2385_v55 = vld [vmem:[%s3018_s8 + $0x30] sm:$0xff]   ;;  %v2386_v56 = vld [vmem:[%s3018_s8 + $0x38] sm:$0xff]  }
 0x503   : > { %2166 = vmatmul.mubr.msk.bf16.vlgmr.msra.gmra.mrb[4].mxu1 %vm1187_vm7, %v1232_v57  ;;  %v2387_v57 = vld [vmem:[%s3062_s21] sm:$0xff]  }
 0x504   : > { %v2416_v59 = vpop.eup %2415  ;;  %2176 = vmatpush3.bf16.msra.mxu1 %v2371_v49 }
 0x505   : > { %2177 = vmatprep.subr.bf16.mxu1 %v2372_v58  ;;  %v1230_v62 = vmul.f32 %v2416_v59, %v2408_v45  ;;  %v2389_v59 = vld [vmem:[%s3062_s21 + $0x10] sm:$0xff]  }
 0x506   : > { %v2418_v61 = vpop.eup %2417 }
 0x507   : > { %v1231_v63 = vmul.f32 %v2418_v61, %v2410_v47  ;;  %v2391_v61 = vld [vmem:[%s3062_s21 + $0x20] sm:$0xff]  }
 0x508   : > { %2178 = vmatpush3.bf16.msra.mxu1 %v2372_v58  ;;  %v2388_v58 = vld [vmem:[%s3062_s21 + $0x8] sm:$0xff]  }
 0x509   : > { %v1233_v0 = vpack.c.bf16 %v1231_v63, %v1230_v62  ;;  %2179 = vmatprep.subr.bf16.mxu1 %v2373_v60  ;;  %v2392_v62 = vld [vmem:[%s3062_s21 + $0x28] sm:$0xff]  }
 0x50b   : > { %2172 = vmatmul.mubr.msk.bf16.vlgmr.msra.gmra.mrb[16].mxu0 %vm1187_vm7, %v1233_v0 }
 0x50c   : > { %2180 = vmatpush3.bf16.msra.mxu1 %v2373_v60  ;;  %v2390_v60 = vld [vmem:[%s3062_s21 + $0x18] sm:$0xff]  }
 0x50d   : > { %2181 = vmatprep.subr.bf16.mxu1 %v2374_v1 }
 0x510   : > { %2182 = vmatpush3.bf16.msra.mxu1 %v2374_v1 }
 0x511   : > { %2183 = vmatprep.subr.bf16.mxu1 %v2375_v2 }
 0x514   : > { %2184 = vmatpush3.bf16.msra.mxu1 %v2375_v2 }
 0x515   : > { %2185 = vmatprep.subr.bf16.mxu1 %v2376_v3 }
 0x518   : > { %2186 = vmatpush3.bf16.msra.mxu1 %v2376_v3 }
 0x519   : > { %2187 = vmatprep.subr.bf16.mxu1 %v2377_v8 }
 0x51c   : > { %2188 = vmatpush3.bf16.msra.mxu1 %v2377_v8 }
 0x51d   : > { %2189 = vmatprep.subr.bf16.mxu1 %v2378_v9 }
 0x520   : > { %2190 = vmatpush3.bf16.msra.mxu1 %v2378_v9 }
 0x521   : > { %2215 = vmatprep.subr.bf16.mxu1 %v2387_v57 }
 0x5d6   : > { %v1271_v10 = vpop.f32.mrb[4].mxu1 }
 0x5d7   : > { %v2167_v11 = vpop.f32.mrb[5].mxu1 }
 0x5d8   : > { %v1274_v14 = vpop.f32.mrb[6].mxu1 }
 0x5d9   : > { %v1322_v15 = vpack.c.bf16 %v1274_v14, %v1271_v10  ;;  %v2168_v16 = vpop.f32.mrb[7].mxu1 }
 0x5db   : > { %2191 = vmatprep.mubr.bf16.mxu1 %v1322_v15 }
 0x5de   : > { %v1315_v17 = vpop.f32.mrb[16].mxu0 }
 0x5df   : > { %v2173_v20 = vpop.f32.mrb[17].mxu0 }
 0x5e0   : > { %v1318_v21 = vpop.f32.mrb[18].mxu0  ;;  %v2056_v20 = vld [vmem:[%s707_s22] ss:$0 sm:$0xff] }
 0x5e1   : > { %v1323_v18 = vpack.c.bf16 %v1318_v21, %v1315_v17  ;;  %v2174_v22 = vpop.f32.mrb[19].mxu0 }
 0x5e3   : > { %2192 = vmatmul.mubr.bf16.vlgmr.msra.gmra.mrb[8].mxu1 %v1323_v18 }
 0x5e4   : > { %2216 = vmatpush3.bf16.msra.mxu1 %v2387_v57 }
 0x5e5   : > { %2217 = vmatprep.subr.bf16.mxu1 %v2388_v58 }
 0x5e8   : > { %2218 = vmatpush3.bf16.msra.mxu1 %v2388_v58 }
 0x5e9   : > { %2219 = vmatprep.subr.bf16.mxu1 %v2389_v59 }
 0x5ec   : > { %2220 = vmatpush3.bf16.msra.mxu1 %v2389_v59 }
 0x5ed   : > { %2221 = vmatprep.subr.bf16.mxu1 %v2390_v60 }
 0x5f0   : > { %2222 = vmatpush3.bf16.msra.mxu1 %v2390_v60 }
 0x5f1   : > { %2223 = vmatprep.subr.bf16.mxu1 %v2391_v61 }
 0x5f4   : > { %2224 = vmatpush3.bf16.msra.mxu1 %v2391_v61 }
 0x5f5   : > { %2225 = vmatprep.subr.bf16.mxu1 %v2392_v62 }
 0x5f8   : > { %2226 = vmatpush3.bf16.msra.mxu1 %v2392_v62 }
 0x6b6   : > { %v2193_v24 = vpop.f32.mrb[8].mxu1 }
 0x6b7   : > { %v1429_v25 = vpop.f32.mrb[9].mxu1  ;;  %v1438_v30 = vadd.f32 %v2193_v24, %v2047_v23 }
 0x6b8   : > { %v1430_v26 = vadd.f32 %v2047_v23, %v1429_v25  ;;  %v2194_v27 = vpop.f32.mrb[10].mxu1  ;;  %v2057_v25 = vld [vmem:[%s710_s3] ss:$0 sm:$0xff] }
 0x6b9   : > { %v1432_v29 = vpop.f32.mrb[11].mxu1  ;;  %v1441_v28 = vadd.f32 %v2194_v27, %v2047_v23  ;;  %v3183_v33 = vadd.f32 %v1438_v30, %v3067_v5 }
 0x6ba   : > { %v3176_v31 = vadd.f32 %v1430_v26, %v3065_v4  ;;  %v1433_v19 = vadd.f32 %v2047_v23, %v1432_v29  ;;  %v2379_v4 = vld [vmem:[%s3018_s8] sm:$0xff]  }
 0x6bb   : > { %v3187_v34 = vadd.f32 %v1441_v28, %v3073_v7  ;;  %2195 = vmatprep.subr.bf16.mxu0 %v2379_v4 }
 0x6bc   : > { %v3179_v32 = vadd.f32 %v1433_v19, %v3069_v6  ;;  %1450 = vadd.xlane.f32.xlu0 %v3176_v31  ;;  %2196 = vmatpush3.bf16.msra.mxu0 %v2379_v4 }
 0x6bd   : > { %2197 = vmatprep.subr.bf16.mxu0 %v2380_v51 }
 0x6be   : > { %1452 = vadd.xlane.f32.xlu1 %v3179_v32 }
 0x6c0   : > { %1454 = vadd.xlane.f32.xlu0 %v3183_v33  ;;  %2198 = vmatpush3.bf16.msra.mxu0 %v2380_v51 }
 0x6c1   : > { %2199 = vmatprep.subr.bf16.mxu0 %v2381_v52 }
 0x6c2   : > { %1456 = vadd.xlane.f32.xlu1 %v3187_v34 }
 0x6c4   : > { %2200 = vmatpush3.bf16.msra.mxu0 %v2381_v52 }
 0x6c5   : > { %2201 = vmatprep.subr.bf16.mxu0 %v2382_v53 }
 0x6c8   : > { %2202 = vmatpush3.bf16.msra.mxu0 %v2382_v53  ;;  %v2067_v53 = vld [vmem:[%s716_s15] ss:$0 sm:$0xff] }
 0x6c9   : > { %2203 = vmatprep.subr.bf16.mxu0 %v2383_v54 }
 0x6cc   : > { %2204 = vmatpush3.bf16.msra.mxu0 %v2383_v54 }
 0x6cd   : > { %2205 = vmatprep.subr.bf16.mxu0 %v2384_v13 }
 0x6d0   : > { %2206 = vmatpush3.bf16.msra.mxu0 %v2384_v13 }
 0x6d1   : > { %2207 = vmatprep.subr.bf16.mxu0 %v2385_v55 }
 0x6d4   : > { %2208 = vmatpush3.bf16.msra.mxu0 %v2385_v55 }
 0x6d5   : > { %2209 = vmatprep.subr.bf16.mxu0 %v2386_v56 }
 0x6d8   : > { %2210 = vmatpush3.bf16.msra.mxu0 %v2386_v56 }
 0x749   : > { %v1451_v35 = vpop.xlane.xlu0 %1450 }
 0x74a   : > { %v1458_v6 = vmul.f32 0.03125, %v1451_v35 }
 0x74b   : > { %v1453_v36 = vpop.xlane.xlu1 %1452 }
 0x74c   : > { %v3193_v37 = vsub.f32 %v3176_v31, %v1458_v6  ;;  %v1459_v5 = vmul.f32 0.03125, %v1453_v36 }
 0x74d   : > { %v1455_v38 = vpop.xlane.xlu0 %1454 }
 0x74e   : > { %v3196_v39 = vsub.f32 %v3179_v32, %v1459_v5  ;;  %v1460_v7 = vmul.f32 0.03125, %v1455_v38  ;;  %v1466_v40 = vsel %vm755_vm0, %v3193_v37, 0.0  ;;  %v2393_v38 = vld [vmem:[%s3062_s21 + $0x30] sm:$0xff]  }
 0x74f   : > { %v1457_v41 = vpop.xlane.xlu1 %1456  ;;  %v1470_v42 = vmul.f32 %v1466_v40, %v1466_v40  ;;  %2227 = vmatprep.subr.bf16.mxu1 %v2393_v38 }
 0x750   : > { %v3202_v43 = vsub.f32 %v3183_v33, %v1460_v7  ;;  %v1461_v44 = vmul.f32 0.03125, %v1457_v41  ;;  %v1467_v45 = vsel %vm755_vm0, %v3196_v39, 0.0  ;;  %2228 = vmatpush3.bf16.msra.mxu1 %v2393_v38  ;;  %v2058_v7 = vld [vmem:[%s713_s11] ss:$0 sm:$0xff] }
 0x751   : > { %1474 = vadd.xlane.f32.xlu0 %v1470_v42  ;;  %v1471_v46 = vmul.f32 %v1467_v45, %v1467_v45 }
 0x752   : > { %v3208_v47 = vsub.f32 %v3187_v34, %v1461_v44  ;;  %v1468_v48 = vsel %vm755_vm0, %v3202_v43, 0.0 }
 0x753   : > { %1476 = vadd.xlane.f32.xlu1 %v1471_v46  ;;  %v1472_v49 = vmul.f32 %v1468_v48, %v1468_v48 }
 0x754   : > { %v1469_v12 = vsel %vm755_vm0, %v3208_v47, 0.0 }
 0x755   : > { %1478 = vadd.xlane.f32.xlu0 %v1472_v49  ;;  %v1473_v50 = vmul.f32 %v1469_v12, %v1469_v12 }
 0x757   : > { %1480 = vadd.xlane.f32.xlu1 %v1473_v50 }
 0x7de   : > { %v1475_v63 = vpop.xlane.xlu0 %1474 }
 0x7df   : > { %v1482_v0 = vmul.f32 0.03125, %v1475_v63 }
 0x7e0   : > { %v1477_v1 = vpop.xlane.xlu1 %1476 }
 0x7e1   : > { %v1486_v2 = vadd.f32 1e-05, %v1482_v0  ;;  %v1483_v3 = vmul.f32 0.03125, %v1477_v1 }
 0x7e2   : > { %v1479_v8 = vpop.xlane.xlu0 %1478 }
 0x7e3   : > { %2419 = vrsqrt.f32 %v1486_v2  ;;  %v1487_v9 = vadd.f32 1e-05, %v1483_v3  ;;  %v1484_v10 = vmul.f32 0.03125, %v1479_v8 }
 0x7e4   : > { %v1481_v11 = vpop.xlane.xlu1 %1480 }
 0x7e5   : > { %2421 = vrsqrt.f32 %v1487_v9  ;;  %v1488_v14 = vadd.f32 1e-05, %v1484_v10  ;;  %v1485_v15 = vmul.f32 0.03125, %v1481_v11 }
 0x7e7   : > { %2423 = vrsqrt.f32 %v1488_v14  ;;  %v1489_v16 = vadd.f32 1e-05, %v1485_v15 }
 0x7e9   : > { %2425 = vrsqrt.f32 %v1489_v16 }
 0x7ed   : > { %v2420_v17 = vpop.eup %2419 }
 0x7ee   : > { %v1494_v21 = vmul.f32 %v2420_v17, %v3193_v37 }
 0x7ef   : > { %v2422_v18 = vpop.eup %2421 }
 0x7f0   : > { %v1495_v22 = vmul.f32 %v2422_v18, %v3196_v39  ;;  %v1504_v23 = vmul.f32 %v2056_v20, %v1494_v21  ;;  %v2394_v39 = vld [vmem:[%s3062_s21 + $0x38] sm:$0xff]  }
 0x7f1   : > { %v2424_v24 = vpop.eup %2423  ;;  %2229 = vmatprep.subr.bf16.mxu1 %v2394_v39 }
 0x7f2   : > { %v1496_v26 = vmul.f32 %v2424_v24, %v3202_v43  ;;  %v1505_v27 = vmul.f32 %v2056_v20, %v1495_v22  ;;  %v1514_v19 = vadd.f32 %v2057_v25, %v1504_v23  ;;  %2230 = vmatpush3.bf16.msra.mxu1 %v2394_v39 }
 0x7f3   : > { %v2426_v29 = vpop.eup %2425 }
 0x7f4   : > { %v1497_v30 = vmul.f32 %v2426_v29, %v3208_v47  ;;  %v1515_v28 = vadd.f32 %v2057_v25, %v1505_v27  ;;  %v1506_v4 = vmul.f32 %v2056_v20, %v1496_v26 }
 0x7f6   : > { %v1518_v35 = vpack.c.bf16 %v1515_v28, %v1514_v19  ;;  %v1507_v6 = vmul.f32 %v2056_v20, %v1497_v30  ;;  %v1516_v36 = vadd.f32 %v2057_v25, %v1506_v4 }
 0x7f8   : > { %2211 = vmatprep.mubr.bf16.mxu0 %v1518_v35  ;;  %v1517_v37 = vadd.f32 %v2057_v25, %v1507_v6 }
 0x7fa   : > { %v1519_v5 = vpack.c.bf16 %v1517_v37, %v1516_v36 }
 0x7fc   : > { %2212 = vmatmul.mubr.bf16.vlgmr.msra.gmra.mrb[20].mxu0 %v1519_v5 }
 0x8cf   : > { %v2213_v40 = vpop.f32.mrb[20].mxu0 }
 0x8d0   : > { %v1634_v41 = vadd.f32 %v2213_v40, %v2058_v7  ;;  %v1625_v42 = vpop.f32.mrb[21].mxu0 }
 0x8d1   : > { %v1626_v43 = vadd.f32 %v2058_v7, %v1625_v42  ;;  %v2214_v44 = vpop.f32.mrb[22].mxu0 }
 0x8d2   : > { %v1637_v45 = vadd.f32 %v2214_v44, %v2058_v7  ;;  %v1628_v46 = vpop.f32.mrb[23].mxu0  ;;  %v1642_v48 = vmax.f32 %v1634_v41, 0.0 }
 0x8d3   : > { %v1629_v47 = vadd.f32 %v2058_v7, %v1628_v46  ;;  %v1640_v12 = vmax.f32 %v1626_v43, 0.0 }
 0x8d4   : > { %v1643_v49 = vmax.f32 %v1637_v45, 0.0 }
 0x8d5   : > { %v1641_v50 = vmax.f32 %v1629_v47, 0.0 }
 0x8d6   : > { %v1645_v51 = vpack.c.bf16 %v1643_v49, %v1642_v48 }
 0x8d7   : > { %v1644_v52 = vpack.c.bf16 %v1641_v50, %v1640_v12 }
 0x8d9   : > { %2231 = vmatprep.mubr.bf16.mxu1 %v1644_v52 }
 0x8da   : > { %2232 = vmatmul.mubr.bf16.vlgmr.msra.gmra.mrb[12].mxu1 %v1645_v51 }
 0x9ad   : > { %v2233_v54 = vpop.f32.mrb[12].mxu1 }
 0x9ae   : > { %v1760_v13 = vadd.f32 %v2233_v54, %v2067_v53  ;;  %v1751_v55 = vpop.f32.mrb[13].mxu1 }
 0x9af   : > { %v1752_v56 = vadd.f32 %v2067_v53, %v1751_v55  ;;  %v2234_v57 = vpop.f32.mrb[14].mxu1 }
 0x9b0   : > { %v1768_v58 = vadd.f32 %v1760_v13, %v3183_v33  ;;  %v1763_v59 = vadd.f32 %v2234_v57, %v2067_v53  ;;  %v1754_v60 = vpop.f32.mrb[15].mxu1 }
 0x9b1   : > { %v1766_v61 = vadd.f32 %v1752_v56, %v3176_v31  ;;  %v1755_v62 = vadd.f32 %v2067_v53, %v1754_v60 }
 0x9b2   : > { %1772 = vst [vmem:[#allocation11 + $0x10] sm:$0xff] %v1768_v58  ;;  %v1769_v63 = vadd.f32 %v1763_v59, %v3187_v34 }
 0x9b3   : > { %1770 = vst [vmem:[#allocation11] sm:$0xff] %v1766_v61  ;;  %v1767_v0 = vadd.f32 %v1755_v62, %v3179_v32 }
 0x9b4   : > { %1773 = vst [vmem:[#allocation11 + $0x18] sm:$0xff] %v1769_v63 }
 0x9b5   : > { %1771 = vst [vmem:[#allocation11 + $0x8] sm:$0xff] %v1767_v0 }
 0x9b6   : > { %2588 = shalt.err (!%p2585_p0)
}
 0x9b7   : > { %s3384_s20 = sld [smem:[#allocation33_spill]] }
 0x9bd   : > { %s2589_s0 = scalar_lea.hbm %s3384_s20, 512 }
 0x9be   : > { %p2590_p13 = scmp.ne.s32.totalorder %s3384_s20, %s2589_s0  ;;  %p2595_p4 = scmp.lt.u32.totalorder %s2589_s0, %s3384_s20 }
 0x9c0   : > { %p2591_p1 = pnand %p2590_p13, %p2275_p11 }
 0x9c2   : > { %p2592_p12 = pneg %p2591_p1 }
 0x9c4   : > { %p2597_p6 = pnand %p2595_p4, %p2592_p12 }
 0x9c6   : > { %2600 = shalt.err (!%p2597_p6)
}
 0x9c7   : > { %s2681_s27 = smov 128   ;;  %s2682_s5 = smov 8  }
 0x9c8   : > { %2252 = dma.vmem_to_hbm [thread:$0]  (%p2275_p11), %s1784_s14, 512, %s3384_s20, [#allocation4], %s2681_s27, %s2681_s27, %s2682_s5  }
 0x9c9   : > { %2638 = dma.done.wait (%p2275_p11), [#allocation4], 512  }
 0x9ca   : > { %2640 = vsyncadd (%p2275_p11), [#allocation4], 4294966784 }
 0x9cb PF: > { %s3385_s29 = sld [smem:[#allocation19_spill]]  ;;  %s3386_s25 = sld [smem:[#allocation16_spill]] }
 0x9cc   : > { %s3387_s26 = sld [smem:[#allocation17_spill]]  ;;  %s3388_s27 = sld [smem:[#allocation21_spill]] }
 0x9cd   : > { %s3389_s28 = sld [smem:[#allocation18_spill]] }
 0x9d1   : > { %s31_s30 = sadd.s32 1, %s3385_s29   ;;  %s3390_s29 = sld [smem:[#allocation20_spill]] }
 0x9d2   : > { %p28_p5 = scmp.ge.s32.totalorder %s31_s30, 4  }
 0x9d4   :  { %30 = sbr.rel (!%p28_p5) target bundleno = 20 (0x14), region = 179 }
 0x9db   :  { %1799 = vsyncpa [#allocation3], 1 }
 0x9dc   :  { %1801 = vsyncpa [#allocation3 + $0x1], 1 }
 0x9dd   :  { %1802 = vsyncpa [#allocation6], 1 }
 0x9de   :  { %1804 = vsyncpa [#allocation6 + $0x1], 1 }
 0x9df   :  { %1805 = vsyncpa [#allocation9], 1 }
 0x9e0   :  { %1807 = vsyncpa [#allocation9 + $0x1], 1 }
 0x9e1   :  { %1808 = vsyncpa [#allocation4], 1 }
 0x9e2   :  { %1810 = vsyncpa [#allocation4 + $0x1], 1 }

</bundles_post_ra>
